<compile_context>
chip_gen: v7x
topology: tpu7x:2x2x1
jax: 0.10.0
libtpu: 0.0.40
codegen_flags: <defaults>
</compile_context>

<pallas_src>
import numpy as np
import jax
import jax.numpy as jnp
from jax import lax
from jax.experimental import pallas as pl
from jax.experimental.pallas import tpu as pltpu

EPS = 1e-5
LANE = 128


# ----------------------------- Pallas kernels ------------------------------

def _upsample2x2_kernel(x_ref, w_ref, b_ref, o_ref):
    # x_ref: (1, H*W, Cip) bf16 ; w_ref: (Cip, 4*Cop) bf16 ; b_ref: (1, 4*Cop) f32
    # o_ref: (1, H*W, 4*Cop) bf16 -- lane-dense output, columns ordered (a, b, co) for the
    # four 2x2 taps of the transposed convolution.
    acc = jnp.dot(x_ref[0], w_ref[...], preferred_element_type=jnp.float32) + b_ref[...]
    o_ref[0] = acc.astype(o_ref.dtype)


def _conv3x3_cat_fused_kernel(up_ref, sk_ref, wu_ref, ws_ref, b_ref,
                              y_ref, sum_ref, sq_ref):
    # Conv over concat([up, skip], channels) WITHOUT materializing the concat.
    # up_ref/sk_ref: (1, H+2, W+2, Cip) bf16, spatially zero-padded.
    # wu_ref/ws_ref: (9, Cip, Cop) bf16 (tap-major).  b_ref: (1, Cop) f32.
    # y_ref: (1, H, W, Cop) f32 raw (pre-BN) conv output.
    # sum_ref/sq_ref: (1, Cop) f32 per-channel BN accumulators across the grid.
    @pl.when(pl.program_id(0) == 0)
    def _():
        sum_ref[...] = jnp.zeros_like(sum_ref)
        sq_ref[...] = jnp.zeros_like(sq_ref)

    _, H, W, Co = y_ref.shape
    Ci = up_ref.shape[3]
    xu = up_ref[0].astype(jnp.float32)          # (Hp, Wp, Ci)
    xs = sk_ref[0].astype(jnp.float32)

    acc = jnp.broadcast_to(b_ref[...], (H * W, Co))
    # kw-outer / kh-inner: 3 unaligned width slices + 3 bf16 downcasts per input
    # (instead of 9 each); kh shift is a cheap leading-dim slice; the reshape to
    # (H*W, Ci) is layout-preserving because W is a sublane multiple.
    for kw in range(3):                         # fully unrolled: 18 MXU matmuls total
        cu = xu[:, kw:kw + W, :].astype(jnp.bfloat16)   # (Hp, W, Ci)
        cs = xs[:, kw:kw + W, :].astype(jnp.bfloat16)
        for kh in range(3):
            t = kh * 3 + kw
            win_u = cu[kh:kh + H].reshape(H * W, Ci)
            win_s = cs[kh:kh + H].reshape(H * W, Ci)
            acc = acc + jnp.dot(win_u, wu_ref[t], preferred_element_type=jnp.float32)
            acc = acc + jnp.dot(win_s, ws_ref[t], preferred_element_type=jnp.float32)

    y_ref[0] = acc.reshape(H, W, Co)
    sum_ref[...] += jnp.sum(acc, axis=0, keepdims=True)
    sq_ref[...] += jnp.sum(acc * acc, axis=0, keepdims=True)


def _conv3x3_bnrelu_in_fused_kernel(x_ref, sc_ref, sh_ref, w_ref, b_ref,
                                    y_ref, sum_ref, sq_ref):
    # x_ref: (1, H+2, W+2, Cip) f32 = raw (pre-BN) previous conv output, zero-padded spatially.
    # The previous layer's BatchNorm scale/shift + ReLU is applied here, in the consumer's load,
    # with a border mask so the spatial zero-padding stays exactly zero.
    @pl.when(pl.program_id(0) == 0)
    def _():
        sum_ref[...] = jnp.zeros_like(sum_ref)
        sq_ref[...] = jnp.zeros_like(sq_ref)

    _, H, W, Co = y_ref.shape
    _, Hp, Wp, Ci = x_ref.shape
    x = x_ref[0]
    z = jnp.maximum(x * sc_ref[...] + sh_ref[...], 0.0)
    hh = lax.broadcasted_iota(jnp.int32, z.shape, 0)
    ww = lax.broadcasted_iota(jnp.int32, z.shape, 1)
    interior = (hh > 0) & (hh < Hp - 1) & (ww > 0) & (ww < Wp - 1)
    z = jnp.where(interior, z, 0.0)

    acc = jnp.broadcast_to(b_ref[...], (H * W, Co))
    for kw in range(3):
        zw = z[:, kw:kw + W, :].astype(jnp.bfloat16)    # one slice + downcast per kw
        for kh in range(3):
            t = kh * 3 + kw
            win = zw[kh:kh + H].reshape(H * W, Ci)
            acc = acc + jnp.dot(win, w_ref[t], preferred_element_type=jnp.float32)

    y_ref[0] = acc.reshape(H, W, Co)
    sum_ref[...] += jnp.sum(acc, axis=0, keepdims=True)
    sq_ref[...] += jnp.sum(acc * acc, axis=0, keepdims=True)


def _bn_relu_kernel(x_ref, sc_ref, sh_ref, o_ref):
    o_ref[...] = jnp.maximum(x_ref[...] * sc_ref[...] + sh_ref[...], 0.0)


# ----------------------------- Pallas wrappers ------------------------------

def upsample2x2(x_rows, w2d, b4):
    N, HW, Ci = x_rows.shape
    C4 = w2d.shape[1]
    return pl.pallas_call(
        _upsample2x2_kernel,
        out_shape=jax.ShapeDtypeStruct((N, HW, C4), jnp.bfloat16),
        grid=(N,),
        in_specs=[
            pl.BlockSpec((1, HW, Ci), lambda n: (n, 0, 0)),
            pl.BlockSpec((Ci, C4), lambda n: (0, 0)),
            pl.BlockSpec((1, C4), lambda n: (0, 0)),
        ],
        out_specs=pl.BlockSpec((1, HW, C4), lambda n: (n, 0, 0)),
        compiler_params=pltpu.CompilerParams(dimension_semantics=("parallel",)),
    )(x_rows, w2d, b4)


def conv3x3_cat_fused(up_p, sk_p, wu, ws, b):
    N, Hp, Wp, Ci = up_p.shape
    H, W = Hp - 2, Wp - 2
    Co = wu.shape[2]
    return pl.pallas_call(
        _conv3x3_cat_fused_kernel,
        out_shape=(jax.ShapeDtypeStruct((N, H, W, Co), jnp.float32),
                   jax.ShapeDtypeStruct((1, Co), jnp.float32),
                   jax.ShapeDtypeStruct((1, Co), jnp.float32)),
        grid=(N,),
        in_specs=[
            pl.BlockSpec((1, Hp, Wp, Ci), lambda n: (n, 0, 0, 0)),
            pl.BlockSpec((1, Hp, Wp, Ci), lambda n: (n, 0, 0, 0)),
            pl.BlockSpec((9, Ci, Co), lambda n: (0, 0, 0)),
            pl.BlockSpec((9, Ci, Co), lambda n: (0, 0, 0)),
            pl.BlockSpec((1, Co), lambda n: (0, 0)),
        ],
        out_specs=(
            pl.BlockSpec((1, H, W, Co), lambda n: (n, 0, 0, 0)),
            pl.BlockSpec((1, Co), lambda n: (0, 0)),
            pl.BlockSpec((1, Co), lambda n: (0, 0)),
        ),
        # the stats accumulators repeat their block over this axis -> must be "arbitrary"
        compiler_params=pltpu.CompilerParams(dimension_semantics=("arbitrary",)),
    )(up_p, sk_p, wu, ws, b)


def conv3x3_bnrelu_in_fused(x_p, scale, shift, w, b):
    N, Hp, Wp, Ci = x_p.shape
    H, W = Hp - 2, Wp - 2
    Co = w.shape[2]
    return pl.pallas_call(
        _conv3x3_bnrelu_in_fused_kernel,
        out_shape=(jax.ShapeDtypeStruct((N, H, W, Co), jnp.float32),
                   jax.ShapeDtypeStruct((1, Co), jnp.float32),
                   jax.ShapeDtypeStruct((1, Co), jnp.float32)),
        grid=(N,),
        in_specs=[
            pl.BlockSpec((1, Hp, Wp, Ci), lambda n: (n, 0, 0, 0)),
            pl.BlockSpec((1, Ci), lambda n: (0, 0)),
            pl.BlockSpec((1, Ci), lambda n: (0, 0)),
            pl.BlockSpec((9, Ci, Co), lambda n: (0, 0, 0)),
            pl.BlockSpec((1, Co), lambda n: (0, 0)),
        ],
        out_specs=(
            pl.BlockSpec((1, H, W, Co), lambda n: (n, 0, 0, 0)),
            pl.BlockSpec((1, Co), lambda n: (0, 0)),
            pl.BlockSpec((1, Co), lambda n: (0, 0)),
        ),
        compiler_params=pltpu.CompilerParams(dimension_semantics=("arbitrary",)),
    )(x_p, scale, shift, w, b)


def _pick_row_tile(M, target=512):
    for t in (target, 256, 128, 64, 32, 16, 8):
        if t <= M and M % t == 0:
            return t
    return M


def bn_relu(x2d, scale, shift):
    M, C = x2d.shape
    tm = _pick_row_tile(M)
    return pl.pallas_call(
        _bn_relu_kernel,
        out_shape=jax.ShapeDtypeStruct((M, C), jnp.float32),
        grid=(M // tm,),
        in_specs=[
            pl.BlockSpec((tm, C), lambda i: (i, 0)),
            pl.BlockSpec((1, C), lambda i: (0, 0)),
            pl.BlockSpec((1, C), lambda i: (0, 0)),
        ],
        out_specs=pl.BlockSpec((tm, C), lambda i: (i, 0)),
        compiler_params=pltpu.CompilerParams(dimension_semantics=("parallel",)),
    )(x2d, scale, shift)


# ------------------------------ model pieces -------------------------------

def _rup(n, m):
    return ((n + m - 1) // m) * m


def _pad_channels(x, target):
    pad = target - x.shape[-1]
    if pad == 0:
        return x
    return jnp.pad(x, [(0, 0)] * (x.ndim - 1) + [(0, pad)])


def _bn_scale_shift(s, sq, count):
    # training-mode BatchNorm statistics (biased variance), gamma=1, beta=0.
    # Sums are accumulated in f32 inside the conv kernels; clamp tiny negative round-off.
    mean = s / count
    var = jnp.maximum(sq / count - mean * mean, 0.0)
    scale = lax.rsqrt(var + EPS)
    shift = -mean * scale
    return scale, shift


def up_block_forward(x_nchw, skip_nchw, params):
    N, Cin, H, W = x_nchw.shape
    Cout = params["up_b"].shape[0]
    Cip, Cop = _rup(Cin, LANE), _rup(Cout, LANE)
    Ho, Wo = 2 * H, 2 * W
    bf16 = jnp.bfloat16

    # ---- ConvTranspose2d(k=2, s=2): one lane-dense MXU matmul, columns ordered (a, b, co) ----
    x = jnp.transpose(x_nchw, (0, 2, 3, 1))                       # NCHW -> NHWC
    x = _pad_channels(x, Cip).astype(bf16)
    wup = jnp.transpose(params["up_w"], (0, 2, 3, 1)).reshape(Cin, 4, Cout)
    wup = jnp.zeros((Cip, 4, Cop), bf16).at[:Cin, :, :Cout].set(
        wup.astype(bf16)).reshape(Cip, 4 * Cop)
    bup = jnp.zeros((4, Cop), jnp.float32).at[:, :Cout].set(
        jnp.broadcast_to(params["up_b"], (4, Cout))).reshape(1, 4 * Cop)
    up4 = upsample2x2(x.reshape(N, H * W, Cip), wup, bup)         # (N, H*W, 4*Cop) bf16

    # 2x2 pixel shuffle into the upsampled NHWC layout + conv spatial zero-pads.
    # TODO(synk): these remaining XLA-level copies could be folded into conv1's tap indexing /
    # an in-kernel padded VMEM scratch; kept in JAX glue here for robustness.
    up = up4.reshape(N, H, W, 2, 2, Cop)
    up = jnp.transpose(up, (0, 1, 3, 2, 4, 5)).reshape(N, Ho, Wo, Cop)
    skip = _pad_channels(jnp.transpose(skip_nchw, (0, 2, 3, 1)), Cop).astype(bf16)
    up_p = jnp.pad(up, ((0, 0), (1, 1), (1, 1), (0, 0)))
    sk_p = jnp.pad(skip, ((0, 0), (1, 1), (1, 1), (0, 0)))

    # ---- conv1 over the (never materialized) concat([up, skip], channels) ----
    w1 = jnp.transpose(params["conv1_w"], (2, 3, 1, 0)).reshape(9, 2 * Cout, Cout)
    w1u = jnp.zeros((9, Cop, Cop), bf16).at[:, :Cout, :Cout].set(w1[:, :Cout, :].astype(bf16))
    w1s = jnp.zeros((9, Cop, Cop), bf16).at[:, :Cout, :Cout].set(w1[:, Cout:, :].astype(bf16))
    b1 = jnp.zeros((1, Cop), jnp.float32).at[0, :Cout].set(params["conv1_b"])
    y1, s1, sq1 = conv3x3_cat_fused(up_p, sk_p, w1u, w1s, b1)     # raw pre-BN output + stats
    scale1, shift1 = _bn_scale_shift(s1, sq1, N * Ho * Wo)

    # ---- conv2: BN1 + ReLU applied inside the kernel on the loaded window ----
    w2 = jnp.transpose(params["conv2_w"], (2, 3, 1, 0)).reshape(9, Cout, Cout)
    w2p = jnp.zeros((9, Cop, Cop), bf16).at[:, :Cout, :Cout].set(w2.astype(bf16))
    b2 = jnp.zeros((1, Cop), jnp.float32).at[0, :Cout].set(params["conv2_b"])
    y1_p = jnp.pad(y1, ((0, 0), (1, 1), (1, 1), (0, 0)))
    y2, s2, sq2 = conv3x3_bnrelu_in_fused(y1_p, scale1, shift1, w2p, b2)
    scale2, shift2 = _bn_scale_shift(s2, sq2, N * Ho * Wo)

    # ---- final BN2 + ReLU: lane-dense elementwise pass with large row tiles ----
    # TODO(synk): BatchNorm running-stats update (training side state) is not modeled; it does
    # not affect the forward output.
    out = bn_relu(y2.reshape(N * Ho * Wo, Cop), scale2, shift2)
    out = out.reshape(N, Ho, Wo, Cop)[:, :, :, :Cout]
    return jnp.transpose(out, (0, 3, 1, 2))                       # back to NCHW


# -------------------------- pure-JAX reference ------------------------------

def _ref_conv3x3_bn_relu(x_nhwc, w_oihw, b):
    w = jnp.transpose(w_oihw, (2, 3, 1, 0))          # HWIO
    y = lax.conv_general_dilated(x_nhwc, w, (1, 1), ((1, 1), (1, 1)),
                                 dimension_numbers=("NHWC", "HWIO", "NHWC"))
    y = y + b
    mean = y.mean(axis=(0, 1, 2), keepdims=True)
    var = y.var(axis=(0, 1, 2), keepdims=True)
    return jnp.maximum((y - mean) / jnp.sqrt(var + EPS), 0.0)


def ref_up_block(x_nchw, skip_nchw, params):
    x = jnp.transpose(x_nchw, (0, 2, 3, 1))
    skip = jnp.transpose(skip_nchw, (0, 2, 3, 1))
    w = params["up_w"]                               # (Ci, Co, 2, 2)
    y = jnp.einsum("nijc,cfab->nijfab", x, w)
    N, H, W, Co = y.shape[0], y.shape[1], y.shape[2], y.shape[3]
    y = jnp.transpose(y, (0, 1, 4, 2, 5, 3)).reshape(N, 2 * H, 2 * W, Co) + params["up_b"]
    cat = jnp.concatenate([y, skip], axis=-1)
    h = _ref_conv3x3_bn_relu(cat, params["conv1_w"], params["conv1_b"])
    h = _ref_conv3x3_bn_relu(h, params["conv2_w"], params["conv2_b"])
    return jnp.transpose(h, (0, 3, 1, 2))


# ---------------------------------- main ------------------------------------

if __name__ == "__main__":
    key = jax.random.PRNGKey(0)
    kx, ks, k1, k2, k3, k4, k5, k6 = jax.random.split(key, 8)

    N, Cin, Cout, H, W = 2, 8, 4, 8, 8

    # inputs (NCHW, PyTorch convention)
    x = jax.random.normal(kx, (N, Cin, H, W), jnp.float32)
    skip = jax.random.normal(ks, (N, Cout, 2 * H, 2 * W), jnp.float32)

    # deterministic parameters (shapes follow the PyTorch module's __init__)
    params = {
        "up_w": 0.1 * jax.random.normal(k1, (Cin, Cout, 2, 2), jnp.float32),       # ConvTranspose2d
        "up_b": 0.1 * jax.random.normal(k2, (Cout,), jnp.float32),
        "conv1_w": 0.1 * jax.random.normal(k3, (Cout, 2 * Cout, 3, 3), jnp.float32),
        "conv1_b": 0.1 * jax.random.normal(k4, (Cout,), jnp.float32),
        "conv2_w": 0.1 * jax.random.normal(k5, (Cout, Cout, 3, 3), jnp.float32),
        "conv2_b": 0.1 * jax.random.normal(k6, (Cout,), jnp.float32),
    }

    fwd = jax.jit(up_block_forward)
    out = jax.block_until_ready(fwd(x, skip, params))
    ref = jax.block_until_ready(ref_up_block(x, skip, params))

    assert out.shape == (N, Cout, 2 * H, 2 * W), out.shape
    # bf16 MXU inputs (per perf guidance) vs f32 reference -> slightly relaxed tolerance.
    np.testing.assert_allclose(np.asarray(out), np.asarray(ref), rtol=3e-2, atol=3e-2)

    print("KERNEL_OK")
</pallas_src>

<mosaic_0001>
module attributes {stable_mosaic.version = 11 : i64} {
  func.func @_upsample2x2_kernel(%arg0: i32, %arg1: memref<1x64x128xbf16, #tpu.memory_space<vmem>>, %arg2: memref<128x512xbf16, #tpu.memory_space<vmem>>, %arg3: memref<1x512xf32, #tpu.memory_space<vmem>>, %arg4: memref<1x64x512xbf16, #tpu.memory_space<vmem>>) attributes {dimension_semantics = [#tpu.dimension_semantics<parallel>], iteration_bounds = array<i64: 2>, scalar_prefetch = 0 : i64, scratch_operands = 0 : i64, tpu.core_type = #tpu.core_type<tc>, window_params = [{transform_indices = @transform_0, window_bounds = array<i64: 1, 64, 128>}, {pipeline_mode = #tpu.pipeline_mode<synchronous>, transform_indices = @transform_1, window_bounds = array<i64: 128, 512>}, {pipeline_mode = #tpu.pipeline_mode<synchronous>, transform_indices = @transform_2, window_bounds = array<i64: 1, 512>}, {transform_indices = @transform_3, window_bounds = array<i64: 1, 64, 512>}]} {
    %c0 = arith.constant 0 : index
    %c0_0 = arith.constant 0 : index
    %c0_1 = arith.constant 0 : index
    %0 = vector.load %arg1[%c0, %c0_0, %c0_1] : memref<1x64x128xbf16, #tpu.memory_space<vmem>>, vector<1x64x128xbf16>
    %1 = vector.shape_cast %0 : vector<1x64x128xbf16> to vector<64x128xbf16>
    %c0_2 = arith.constant 0 : index
    %c0_3 = arith.constant 0 : index
    %2 = vector.load %arg2[%c0_2, %c0_3] : memref<128x512xbf16, #tpu.memory_space<vmem>>, vector<128x512xbf16>
    %cst = arith.constant dense<0.000000e+00> : vector<64x512xf32>
    %3 = tpu.matmul %1, %2, %cst {dimension_numbers = #tpu.dot_dimension_numbers<[1], [0], [0], [1], [0, 0, 1, 1], [], []>} : vector<64x128xbf16>, vector<128x512xbf16>, vector<64x512xf32> -> vector<64x512xf32>
    %c0_4 = arith.constant 0 : index
    %c0_5 = arith.constant 0 : index
    %4 = vector.load %arg3[%c0_4, %c0_5] : memref<1x512xf32, #tpu.memory_space<vmem>>, vector<1x512xf32>
    %5 = vector.broadcast %4 : vector<1x512xf32> to vector<64x512xf32>
    %6 = arith.addf %3, %5 : vector<64x512xf32>
    %7 = arith.truncf %6 : vector<64x512xf32> to vector<64x512xbf16>
    %c0_6 = arith.constant 0 : index
    %c0_7 = arith.constant 0 : index
    %c0_8 = arith.constant 0 : index
    %8 = vector.load %arg4[%c0_6, %c0_7, %c0_8] : memref<1x64x512xbf16, #tpu.memory_space<vmem>>, vector<1x64x512xbf16>
    %9 = vector.shape_cast %8 : vector<1x64x512xbf16> to vector<64x512xbf16>
    %10 = vector.shape_cast %7 : vector<64x512xbf16> to vector<1x64x512xbf16>
    tpu.vector_store %arg4[%c0_6, %c0_7, %c0_8], %10 {strides = array<i32>} : memref<1x64x512xbf16, #tpu.memory_space<vmem>>, vector<1x64x512xbf16>,
    return
  }
  func.func @transform_0(%arg0: i32) -> (i32, i32, i32) {
    %c0_i32 = arith.constant 0 : i32
    %c0_i32_0 = arith.constant 0 : i32
    %c0_i32_1 = arith.constant 0 : i32
    return %arg0, %c0_i32, %c0_i32_0 : i32, i32, i32
  }
  func.func @transform_1(%arg0: i32) -> (i32, i32) {
    %c0_i32 = arith.constant 0 : i32
    %c0_i32_0 = arith.constant 0 : i32
    %c0_i32_1 = arith.constant 0 : i32
    return %c0_i32, %c0_i32_0 : i32, i32
  }
  func.func @transform_2(%arg0: i32) -> (i32, i32) {
    %c0_i32 = arith.constant 0 : i32
    %c0_i32_0 = arith.constant 0 : i32
    %c0_i32_1 = arith.constant 0 : i32
    return %c0_i32, %c0_i32_0 : i32, i32
  }
  func.func @transform_3(%arg0: i32) -> (i32, i32, i32) {
    %c0_i32 = arith.constant 0 : i32
    %c0_i32_0 = arith.constant 0 : i32
    %c0_i32_1 = arith.constant 0 : i32
    return %arg0, %c0_i32, %c0_i32_0 : i32, i32, i32
  }
}

module attributes {stable_mosaic.version = 11 : i64} {
  func.func @_conv3x3_cat_fused_kernel(%arg0: i32, %arg1: memref<1x18x18x128xbf16, #tpu.memory_space<vmem>>, %arg2: memref<1x18x18x128xbf16, #tpu.memory_space<vmem>>, %arg3: memref<9x128x128xbf16, #tpu.memory_space<vmem>>, %arg4: memref<9x128x128xbf16, #tpu.memory_space<vmem>>, %arg5: memref<1x128xf32, #tpu.memory_space<vmem>>, %arg6: memref<1x16x16x128xf32, #tpu.memory_space<vmem>>, %arg7: memref<1x128xf32, #tpu.memory_space<vmem>>, %arg8: memref<1x128xf32, #tpu.memory_space<vmem>>) attributes {dimension_semantics = [#tpu.dimension_semantics<arbitrary>], iteration_bounds = array<i64: 2>, scalar_prefetch = 0 : i64, scratch_operands = 0 : i64, tpu.core_type = #tpu.core_type<tc>, window_params = [{transform_indices = @transform_0, window_bounds = array<i64: 1, 18, 18, 128>}, {transform_indices = @transform_1, window_bounds = array<i64: 1, 18, 18, 128>}, {pipeline_mode = #tpu.pipeline_mode<synchronous>, transform_indices = @transform_2, window_bounds = array<i64: 9, 128, 128>}, {pipeline_mode = #tpu.pipeline_mode<synchronous>, transform_indices = @transform_3, window_bounds = array<i64: 9, 128, 128>}, {pipeline_mode = #tpu.pipeline_mode<synchronous>, transform_indices = @transform_4, window_bounds = array<i64: 1, 128>}, {transform_indices = @transform_5, window_bounds = array<i64: 1, 16, 16, 128>}, {pipeline_mode = #tpu.pipeline_mode<synchronous>, transform_indices = @transform_6, window_bounds = array<i64: 1, 128>}, {pipeline_mode = #tpu.pipeline_mode<synchronous>, transform_indices = @transform_7, window_bounds = array<i64: 1, 128>}]} {
    %c0_i32 = arith.constant 0 : i32
    %0 = arith.cmpi eq, %arg0, %c0_i32 : i32
    %1 = arith.extui %0 : i1 to i32
    %c0_i32_0 = arith.constant 0 : i32
    %2 = arith.cmpi ne, %1, %c0_i32_0 : i32
    scf.if %2 {
      %cst_87 = arith.constant 0.000000e+00 : f32
      %147 = vector.broadcast %cst_87 : f32 to vector<1x128xf32>
      %c0_88 = arith.constant 0 : index
      %c0_89 = arith.constant 0 : index
      %148 = vector.load %arg7[%c0_88, %c0_89] : memref<1x128xf32, #tpu.memory_space<vmem>>, vector<1x128xf32>
      tpu.vector_store %arg7[%c0_88, %c0_89], %147 {strides = array<i32>} : memref<1x128xf32, #tpu.memory_space<vmem>>, vector<1x128xf32>,
      %cst_90 = arith.constant 0.000000e+00 : f32
      %149 = vector.broadcast %cst_90 : f32 to vector<1x128xf32>
      %c0_91 = arith.constant 0 : index
      %c0_92 = arith.constant 0 : index
      %150 = vector.load %arg8[%c0_91, %c0_92] : memref<1x128xf32, #tpu.memory_space<vmem>>, vector<1x128xf32>
      tpu.vector_store %arg8[%c0_91, %c0_92], %149 {strides = array<i32>} : memref<1x128xf32, #tpu.memory_space<vmem>>, vector<1x128xf32>,
    } else {
    }
    %c0 = arith.constant 0 : index
    %c0_1 = arith.constant 0 : index
    %c0_2 = arith.constant 0 : index
    %c0_3 = arith.constant 0 : index
    %3 = vector.load %arg1[%c0, %c0_1, %c0_2, %c0_3] : memref<1x18x18x128xbf16, #tpu.memory_space<vmem>>, vector<1x18x18x128xbf16>
    %4 = vector.shape_cast %3 : vector<1x18x18x128xbf16> to vector<18x18x128xbf16>
    %5 = arith.extf %4 : vector<18x18x128xbf16> to vector<18x18x128xf32>
    %c0_4 = arith.constant 0 : index
    %c0_5 = arith.constant 0 : index
    %c0_6 = arith.constant 0 : index
    %c0_7 = arith.constant 0 : index
    %6 = vector.load %arg2[%c0_4, %c0_5, %c0_6, %c0_7] : memref<1x18x18x128xbf16, #tpu.memory_space<vmem>>, vector<1x18x18x128xbf16>
    %7 = vector.shape_cast %6 : vector<1x18x18x128xbf16> to vector<18x18x128xbf16>
    %8 = arith.extf %7 : vector<18x18x128xbf16> to vector<18x18x128xf32>
    %c0_8 = arith.constant 0 : index
    %c0_9 = arith.constant 0 : index
    %9 = vector.load %arg5[%c0_8, %c0_9] : memref<1x128xf32, #tpu.memory_space<vmem>>, vector<1x128xf32>
    %10 = vector.shape_cast %9 : vector<1x128xf32> to vector<1x128xf32>
    %11 = vector.broadcast %10 : vector<1x128xf32> to vector<256x128xf32>
    %12 = vector.extract_strided_slice %5 {offsets = [0, 0, 0], sizes = [18, 16, 128], strides = [1, 1, 1]} : vector<18x18x128xf32> to vector<18x16x128xf32>
    %13 = arith.truncf %12 : vector<18x16x128xf32> to vector<18x16x128xbf16>
    %14 = vector.extract_strided_slice %8 {offsets = [0, 0, 0], sizes = [18, 16, 128], strides = [1, 1, 1]} : vector<18x18x128xf32> to vector<18x16x128xf32>
    %15 = arith.truncf %14 : vector<18x16x128xf32> to vector<18x16x128xbf16>
    %16 = vector.extract_strided_slice %13 {offsets = [0, 0, 0], sizes = [16, 16, 128], strides = [1, 1, 1]} : vector<18x16x128xbf16> to vector<16x16x128xbf16>
    %17 = vector.shape_cast %16 : vector<16x16x128xbf16> to vector<256x128xbf16>
    %18 = vector.extract_strided_slice %15 {offsets = [0, 0, 0], sizes = [16, 16, 128], strides = [1, 1, 1]} : vector<18x16x128xbf16> to vector<16x16x128xbf16>
    %19 = vector.shape_cast %18 : vector<16x16x128xbf16> to vector<256x128xbf16>
    %c0_10 = arith.constant 0 : index
    %c0_11 = arith.constant 0 : index
    %c0_12 = arith.constant 0 : index
    %20 = vector.load %arg3[%c0_10, %c0_11, %c0_12] : memref<9x128x128xbf16, #tpu.memory_space<vmem>>, vector<1x128x128xbf16>
    %21 = vector.shape_cast %20 : vector<1x128x128xbf16> to vector<128x128xbf16>
    %cst = arith.constant dense<0.000000e+00> : vector<256x128xf32>
    %22 = tpu.matmul %17, %21, %cst {dimension_numbers = #tpu.dot_dimension_numbers<[1], [0], [0], [1], [0, 0, 1, 1], [], []>} : vector<256x128xbf16>, vector<128x128xbf16>, vector<256x128xf32> -> vector<256x128xf32>
    %23 = arith.addf %11, %22 : vector<256x128xf32>
    %c0_13 = arith.constant 0 : index
    %c0_14 = arith.constant 0 : index
    %c0_15 = arith.constant 0 : index
    %24 = vector.load %arg4[%c0_13, %c0_14, %c0_15] : memref<9x128x128xbf16, #tpu.memory_space<vmem>>, vector<1x128x128xbf16>
    %25 = vector.shape_cast %24 : vector<1x128x128xbf16> to vector<128x128xbf16>
    %cst_16 = arith.constant dense<0.000000e+00> : vector<256x128xf32>
    %26 = tpu.matmul %19, %25, %cst_16 {dimension_numbers = #tpu.dot_dimension_numbers<[1], [0], [0], [1], [0, 0, 1, 1], [], []>} : vector<256x128xbf16>, vector<128x128xbf16>, vector<256x128xf32> -> vector<256x128xf32>
    %27 = arith.addf %23, %26 : vector<256x128xf32>
    %28 = vector.extract_strided_slice %13 {offsets = [1, 0, 0], sizes = [16, 16, 128], strides = [1, 1, 1]} : vector<18x16x128xbf16> to vector<16x16x128xbf16>
    %29 = vector.shape_cast %28 : vector<16x16x128xbf16> to vector<256x128xbf16>
    %30 = vector.extract_strided_slice %15 {offsets = [1, 0, 0], sizes = [16, 16, 128], strides = [1, 1, 1]} : vector<18x16x128xbf16> to vector<16x16x128xbf16>
    %31 = vector.shape_cast %30 : vector<16x16x128xbf16> to vector<256x128xbf16>
    %c3 = arith.constant 3 : index
    %c0_17 = arith.constant 0 : index
    %c0_18 = arith.constant 0 : index
    %32 = vector.load %arg3[%c3, %c0_17, %c0_18] : memref<9x128x128xbf16, #tpu.memory_space<vmem>>, vector<1x128x128xbf16>
    %33 = vector.shape_cast %32 : vector<1x128x128xbf16> to vector<128x128xbf16>
    %cst_19 = arith.constant dense<0.000000e+00> : vector<256x128xf32>
    %34 = tpu.matmul %29, %33, %cst_19 {dimension_numbers = #tpu.dot_dimension_numbers<[1], [0], [0], [1], [0, 0, 1, 1], [], []>} : vector<256x128xbf16>, vector<128x128xbf16>, vector<256x128xf32> -> vector<256x128xf32>
    %35 = arith.addf %27, %34 : vector<256x128xf32>
    %c3_20 = arith.constant 3 : index
    %c0_21 = arith.constant 0 : index
    %c0_22 = arith.constant 0 : index
    %36 = vector.load %arg4[%c3_20, %c0_21, %c0_22] : memref<9x128x128xbf16, #tpu.memory_space<vmem>>, vector<1x128x128xbf16>
    %37 = vector.shape_cast %36 : vector<1x128x128xbf16> to vector<128x128xbf16>
    %cst_23 = arith.constant dense<0.000000e+00> : vector<256x128xf32>
    %38 = tpu.matmul %31, %37, %cst_23 {dimension_numbers = #tpu.dot_dimension_numbers<[1], [0], [0], [1], [0, 0, 1, 1], [], []>} : vector<256x128xbf16>, vector<128x128xbf16>, vector<256x128xf32> -> vector<256x128xf32>
    %39 = arith.addf %35, %38 : vector<256x128xf32>
    %40 = vector.extract_strided_slice %13 {offsets = [2, 0, 0], sizes = [16, 16, 128], strides = [1, 1, 1]} : vector<18x16x128xbf16> to vector<16x16x128xbf16>
    %41 = vector.shape_cast %40 : vector<16x16x128xbf16> to vector<256x128xbf16>
    %42 = vector.extract_strided_slice %15 {offsets = [2, 0, 0], sizes = [16, 16, 128], strides = [1, 1, 1]} : vector<18x16x128xbf16> to vector<16x16x128xbf16>
    %43 = vector.shape_cast %42 : vector<16x16x128xbf16> to vector<256x128xbf16>
    %c6 = arith.constant 6 : index
    %c0_24 = arith.constant 0 : index
    %c0_25 = arith.constant 0 : index
    %44 = vector.load %arg3[%c6, %c0_24, %c0_25] : memref<9x128x128xbf16, #tpu.memory_space<vmem>>, vector<1x128x128xbf16>
    %45 = vector.shape_cast %44 : vector<1x128x128xbf16> to vector<128x128xbf16>
    %cst_26 = arith.constant dense<0.000000e+00> : vector<256x128xf32>
    %46 = tpu.matmul %41, %45, %cst_26 {dimension_numbers = #tpu.dot_dimension_numbers<[1], [0], [0], [1], [0, 0, 1, 1], [], []>} : vector<256x128xbf16>, vector<128x128xbf16>, vector<256x128xf32> -> vector<256x128xf32>
    %47 = arith.addf %39, %46 : vector<256x128xf32>
    %c6_27 = arith.constant 6 : index
    %c0_28 = arith.constant 0 : index
    %c0_29 = arith.constant 0 : index
    %48 = vector.load %arg4[%c6_27, %c0_28, %c0_29] : memref<9x128x128xbf16, #tpu.memory_space<vmem>>, vector<1x128x128xbf16>
    %49 = vector.shape_cast %48 : vector<1x128x128xbf16> to vector<128x128xbf16>
    %cst_30 = arith.constant dense<0.000000e+00> : vector<256x128xf32>
    %50 = tpu.matmul %43, %49, %cst_30 {dimension_numbers = #tpu.dot_dimension_numbers<[1], [0], [0], [1], [0, 0, 1, 1], [], []>} : vector<256x128xbf16>, vector<128x128xbf16>, vector<256x128xf32> -> vector<256x128xf32>
    %51 = arith.addf %47, %50 : vector<256x128xf32>
    %52 = vector.extract_strided_slice %5 {offsets = [0, 1, 0], sizes = [18, 16, 128], strides = [1, 1, 1]} : vector<18x18x128xf32> to vector<18x16x128xf32>
    %53 = arith.truncf %52 : vector<18x16x128xf32> to vector<18x16x128xbf16>
    %54 = vector.extract_strided_slice %8 {offsets = [0, 1, 0], sizes = [18, 16, 128], strides = [1, 1, 1]} : vector<18x18x128xf32> to vector<18x16x128xf32>
    %55 = arith.truncf %54 : vector<18x16x128xf32> to vector<18x16x128xbf16>
    %56 = vector.extract_strided_slice %53 {offsets = [0, 0, 0], sizes = [16, 16, 128], strides = [1, 1, 1]} : vector<18x16x128xbf16> to vector<16x16x128xbf16>
    %57 = vector.shape_cast %56 : vector<16x16x128xbf16> to vector<256x128xbf16>
    %58 = vector.extract_strided_slice %55 {offsets = [0, 0, 0], sizes = [16, 16, 128], strides = [1, 1, 1]} : vector<18x16x128xbf16> to vector<16x16x128xbf16>
    %59 = vector.shape_cast %58 : vector<16x16x128xbf16> to vector<256x128xbf16>
    %c1 = arith.constant 1 : index
    %c0_31 = arith.constant 0 : index
    %c0_32 = arith.constant 0 : index
    %60 = vector.load %arg3[%c1, %c0_31, %c0_32] : memref<9x128x128xbf16, #tpu.memory_space<vmem>>, vector<1x128x128xbf16>
    %61 = vector.shape_cast %60 : vector<1x128x128xbf16> to vector<128x128xbf16>
    %cst_33 = arith.constant dense<0.000000e+00> : vector<256x128xf32>
    %62 = tpu.matmul %57, %61, %cst_33 {dimension_numbers = #tpu.dot_dimension_numbers<[1], [0], [0], [1], [0, 0, 1, 1], [], []>} : vector<256x128xbf16>, vector<128x128xbf16>, vector<256x128xf32> -> vector<256x128xf32>
    %63 = arith.addf %51, %62 : vector<256x128xf32>
    %c1_34 = arith.constant 1 : index
    %c0_35 = arith.constant 0 : index
    %c0_36 = arith.constant 0 : index
    %64 = vector.load %arg4[%c1_34, %c0_35, %c0_36] : memref<9x128x128xbf16, #tpu.memory_space<vmem>>, vector<1x128x128xbf16>
    %65 = vector.shape_cast %64 : vector<1x128x128xbf16> to vector<128x128xbf16>
    %cst_37 = arith.constant dense<0.000000e+00> : vector<256x128xf32>
    %66 = tpu.matmul %59, %65, %cst_37 {dimension_numbers = #tpu.dot_dimension_numbers<[1], [0], [0], [1], [0, 0, 1, 1], [], []>} : vector<256x128xbf16>, vector<128x128xbf16>, vector<256x128xf32> -> vector<256x128xf32>
    %67 = arith.addf %63, %66 : vector<256x128xf32>
    %68 = vector.extract_strided_slice %53 {offsets = [1, 0, 0], sizes = [16, 16, 128], strides = [1, 1, 1]} : vector<18x16x128xbf16> to vector<16x16x128xbf16>
    %69 = vector.shape_cast %68 : vector<16x16x128xbf16> to vector<256x128xbf16>
    %70 = vector.extract_strided_slice %55 {offsets = [1, 0, 0], sizes = [16, 16, 128], strides = [1, 1, 1]} : vector<18x16x128xbf16> to vector<16x16x128xbf16>
    %71 = vector.shape_cast %70 : vector<16x16x128xbf16> to vector<256x128xbf16>
    %c4 = arith.constant 4 : index
    %c0_38 = arith.constant 0 : index
    %c0_39 = arith.constant 0 : index
    %72 = vector.load %arg3[%c4, %c0_38, %c0_39] : memref<9x128x128xbf16, #tpu.memory_space<vmem>>, vector<1x128x128xbf16>
    %73 = vector.shape_cast %72 : vector<1x128x128xbf16> to vector<128x128xbf16>
    %cst_40 = arith.constant dense<0.000000e+00> : vector<256x128xf32>
    %74 = tpu.matmul %69, %73, %cst_40 {dimension_numbers = #tpu.dot_dimension_numbers<[1], [0], [0], [1], [0, 0, 1, 1], [], []>} : vector<256x128xbf16>, vector<128x128xbf16>, vector<256x128xf32> -> vector<256x128xf32>
    %75 = arith.addf %67, %74 : vector<256x128xf32>
    %c4_41 = arith.constant 4 : index
    %c0_42 = arith.constant 0 : index
    %c0_43 = arith.constant 0 : index
    %76 = vector.load %arg4[%c4_41, %c0_42, %c0_43] : memref<9x128x128xbf16, #tpu.memory_space<vmem>>, vector<1x128x128xbf16>
    %77 = vector.shape_cast %76 : vector<1x128x128xbf16> to vector<128x128xbf16>
    %cst_44 = arith.constant dense<0.000000e+00> : vector<256x128xf32>
    %78 = tpu.matmul %71, %77, %cst_44 {dimension_numbers = #tpu.dot_dimension_numbers<[1], [0], [0], [1], [0, 0, 1, 1], [], []>} : vector<256x128xbf16>, vector<128x128xbf16>, vector<256x128xf32> -> vector<256x128xf32>
    %79 = arith.addf %75, %78 : vector<256x128xf32>
    %80 = vector.extract_strided_slice %53 {offsets = [2, 0, 0], sizes = [16, 16, 128], strides = [1, 1, 1]} : vector<18x16x128xbf16> to vector<16x16x128xbf16>
    %81 = vector.shape_cast %80 : vector<16x16x128xbf16> to vector<256x128xbf16>
    %82 = vector.extract_strided_slice %55 {offsets = [2, 0, 0], sizes = [16, 16, 128], strides = [1, 1, 1]} : vector<18x16x128xbf16> to vector<16x16x128xbf16>
    %83 = vector.shape_cast %82 : vector<16x16x128xbf16> to vector<256x128xbf16>
    %c7 = arith.constant 7 : index
    %c0_45 = arith.constant 0 : index
    %c0_46 = arith.constant 0 : index
    %84 = vector.load %arg3[%c7, %c0_45, %c0_46] : memref<9x128x128xbf16, #tpu.memory_space<vmem>>, vector<1x128x128xbf16>
    %85 = vector.shape_cast %84 : vector<1x128x128xbf16> to vector<128x128xbf16>
    %cst_47 = arith.constant dense<0.000000e+00> : vector<256x128xf32>
    %86 = tpu.matmul %81, %85, %cst_47 {dimension_numbers = #tpu.dot_dimension_numbers<[1], [0], [0], [1], [0, 0, 1, 1], [], []>} : vector<256x128xbf16>, vector<128x128xbf16>, vector<256x128xf32> -> vector<256x128xf32>
    %87 = arith.addf %79, %86 : vector<256x128xf32>
    %c7_48 = arith.constant 7 : index
    %c0_49 = arith.constant 0 : index
    %c0_50 = arith.constant 0 : index
    %88 = vector.load %arg4[%c7_48, %c0_49, %c0_50] : memref<9x128x128xbf16, #tpu.memory_space<vmem>>, vector<1x128x128xbf16>
    %89 = vector.shape_cast %88 : vector<1x128x128xbf16> to vector<128x128xbf16>
    %cst_51 = arith.constant dense<0.000000e+00> : vector<256x128xf32>
    %90 = tpu.matmul %83, %89, %cst_51 {dimension_numbers = #tpu.dot_dimension_numbers<[1], [0], [0], [1], [0, 0, 1, 1], [], []>} : vector<256x128xbf16>, vector<128x128xbf16>, vector<256x128xf32> -> vector<256x128xf32>
    %91 = arith.addf %87, %90 : vector<256x128xf32>
    %92 = vector.extract_strided_slice %5 {offsets = [0, 2, 0], sizes = [18, 16, 128], strides = [1, 1, 1]} : vector<18x18x128xf32> to vector<18x16x128xf32>
    %93 = arith.truncf %92 : vector<18x16x128xf32> to vector<18x16x128xbf16>
    %94 = vector.extract_strided_slice %8 {offsets = [0, 2, 0], sizes = [18, 16, 128], strides = [1, 1, 1]} : vector<18x18x128xf32> to vector<18x16x128xf32>
    %95 = arith.truncf %94 : vector<18x16x128xf32> to vector<18x16x128xbf16>
    %96 = vector.extract_strided_slice %93 {offsets = [0, 0, 0], sizes = [16, 16, 128], strides = [1, 1, 1]} : vector<18x16x128xbf16> to vector<16x16x128xbf16>
    %97 = vector.shape_cast %96 : vector<16x16x128xbf16> to vector<256x128xbf16>
    %98 = vector.extract_strided_slice %95 {offsets = [0, 0, 0], sizes = [16, 16, 128], strides = [1, 1, 1]} : vector<18x16x128xbf16> to vector<16x16x128xbf16>
    %99 = vector.shape_cast %98 : vector<16x16x128xbf16> to vector<256x128xbf16>
    %c2 = arith.constant 2 : index
    %c0_52 = arith.constant 0 : index
    %c0_53 = arith.constant 0 : index
    %100 = vector.load %arg3[%c2, %c0_52, %c0_53] : memref<9x128x128xbf16, #tpu.memory_space<vmem>>, vector<1x128x128xbf16>
    %101 = vector.shape_cast %100 : vector<1x128x128xbf16> to vector<128x128xbf16>
    %cst_54 = arith.constant dense<0.000000e+00> : vector<256x128xf32>
    %102 = tpu.matmul %97, %101, %cst_54 {dimension_numbers = #tpu.dot_dimension_numbers<[1], [0], [0], [1], [0, 0, 1, 1], [], []>} : vector<256x128xbf16>, vector<128x128xbf16>, vector<256x128xf32> -> vector<256x128xf32>
    %103 = arith.addf %91, %102 : vector<256x128xf32>
    %c2_55 = arith.constant 2 : index
    %c0_56 = arith.constant 0 : index
    %c0_57 = arith.constant 0 : index
    %104 = vector.load %arg4[%c2_55, %c0_56, %c0_57] : memref<9x128x128xbf16, #tpu.memory_space<vmem>>, vector<1x128x128xbf16>
    %105 = vector.shape_cast %104 : vector<1x128x128xbf16> to vector<128x128xbf16>
    %cst_58 = arith.constant dense<0.000000e+00> : vector<256x128xf32>
    %106 = tpu.matmul %99, %105, %cst_58 {dimension_numbers = #tpu.dot_dimension_numbers<[1], [0], [0], [1], [0, 0, 1, 1], [], []>} : vector<256x128xbf16>, vector<128x128xbf16>, vector<256x128xf32> -> vector<256x128xf32>
    %107 = arith.addf %103, %106 : vector<256x128xf32>
    %108 = vector.extract_strided_slice %93 {offsets = [1, 0, 0], sizes = [16, 16, 128], strides = [1, 1, 1]} : vector<18x16x128xbf16> to vector<16x16x128xbf16>
    %109 = vector.shape_cast %108 : vector<16x16x128xbf16> to vector<256x128xbf16>
    %110 = vector.extract_strided_slice %95 {offsets = [1, 0, 0], sizes = [16, 16, 128], strides = [1, 1, 1]} : vector<18x16x128xbf16> to vector<16x16x128xbf16>
    %111 = vector.shape_cast %110 : vector<16x16x128xbf16> to vector<256x128xbf16>
    %c5 = arith.constant 5 : index
    %c0_59 = arith.constant 0 : index
    %c0_60 = arith.constant 0 : index
    %112 = vector.load %arg3[%c5, %c0_59, %c0_60] : memref<9x128x128xbf16, #tpu.memory_space<vmem>>, vector<1x128x128xbf16>
    %113 = vector.shape_cast %112 : vector<1x128x128xbf16> to vector<128x128xbf16>
    %cst_61 = arith.constant dense<0.000000e+00> : vector<256x128xf32>
    %114 = tpu.matmul %109, %113, %cst_61 {dimension_numbers = #tpu.dot_dimension_numbers<[1], [0], [0], [1], [0, 0, 1, 1], [], []>} : vector<256x128xbf16>, vector<128x128xbf16>, vector<256x128xf32> -> vector<256x128xf32>
    %115 = arith.addf %107, %114 : vector<256x128xf32>
    %c5_62 = arith.constant 5 : index
    %c0_63 = arith.constant 0 : index
    %c0_64 = arith.constant 0 : index
    %116 = vector.load %arg4[%c5_62, %c0_63, %c0_64] : memref<9x128x128xbf16, #tpu.memory_space<vmem>>, vector<1x128x128xbf16>
    %117 = vector.shape_cast %116 : vector<1x128x128xbf16> to vector<128x128xbf16>
    %cst_65 = arith.constant dense<0.000000e+00> : vector<256x128xf32>
    %118 = tpu.matmul %111, %117, %cst_65 {dimension_numbers = #tpu.dot_dimension_numbers<[1], [0], [0], [1], [0, 0, 1, 1], [], []>} : vector<256x128xbf16>, vector<128x128xbf16>, vector<256x128xf32> -> vector<256x128xf32>
    %119 = arith.addf %115, %118 : vector<256x128xf32>
    %120 = vector.extract_strided_slice %93 {offsets = [2, 0, 0], sizes = [16, 16, 128], strides = [1, 1, 1]} : vector<18x16x128xbf16> to vector<16x16x128xbf16>
    %121 = vector.shape_cast %120 : vector<16x16x128xbf16> to vector<256x128xbf16>
    %122 = vector.extract_strided_slice %95 {offsets = [2, 0, 0], sizes = [16, 16, 128], strides = [1, 1, 1]} : vector<18x16x128xbf16> to vector<16x16x128xbf16>
    %123 = vector.shape_cast %122 : vector<16x16x128xbf16> to vector<256x128xbf16>
    %c8 = arith.constant 8 : index
    %c0_66 = arith.constant 0 : index
    %c0_67 = arith.constant 0 : index
    %124 = vector.load %arg3[%c8, %c0_66, %c0_67] : memref<9x128x128xbf16, #tpu.memory_space<vmem>>, vector<1x128x128xbf16>
    %125 = vector.shape_cast %124 : vector<1x128x128xbf16> to vector<128x128xbf16>
    %cst_68 = arith.constant dense<0.000000e+00> : vector<256x128xf32>
    %126 = tpu.matmul %121, %125, %cst_68 {dimension_numbers = #tpu.dot_dimension_numbers<[1], [0], [0], [1], [0, 0, 1, 1], [], []>} : vector<256x128xbf16>, vector<128x128xbf16>, vector<256x128xf32> -> vector<256x128xf32>
    %127 = arith.addf %119, %126 : vector<256x128xf32>
    %c8_69 = arith.constant 8 : index
    %c0_70 = arith.constant 0 : index
    %c0_71 = arith.constant 0 : index
    %128 = vector.load %arg4[%c8_69, %c0_70, %c0_71] : memref<9x128x128xbf16, #tpu.memory_space<vmem>>, vector<1x128x128xbf16>
    %129 = vector.shape_cast %128 : vector<1x128x128xbf16> to vector<128x128xbf16>
    %cst_72 = arith.constant dense<0.000000e+00> : vector<256x128xf32>
    %130 = tpu.matmul %123, %129, %cst_72 {dimension_numbers = #tpu.dot_dimension_numbers<[1], [0], [0], [1], [0, 0, 1, 1], [], []>} : vector<256x128xbf16>, vector<128x128xbf16>, vector<256x128xf32> -> vector<256x128xf32>
    %131 = arith.addf %127, %130 : vector<256x128xf32>
    %132 = vector.shape_cast %131 : vector<256x128xf32> to vector<16x16x128xf32>
    %c0_73 = arith.constant 0 : index
    %c0_74 = arith.constant 0 : index
    %c0_75 = arith.constant 0 : index
    %c0_76 = arith.constant 0 : index
    %133 = vector.load %arg6[%c0_73, %c0_74, %c0_75, %c0_76] : memref<1x16x16x128xf32, #tpu.memory_space<vmem>>, vector<1x16x16x128xf32>
    %134 = vector.shape_cast %133 : vector<1x16x16x128xf32> to vector<16x16x128xf32>
    %135 = vector.shape_cast %132 : vector<16x16x128xf32> to vector<1x16x16x128xf32>
    tpu.vector_store %arg6[%c0_73, %c0_74, %c0_75, %c0_76], %135 {strides = array<i32>} : memref<1x16x16x128xf32, #tpu.memory_space<vmem>>, vector<1x16x16x128xf32>,
    %c0_77 = arith.constant 0 : index
    %c0_78 = arith.constant 0 : index
    %136 = vector.load %arg7[%c0_77, %c0_78] : memref<1x128xf32, #tpu.memory_space<vmem>>, vector<1x128xf32>
    %cst_79 = arith.constant dense<0.000000e+00> : vector<128xf32>
    %137 = vector.multi_reduction <add>, %131, %cst_79 [0] : vector<256x128xf32> to vector<128xf32>
    %138 = vector.shape_cast %137 : vector<128xf32> to vector<1x128xf32>
    %139 = arith.addf %136, %138 : vector<1x128xf32>
    %c0_80 = arith.constant 0 : index
    %c0_81 = arith.constant 0 : index
    %140 = vector.load %arg7[%c0_80, %c0_81] : memref<1x128xf32, #tpu.memory_space<vmem>>, vector<1x128xf32>
    tpu.vector_store %arg7[%c0_80, %c0_81], %139 {strides = array<i32>} : memref<1x128xf32, #tpu.memory_space<vmem>>, vector<1x128xf32>,
    %c0_82 = arith.constant 0 : index
    %c0_83 = arith.constant 0 : index
    %141 = vector.load %arg8[%c0_82, %c0_83] : memref<1x128xf32, #tpu.memory_space<vmem>>, vector<1x128xf32>
    %142 = arith.mulf %131, %131 : vector<256x128xf32>
    %cst_84 = arith.constant dense<0.000000e+00> : vector<128xf32>
    %143 = vector.multi_reduction <add>, %142, %cst_84 [0] : vector<256x128xf32> to vector<128xf32>
    %144 = vector.shape_cast %143 : vector<128xf32> to vector<1x128xf32>
    %145 = arith.addf %141, %144 : vector<1x128xf32>
    %c0_85 = arith.constant 0 : index
    %c0_86 = arith.constant 0 : index
    %146 = vector.load %arg8[%c0_85, %c0_86] : memref<1x128xf32, #tpu.memory_space<vmem>>, vector<1x128xf32>
    tpu.vector_store %arg8[%c0_85, %c0_86], %145 {strides = array<i32>} : memref<1x128xf32, #tpu.memory_space<vmem>>, vector<1x128xf32>,
    return
  }
  func.func @transform_0(%arg0: i32) -> (i32, i32, i32, i32) {
    %c0_i32 = arith.constant 0 : i32
    %c0_i32_0 = arith.constant 0 : i32
    %c0_i32_1 = arith.constant 0 : i32
    %c0_i32_2 = arith.constant 0 : i32
    return %arg0, %c0_i32, %c0_i32_0, %c0_i32_1 : i32, i32, i32, i32
  }
  func.func @transform_1(%arg0: i32) -> (i32, i32, i32, i32) {
    %c0_i32 = arith.constant 0 : i32
    %c0_i32_0 = arith.constant 0 : i32
    %c0_i32_1 = arith.constant 0 : i32
    %c0_i32_2 = arith.constant 0 : i32
    return %arg0, %c0_i32, %c0_i32_0, %c0_i32_1 : i32, i32, i32, i32
  }
  func.func @transform_2(%arg0: i32) -> (i32, i32, i32) {
    %c0_i32 = arith.constant 0 : i32
    %c0_i32_0 = arith.constant 0 : i32
    %c0_i32_1 = arith.constant 0 : i32
    %c0_i32_2 = arith.constant 0 : i32
    return %c0_i32, %c0_i32_0, %c0_i32_1 : i32, i32, i32
  }
  func.func @transform_3(%arg0: i32) -> (i32, i32, i32) {
    %c0_i32 = arith.constant 0 : i32
    %c0_i32_0 = arith.constant 0 : i32
    %c0_i32_1 = arith.constant 0 : i32
    %c0_i32_2 = arith.constant 0 : i32
    return %c0_i32, %c0_i32_0, %c0_i32_1 : i32, i32, i32
  }
  func.func @transform_4(%arg0: i32) -> (i32, i32) {
    %c0_i32 = arith.constant 0 : i32
    %c0_i32_0 = arith.constant 0 : i32
    %c0_i32_1 = arith.constant 0 : i32
    return %c0_i32, %c0_i32_0 : i32, i32
  }
  func.func @transform_5(%arg0: i32) -> (i32, i32, i32, i32) {
    %c0_i32 = arith.constant 0 : i32
    %c0_i32_0 = arith.constant 0 : i32
    %c0_i32_1 = arith.constant 0 : i32
    %c0_i32_2 = arith.constant 0 : i32
    return %arg0, %c0_i32, %c0_i32_0, %c0_i32_1 : i32, i32, i32, i32
  }
  func.func @transform_6(%arg0: i32) -> (i32, i32) {
    %c0_i32 = arith.constant 0 : i32
    %c0_i32_0 = arith.constant 0 : i32
    %c0_i32_1 = arith.constant 0 : i32
    return %c0_i32, %c0_i32_0 : i32, i32
  }
  func.func @transform_7(%arg0: i32) -> (i32, i32) {
    %c0_i32 = arith.constant 0 : i32
    %c0_i32_0 = arith.constant 0 : i32
    %c0_i32_1 = arith.constant 0 : i32
    return %c0_i32, %c0_i32_0 : i32, i32
  }
}

module attributes {stable_mosaic.version = 11 : i64} {
  func.func @_conv3x3_bnrelu_in_fused_kernel(%arg0: i32, %arg1: memref<1x18x18x128xf32, #tpu.memory_space<vmem>>, %arg2: memref<1x128xf32, #tpu.memory_space<vmem>>, %arg3: memref<1x128xf32, #tpu.memory_space<vmem>>, %arg4: memref<9x128x128xbf16, #tpu.memory_space<vmem>>, %arg5: memref<1x128xf32, #tpu.memory_space<vmem>>, %arg6: memref<1x16x16x128xf32, #tpu.memory_space<vmem>>, %arg7: memref<1x128xf32, #tpu.memory_space<vmem>>, %arg8: memref<1x128xf32, #tpu.memory_space<vmem>>) attributes {dimension_semantics = [#tpu.dimension_semantics<arbitrary>], iteration_bounds = array<i64: 2>, scalar_prefetch = 0 : i64, scratch_operands = 0 : i64, tpu.core_type = #tpu.core_type<tc>, window_params = [{transform_indices = @transform_0, window_bounds = array<i64: 1, 18, 18, 128>}, {pipeline_mode = #tpu.pipeline_mode<synchronous>, transform_indices = @transform_1, window_bounds = array<i64: 1, 128>}, {pipeline_mode = #tpu.pipeline_mode<synchronous>, transform_indices = @transform_2, window_bounds = array<i64: 1, 128>}, {pipeline_mode = #tpu.pipeline_mode<synchronous>, transform_indices = @transform_3, window_bounds = array<i64: 9, 128, 128>}, {pipeline_mode = #tpu.pipeline_mode<synchronous>, transform_indices = @transform_4, window_bounds = array<i64: 1, 128>}, {transform_indices = @transform_5, window_bounds = array<i64: 1, 16, 16, 128>}, {pipeline_mode = #tpu.pipeline_mode<synchronous>, transform_indices = @transform_6, window_bounds = array<i64: 1, 128>}, {pipeline_mode = #tpu.pipeline_mode<synchronous>, transform_indices = @transform_7, window_bounds = array<i64: 1, 128>}]} {
    %c0_i32 = arith.constant 0 : i32
    %0 = arith.cmpi eq, %arg0, %c0_i32 : i32
    %1 = arith.extui %0 : i1 to i32
    %c0_i32_0 = arith.constant 0 : i32
    %2 = arith.cmpi ne, %1, %c0_i32_0 : i32
    scf.if %2 {
      %cst_56 = arith.constant 0.000000e+00 : f32
      %108 = vector.broadcast %cst_56 : f32 to vector<1x128xf32>
      %c0_57 = arith.constant 0 : index
      %c0_58 = arith.constant 0 : index
      %109 = vector.load %arg7[%c0_57, %c0_58] : memref<1x128xf32, #tpu.memory_space<vmem>>, vector<1x128xf32>
      tpu.vector_store %arg7[%c0_57, %c0_58], %108 {strides = array<i32>} : memref<1x128xf32, #tpu.memory_space<vmem>>, vector<1x128xf32>,
      %cst_59 = arith.constant 0.000000e+00 : f32
      %110 = vector.broadcast %cst_59 : f32 to vector<1x128xf32>
      %c0_60 = arith.constant 0 : index
      %c0_61 = arith.constant 0 : index
      %111 = vector.load %arg8[%c0_60, %c0_61] : memref<1x128xf32, #tpu.memory_space<vmem>>, vector<1x128xf32>
      tpu.vector_store %arg8[%c0_60, %c0_61], %110 {strides = array<i32>} : memref<1x128xf32, #tpu.memory_space<vmem>>, vector<1x128xf32>,
    } else {
    }
    %c0 = arith.constant 0 : index
    %c0_1 = arith.constant 0 : index
    %c0_2 = arith.constant 0 : index
    %c0_3 = arith.constant 0 : index
    %3 = vector.load %arg1[%c0, %c0_1, %c0_2, %c0_3] : memref<1x18x18x128xf32, #tpu.memory_space<vmem>>, vector<1x18x18x128xf32>
    %4 = vector.shape_cast %3 : vector<1x18x18x128xf32> to vector<18x18x128xf32>
    %c0_4 = arith.constant 0 : index
    %c0_5 = arith.constant 0 : index
    %5 = vector.load %arg2[%c0_4, %c0_5] : memref<1x128xf32, #tpu.memory_space<vmem>>, vector<1x128xf32>
    %6 = vector.shape_cast %5 : vector<1x128xf32> to vector<1x1x128xf32>
    %7 = vector.broadcast %6 : vector<1x1x128xf32> to vector<18x18x128xf32>
    %8 = arith.mulf %4, %7 : vector<18x18x128xf32>
    %c0_6 = arith.constant 0 : index
    %c0_7 = arith.constant 0 : index
    %9 = vector.load %arg3[%c0_6, %c0_7] : memref<1x128xf32, #tpu.memory_space<vmem>>, vector<1x128xf32>
    %10 = vector.shape_cast %9 : vector<1x128xf32> to vector<1x1x128xf32>
    %11 = vector.broadcast %10 : vector<1x1x128xf32> to vector<18x18x128xf32>
    %12 = arith.addf %8, %11 : vector<18x18x128xf32>
    %cst = arith.constant 0.000000e+00 : f32
    %13 = vector.broadcast %cst : f32 to vector<18x18x128xf32>
    %14 = arith.maximumf %12, %13 : vector<18x18x128xf32>
    %15 = tpu.iota {dimensions = array<i32: 0>} : vector<18x18x128xi32>
    %16 = tpu.iota {dimensions = array<i32: 1>} : vector<18x18x128xi32>
    %c0_i32_8 = arith.constant 0 : i32
    %17 = vector.broadcast %c0_i32_8 : i32 to vector<18x18x128xi32>
    %18 = arith.cmpi sgt, %15, %17 : vector<18x18x128xi32>
    %c17_i32 = arith.constant 17 : i32
    %19 = vector.broadcast %c17_i32 : i32 to vector<18x18x128xi32>
    %20 = arith.cmpi slt, %15, %19 : vector<18x18x128xi32>
    %21 = arith.andi %18, %20 : vector<18x18x128xi1>
    %c0_i32_9 = arith.constant 0 : i32
    %22 = vector.broadcast %c0_i32_9 : i32 to vector<18x18x128xi32>
    %23 = arith.cmpi sgt, %16, %22 : vector<18x18x128xi32>
    %24 = arith.andi %21, %23 : vector<18x18x128xi1>
    %c17_i32_10 = arith.constant 17 : i32
    %25 = vector.broadcast %c17_i32_10 : i32 to vector<18x18x128xi32>
    %26 = arith.cmpi slt, %16, %25 : vector<18x18x128xi32>
    %27 = arith.andi %24, %26 : vector<18x18x128xi1>
    %cst_11 = arith.constant 0.000000e+00 : f32
    %28 = vector.broadcast %cst_11 : f32 to vector<18x18x128xf32>
    %29 = arith.select %27, %14, %28 : vector<18x18x128xi1>, vector<18x18x128xf32>
    %c0_12 = arith.constant 0 : index
    %c0_13 = arith.constant 0 : index
    %30 = vector.load %arg5[%c0_12, %c0_13] : memref<1x128xf32, #tpu.memory_space<vmem>>, vector<1x128xf32>
    %31 = vector.shape_cast %30 : vector<1x128xf32> to vector<1x128xf32>
    %32 = vector.broadcast %31 : vector<1x128xf32> to vector<256x128xf32>
    %33 = vector.extract_strided_slice %29 {offsets = [0, 0, 0], sizes = [18, 16, 128], strides = [1, 1, 1]} : vector<18x18x128xf32> to vector<18x16x128xf32>
    %34 = arith.truncf %33 : vector<18x16x128xf32> to vector<18x16x128xbf16>
    %35 = vector.extract_strided_slice %34 {offsets = [0, 0, 0], sizes = [16, 16, 128], strides = [1, 1, 1]} : vector<18x16x128xbf16> to vector<16x16x128xbf16>
    %36 = vector.shape_cast %35 : vector<16x16x128xbf16> to vector<256x128xbf16>
    %c0_14 = arith.constant 0 : index
    %c0_15 = arith.constant 0 : index
    %c0_16 = arith.constant 0 : index
    %37 = vector.load %arg4[%c0_14, %c0_15, %c0_16] : memref<9x128x128xbf16, #tpu.memory_space<vmem>>, vector<1x128x128xbf16>
    %38 = vector.shape_cast %37 : vector<1x128x128xbf16> to vector<128x128xbf16>
    %cst_17 = arith.constant dense<0.000000e+00> : vector<256x128xf32>
    %39 = tpu.matmul %36, %38, %cst_17 {dimension_numbers = #tpu.dot_dimension_numbers<[1], [0], [0], [1], [0, 0, 1, 1], [], []>} : vector<256x128xbf16>, vector<128x128xbf16>, vector<256x128xf32> -> vector<256x128xf32>
    %40 = arith.addf %32, %39 : vector<256x128xf32>
    %41 = vector.extract_strided_slice %34 {offsets = [1, 0, 0], sizes = [16, 16, 128], strides = [1, 1, 1]} : vector<18x16x128xbf16> to vector<16x16x128xbf16>
    %42 = vector.shape_cast %41 : vector<16x16x128xbf16> to vector<256x128xbf16>
    %c3 = arith.constant 3 : index
    %c0_18 = arith.constant 0 : index
    %c0_19 = arith.constant 0 : index
    %43 = vector.load %arg4[%c3, %c0_18, %c0_19] : memref<9x128x128xbf16, #tpu.memory_space<vmem>>, vector<1x128x128xbf16>
    %44 = vector.shape_cast %43 : vector<1x128x128xbf16> to vector<128x128xbf16>
    %cst_20 = arith.constant dense<0.000000e+00> : vector<256x128xf32>
    %45 = tpu.matmul %42, %44, %cst_20 {dimension_numbers = #tpu.dot_dimension_numbers<[1], [0], [0], [1], [0, 0, 1, 1], [], []>} : vector<256x128xbf16>, vector<128x128xbf16>, vector<256x128xf32> -> vector<256x128xf32>
    %46 = arith.addf %40, %45 : vector<256x128xf32>
    %47 = vector.extract_strided_slice %34 {offsets = [2, 0, 0], sizes = [16, 16, 128], strides = [1, 1, 1]} : vector<18x16x128xbf16> to vector<16x16x128xbf16>
    %48 = vector.shape_cast %47 : vector<16x16x128xbf16> to vector<256x128xbf16>
    %c6 = arith.constant 6 : index
    %c0_21 = arith.constant 0 : index
    %c0_22 = arith.constant 0 : index
    %49 = vector.load %arg4[%c6, %c0_21, %c0_22] : memref<9x128x128xbf16, #tpu.memory_space<vmem>>, vector<1x128x128xbf16>
    %50 = vector.shape_cast %49 : vector<1x128x128xbf16> to vector<128x128xbf16>
    %cst_23 = arith.constant dense<0.000000e+00> : vector<256x128xf32>
    %51 = tpu.matmul %48, %50, %cst_23 {dimension_numbers = #tpu.dot_dimension_numbers<[1], [0], [0], [1], [0, 0, 1, 1], [], []>} : vector<256x128xbf16>, vector<128x128xbf16>, vector<256x128xf32> -> vector<256x128xf32>
    %52 = arith.addf %46, %51 : vector<256x128xf32>
    %53 = vector.extract_strided_slice %29 {offsets = [0, 1, 0], sizes = [18, 16, 128], strides = [1, 1, 1]} : vector<18x18x128xf32> to vector<18x16x128xf32>
    %54 = arith.truncf %53 : vector<18x16x128xf32> to vector<18x16x128xbf16>
    %55 = vector.extract_strided_slice %54 {offsets = [0, 0, 0], sizes = [16, 16, 128], strides = [1, 1, 1]} : vector<18x16x128xbf16> to vector<16x16x128xbf16>
    %56 = vector.shape_cast %55 : vector<16x16x128xbf16> to vector<256x128xbf16>
    %c1 = arith.constant 1 : index
    %c0_24 = arith.constant 0 : index
    %c0_25 = arith.constant 0 : index
    %57 = vector.load %arg4[%c1, %c0_24, %c0_25] : memref<9x128x128xbf16, #tpu.memory_space<vmem>>, vector<1x128x128xbf16>
    %58 = vector.shape_cast %57 : vector<1x128x128xbf16> to vector<128x128xbf16>
    %cst_26 = arith.constant dense<0.000000e+00> : vector<256x128xf32>
    %59 = tpu.matmul %56, %58, %cst_26 {dimension_numbers = #tpu.dot_dimension_numbers<[1], [0], [0], [1], [0, 0, 1, 1], [], []>} : vector<256x128xbf16>, vector<128x128xbf16>, vector<256x128xf32> -> vector<256x128xf32>
    %60 = arith.addf %52, %59 : vector<256x128xf32>
    %61 = vector.extract_strided_slice %54 {offsets = [1, 0, 0], sizes = [16, 16, 128], strides = [1, 1, 1]} : vector<18x16x128xbf16> to vector<16x16x128xbf16>
    %62 = vector.shape_cast %61 : vector<16x16x128xbf16> to vector<256x128xbf16>
    %c4 = arith.constant 4 : index
    %c0_27 = arith.constant 0 : index
    %c0_28 = arith.constant 0 : index
    %63 = vector.load %arg4[%c4, %c0_27, %c0_28] : memref<9x128x128xbf16, #tpu.memory_space<vmem>>, vector<1x128x128xbf16>
    %64 = vector.shape_cast %63 : vector<1x128x128xbf16> to vector<128x128xbf16>
    %cst_29 = arith.constant dense<0.000000e+00> : vector<256x128xf32>
    %65 = tpu.matmul %62, %64, %cst_29 {dimension_numbers = #tpu.dot_dimension_numbers<[1], [0], [0], [1], [0, 0, 1, 1], [], []>} : vector<256x128xbf16>, vector<128x128xbf16>, vector<256x128xf32> -> vector<256x128xf32>
    %66 = arith.addf %60, %65 : vector<256x128xf32>
    %67 = vector.extract_strided_slice %54 {offsets = [2, 0, 0], sizes = [16, 16, 128], strides = [1, 1, 1]} : vector<18x16x128xbf16> to vector<16x16x128xbf16>
    %68 = vector.shape_cast %67 : vector<16x16x128xbf16> to vector<256x128xbf16>
    %c7 = arith.constant 7 : index
    %c0_30 = arith.constant 0 : index
    %c0_31 = arith.constant 0 : index
    %69 = vector.load %arg4[%c7, %c0_30, %c0_31] : memref<9x128x128xbf16, #tpu.memory_space<vmem>>, vector<1x128x128xbf16>
    %70 = vector.shape_cast %69 : vector<1x128x128xbf16> to vector<128x128xbf16>
    %cst_32 = arith.constant dense<0.000000e+00> : vector<256x128xf32>
    %71 = tpu.matmul %68, %70, %cst_32 {dimension_numbers = #tpu.dot_dimension_numbers<[1], [0], [0], [1], [0, 0, 1, 1], [], []>} : vector<256x128xbf16>, vector<128x128xbf16>, vector<256x128xf32> -> vector<256x128xf32>
    %72 = arith.addf %66, %71 : vector<256x128xf32>
    %73 = vector.extract_strided_slice %29 {offsets = [0, 2, 0], sizes = [18, 16, 128], strides = [1, 1, 1]} : vector<18x18x128xf32> to vector<18x16x128xf32>
    %74 = arith.truncf %73 : vector<18x16x128xf32> to vector<18x16x128xbf16>
    %75 = vector.extract_strided_slice %74 {offsets = [0, 0, 0], sizes = [16, 16, 128], strides = [1, 1, 1]} : vector<18x16x128xbf16> to vector<16x16x128xbf16>
    %76 = vector.shape_cast %75 : vector<16x16x128xbf16> to vector<256x128xbf16>
    %c2 = arith.constant 2 : index
    %c0_33 = arith.constant 0 : index
    %c0_34 = arith.constant 0 : index
    %77 = vector.load %arg4[%c2, %c0_33, %c0_34] : memref<9x128x128xbf16, #tpu.memory_space<vmem>>, vector<1x128x128xbf16>
    %78 = vector.shape_cast %77 : vector<1x128x128xbf16> to vector<128x128xbf16>
    %cst_35 = arith.constant dense<0.000000e+00> : vector<256x128xf32>
    %79 = tpu.matmul %76, %78, %cst_35 {dimension_numbers = #tpu.dot_dimension_numbers<[1], [0], [0], [1], [0, 0, 1, 1], [], []>} : vector<256x128xbf16>, vector<128x128xbf16>, vector<256x128xf32> -> vector<256x128xf32>
    %80 = arith.addf %72, %79 : vector<256x128xf32>
    %81 = vector.extract_strided_slice %74 {offsets = [1, 0, 0], sizes = [16, 16, 128], strides = [1, 1, 1]} : vector<18x16x128xbf16> to vector<16x16x128xbf16>
    %82 = vector.shape_cast %81 : vector<16x16x128xbf16> to vector<256x128xbf16>
    %c5 = arith.constant 5 : index
    %c0_36 = arith.constant 0 : index
    %c0_37 = arith.constant 0 : index
    %83 = vector.load %arg4[%c5, %c0_36, %c0_37] : memref<9x128x128xbf16, #tpu.memory_space<vmem>>, vector<1x128x128xbf16>
    %84 = vector.shape_cast %83 : vector<1x128x128xbf16> to vector<128x128xbf16>
    %cst_38 = arith.constant dense<0.000000e+00> : vector<256x128xf32>
    %85 = tpu.matmul %82, %84, %cst_38 {dimension_numbers = #tpu.dot_dimension_numbers<[1], [0], [0], [1], [0, 0, 1, 1], [], []>} : vector<256x128xbf16>, vector<128x128xbf16>, vector<256x128xf32> -> vector<256x128xf32>
    %86 = arith.addf %80, %85 : vector<256x128xf32>
    %87 = vector.extract_strided_slice %74 {offsets = [2, 0, 0], sizes = [16, 16, 128], strides = [1, 1, 1]} : vector<18x16x128xbf16> to vector<16x16x128xbf16>
    %88 = vector.shape_cast %87 : vector<16x16x128xbf16> to vector<256x128xbf16>
    %c8 = arith.constant 8 : index
    %c0_39 = arith.constant 0 : index
    %c0_40 = arith.constant 0 : index
    %89 = vector.load %arg4[%c8, %c0_39, %c0_40] : memref<9x128x128xbf16, #tpu.memory_space<vmem>>, vector<1x128x128xbf16>
    %90 = vector.shape_cast %89 : vector<1x128x128xbf16> to vector<128x128xbf16>
    %cst_41 = arith.constant dense<0.000000e+00> : vector<256x128xf32>
    %91 = tpu.matmul %88, %90, %cst_41 {dimension_numbers = #tpu.dot_dimension_numbers<[1], [0], [0], [1], [0, 0, 1, 1], [], []>} : vector<256x128xbf16>, vector<128x128xbf16>, vector<256x128xf32> -> vector<256x128xf32>
    %92 = arith.addf %86, %91 : vector<256x128xf32>
    %93 = vector.shape_cast %92 : vector<256x128xf32> to vector<16x16x128xf32>
    %c0_42 = arith.constant 0 : index
    %c0_43 = arith.constant 0 : index
    %c0_44 = arith.constant 0 : index
    %c0_45 = arith.constant 0 : index
    %94 = vector.load %arg6[%c0_42, %c0_43, %c0_44, %c0_45] : memref<1x16x16x128xf32, #tpu.memory_space<vmem>>, vector<1x16x16x128xf32>
    %95 = vector.shape_cast %94 : vector<1x16x16x128xf32> to vector<16x16x128xf32>
    %96 = vector.shape_cast %93 : vector<16x16x128xf32> to vector<1x16x16x128xf32>
    tpu.vector_store %arg6[%c0_42, %c0_43, %c0_44, %c0_45], %96 {strides = array<i32>} : memref<1x16x16x128xf32, #tpu.memory_space<vmem>>, vector<1x16x16x128xf32>,
    %c0_46 = arith.constant 0 : index
    %c0_47 = arith.constant 0 : index
    %97 = vector.load %arg7[%c0_46, %c0_47] : memref<1x128xf32, #tpu.memory_space<vmem>>, vector<1x128xf32>
    %cst_48 = arith.constant dense<0.000000e+00> : vector<128xf32>
    %98 = vector.multi_reduction <add>, %92, %cst_48 [0] : vector<256x128xf32> to vector<128xf32>
    %99 = vector.shape_cast %98 : vector<128xf32> to vector<1x128xf32>
    %100 = arith.addf %97, %99 : vector<1x128xf32>
    %c0_49 = arith.constant 0 : index
    %c0_50 = arith.constant 0 : index
    %101 = vector.load %arg7[%c0_49, %c0_50] : memref<1x128xf32, #tpu.memory_space<vmem>>, vector<1x128xf32>
    tpu.vector_store %arg7[%c0_49, %c0_50], %100 {strides = array<i32>} : memref<1x128xf32, #tpu.memory_space<vmem>>, vector<1x128xf32>,
    %c0_51 = arith.constant 0 : index
    %c0_52 = arith.constant 0 : index
    %102 = vector.load %arg8[%c0_51, %c0_52] : memref<1x128xf32, #tpu.memory_space<vmem>>, vector<1x128xf32>
    %103 = arith.mulf %92, %92 : vector<256x128xf32>
    %cst_53 = arith.constant dense<0.000000e+00> : vector<128xf32>
    %104 = vector.multi_reduction <add>, %103, %cst_53 [0] : vector<256x128xf32> to vector<128xf32>
    %105 = vector.shape_cast %104 : vector<128xf32> to vector<1x128xf32>
    %106 = arith.addf %102, %105 : vector<1x128xf32>
    %c0_54 = arith.constant 0 : index
    %c0_55 = arith.constant 0 : index
    %107 = vector.load %arg8[%c0_54, %c0_55] : memref<1x128xf32, #tpu.memory_space<vmem>>, vector<1x128xf32>
    tpu.vector_store %arg8[%c0_54, %c0_55], %106 {strides = array<i32>} : memref<1x128xf32, #tpu.memory_space<vmem>>, vector<1x128xf32>,
    return
  }
  func.func @transform_0(%arg0: i32) -> (i32, i32, i32, i32) {
    %c0_i32 = arith.constant 0 : i32
    %c0_i32_0 = arith.constant 0 : i32
    %c0_i32_1 = arith.constant 0 : i32
    %c0_i32_2 = arith.constant 0 : i32
    return %arg0, %c0_i32, %c0_i32_0, %c0_i32_1 : i32, i32, i32, i32
  }
  func.func @transform_1(%arg0: i32) -> (i32, i32) {
    %c0_i32 = arith.constant 0 : i32
    %c0_i32_0 = arith.constant 0 : i32
    %c0_i32_1 = arith.constant 0 : i32
    return %c0_i32, %c0_i32_0 : i32, i32
  }
  func.func @transform_2(%arg0: i32) -> (i32, i32) {
    %c0_i32 = arith.constant 0 : i32
    %c0_i32_0 = arith.constant 0 : i32
    %c0_i32_1 = arith.constant 0 : i32
    return %c0_i32, %c0_i32_0 : i32, i32
  }
  func.func @transform_3(%arg0: i32) -> (i32, i32, i32) {
    %c0_i32 = arith.constant 0 : i32
    %c0_i32_0 = arith.constant 0 : i32
    %c0_i32_1 = arith.constant 0 : i32
    %c0_i32_2 = arith.constant 0 : i32
    return %c0_i32, %c0_i32_0, %c0_i32_1 : i32, i32, i32
  }
  func.func @transform_4(%arg0: i32) -> (i32, i32) {
    %c0_i32 = arith.constant 0 : i32
    %c0_i32_0 = arith.constant 0 : i32
    %c0_i32_1 = arith.constant 0 : i32
    return %c0_i32, %c0_i32_0 : i32, i32
  }
  func.func @transform_5(%arg0: i32) -> (i32, i32, i32, i32) {
    %c0_i32 = arith.constant 0 : i32
    %c0_i32_0 = arith.constant 0 : i32
    %c0_i32_1 = arith.constant 0 : i32
    %c0_i32_2 = arith.constant 0 : i32
    return %arg0, %c0_i32, %c0_i32_0, %c0_i32_1 : i32, i32, i32, i32
  }
  func.func @transform_6(%arg0: i32) -> (i32, i32) {
    %c0_i32 = arith.constant 0 : i32
    %c0_i32_0 = arith.constant 0 : i32
    %c0_i32_1 = arith.constant 0 : i32
    return %c0_i32, %c0_i32_0 : i32, i32
  }
  func.func @transform_7(%arg0: i32) -> (i32, i32) {
    %c0_i32 = arith.constant 0 : i32
    %c0_i32_0 = arith.constant 0 : i32
    %c0_i32_1 = arith.constant 0 : i32
    return %c0_i32, %c0_i32_0 : i32, i32
  }
}

module attributes {stable_mosaic.version = 11 : i64} {
  func.func @_bn_relu_kernel(%arg0: i32, %arg1: memref<512x128xf32, #tpu.memory_space<vmem>>, %arg2: memref<1x128xf32, #tpu.memory_space<vmem>>, %arg3: memref<1x128xf32, #tpu.memory_space<vmem>>, %arg4: memref<512x128xf32, #tpu.memory_space<vmem>>) attributes {dimension_semantics = [#tpu.dimension_semantics<parallel>], iteration_bounds = array<i64: 1>, scalar_prefetch = 0 : i64, scratch_operands = 0 : i64, tpu.core_type = #tpu.core_type<tc>, window_params = [{transform_indices = @transform_0, window_bounds = array<i64: 512, 128>}, {pipeline_mode = #tpu.pipeline_mode<synchronous>, transform_indices = @transform_1, window_bounds = array<i64: 1, 128>}, {pipeline_mode = #tpu.pipeline_mode<synchronous>, transform_indices = @transform_2, window_bounds = array<i64: 1, 128>}, {transform_indices = @transform_3, window_bounds = array<i64: 512, 128>}]} {
    %c0 = arith.constant 0 : index
    %c0_0 = arith.constant 0 : index
    %0 = vector.load %arg1[%c0, %c0_0] : memref<512x128xf32, #tpu.memory_space<vmem>>, vector<512x128xf32>
    %c0_1 = arith.constant 0 : index
    %c0_2 = arith.constant 0 : index
    %1 = vector.load %arg2[%c0_1, %c0_2] : memref<1x128xf32, #tpu.memory_space<vmem>>, vector<1x128xf32>
    %2 = vector.broadcast %1 : vector<1x128xf32> to vector<512x128xf32>
    %3 = arith.mulf %0, %2 : vector<512x128xf32>
    %c0_3 = arith.constant 0 : index
    %c0_4 = arith.constant 0 : index
    %4 = vector.load %arg3[%c0_3, %c0_4] : memref<1x128xf32, #tpu.memory_space<vmem>>, vector<1x128xf32>
    %5 = vector.broadcast %4 : vector<1x128xf32> to vector<512x128xf32>
    %6 = arith.addf %3, %5 : vector<512x128xf32>
    %cst = arith.constant 0.000000e+00 : f32
    %7 = vector.broadcast %cst : f32 to vector<512x128xf32>
    %8 = arith.maximumf %6, %7 : vector<512x128xf32>
    %c0_5 = arith.constant 0 : index
    %c0_6 = arith.constant 0 : index
    %9 = vector.load %arg4[%c0_5, %c0_6] : memref<512x128xf32, #tpu.memory_space<vmem>>, vector<512x128xf32>
    tpu.vector_store %arg4[%c0_5, %c0_6], %8 {strides = array<i32>} : memref<512x128xf32, #tpu.memory_space<vmem>>, vector<512x128xf32>,
    return
  }
  func.func @transform_0(%arg0: i32) -> (i32, i32) {
    %c0_i32 = arith.constant 0 : i32
    %c0_i32_0 = arith.constant 0 : i32
    return %arg0, %c0_i32 : i32, i32
  }
  func.func @transform_1(%arg0: i32) -> (i32, i32) {
    %c0_i32 = arith.constant 0 : i32
    %c0_i32_0 = arith.constant 0 : i32
    %c0_i32_1 = arith.constant 0 : i32
    return %c0_i32, %c0_i32_0 : i32, i32
  }
  func.func @transform_2(%arg0: i32) -> (i32, i32) {
    %c0_i32 = arith.constant 0 : i32
    %c0_i32_0 = arith.constant 0 : i32
    %c0_i32_1 = arith.constant 0 : i32
    return %c0_i32, %c0_i32_0 : i32, i32
  }
  func.func @transform_3(%arg0: i32) -> (i32, i32) {
    %c0_i32 = arith.constant 0 : i32
    %c0_i32_0 = arith.constant 0 : i32
    return %arg0, %c0_i32 : i32, i32
  }
}

</mosaic_0001>

<bundles_post_ra>
// kernel: up_block_forward.4
= control target key start
LH: loop header
LB: loop body
LE: loop exit
PB: predicated region body
PF: predicated region fallthrough
CT: control target
= control target key end

     0   :  { %s902_s12 = smov 0   ;;  %s1098_s0 = inlined_call_operand.vmem [shape: bf16[2,64,128], index: 0, kind: input, shape index: {}]   ;;  %s1099_s1 = inlined_call_operand.vmem [shape: bf16[128,512], index: 1, kind: input, shape index: {}]   ;;  %s1100_s2 = inlined_call_operand.vmem [shape: f32[1,512], index: 2, kind: input, shape index: {}]   ;;  %s1101_s3 = inlined_call_operand.vmem [shape: bf16[2,64,512], index: 3, kind: output, shape index: {}]  }
   0x1 LB: > { %s731_s13 = sadd.s32 4294967295, %s879_s12   ;;  %p735_p0 = scmp.ge.s32.totalorder %s879_s12, 1  ;;  %s879_s12 = sphi %s902_s12, %s13_s12  }
   0x2   : > { %p137_p1 = scmp.lt.s32.totalorder %s879_s12, 3 }
   0x4   : > { %p138_p2 = pnand %p735_p0, %p137_p1 }
   0x5   : > { %v821_v0 = vld [vmem:[%s1099_s1 + $0x4] ss:$16 sps:$4 sm:$0xff] (!%p138_p2)   ;;  %v823_v1 = vld [vmem:[%s1099_s1 + $0xc] ss:$16 sps:$4 sm:$0xff] (!%p138_p2)   ;;  %v881_v2 = vmov (!%p138_p2), 0   ;;  %p161_p3 = scmp.lt.s32.totalorder (!%p138_p2), %s731_s13, 1  ;;  %v214_v37 = vlaneseq (!%p138_p2) }
   0x6   : > { %141 = sbr.rel (%p138_p2) target bundleno = 283 (0x11b), region = 32  ;;  %450 = vmatprep.mubr.bf16.mxu0 (!%p138_p2), %v881_v2  ;;  %523 = vmatprep.mubr.bf16.mxu1 (!%p138_p2), %v881_v2  ;;  %v825_v3 = vld [vmem:[%s1099_s1] ss:$16 sps:$4 sm:$0xff] (!%p138_p2)   ;;  %v826_v4 = vld [vmem:[%s1099_s1 + $0x8] ss:$16 sps:$4 sm:$0xff] (!%p138_p2)  }
   0x7   : > { %418 = vmatprep.subr.bf16.mxu0 (!%p138_p2), %v821_v0  ;;  %491 = vmatprep.subr.bf16.mxu1 (!%p138_p2), %v823_v1  ;;  %v827_v5 = vld [vmem:[%s1099_s1 + $0x24] ss:$16 sps:$4 sm:$0xff] (!%p138_p2)   ;;  %v829_v6 = vld [vmem:[%s1099_s1 + $0x2c] ss:$16 sps:$4 sm:$0xff] (!%p138_p2)   ;;  %v831_v7 = vld [vmem:[%s1099_s1 + $0x20] ss:$16 sps:$4 sm:$0xff] (!%p138_p2)  }
   0x8   : > { %419 = vmatpush1.bf16.msra.mxu0 (!%p138_p2), %v825_v3  ;;  %492 = vmatpush1.bf16.msra.mxu1 (!%p138_p2), %v826_v4  ;;  %v832_v8 = vld [vmem:[%s1099_s1 + $0x28] ss:$16 sps:$4 sm:$0xff] (!%p138_p2)   ;;  %v833_v9 = vld [vmem:[%s1099_s1 + $0x44] ss:$16 sps:$4 sm:$0xff] (!%p138_p2)   ;;  %v835_v10 = vld [vmem:[%s1099_s1 + $0x4c] ss:$16 sps:$4 sm:$0xff] (!%p138_p2)  }
   0x9   : > { %420 = vmatprep.subr.bf16.mxu0 (!%p138_p2), %v827_v5  ;;  %493 = vmatprep.subr.bf16.mxu1 (!%p138_p2), %v829_v6  ;;  %v837_v11 = vld [vmem:[%s1099_s1 + $0x40] ss:$16 sps:$4 sm:$0xff] (!%p138_p2)   ;;  %v838_v12 = vld [vmem:[%s1099_s1 + $0x48] ss:$16 sps:$4 sm:$0xff] (!%p138_p2)   ;;  %v839_v13 = vld [vmem:[%s1099_s1 + $0x64] ss:$16 sps:$4 sm:$0xff] (!%p138_p2)  }
   0xa   : > { %v841_v14 = vld [vmem:[%s1099_s1 + $0x6c] ss:$16 sps:$4 sm:$0xff] (!%p138_p2)   ;;  %v843_v15 = vld [vmem:[%s1099_s1 + $0x60] ss:$16 sps:$4 sm:$0xff] (!%p138_p2)   ;;  %v844_v16 = vld [vmem:[%s1099_s1 + $0x68] ss:$16 sps:$4 sm:$0xff] (!%p138_p2)  }
   0xb   : > { %v845_v17 = vld [vmem:[%s1099_s1 + $0x84] ss:$16 sps:$4 sm:$0xff] (!%p138_p2)   ;;  %v847_v18 = vld [vmem:[%s1099_s1 + $0x8c] ss:$16 sps:$4 sm:$0xff] (!%p138_p2)   ;;  %v849_v19 = vld [vmem:[%s1099_s1 + $0x80] ss:$16 sps:$4 sm:$0xff] (!%p138_p2)  }
   0xc   : > { %421 = vmatpush1.bf16.msra.mxu0 (!%p138_p2), %v831_v7  ;;  %494 = vmatpush1.bf16.msra.mxu1 (!%p138_p2), %v832_v8  ;;  %v850_v20 = vld [vmem:[%s1099_s1 + $0x88] ss:$16 sps:$4 sm:$0xff] (!%p138_p2)   ;;  %v851_v21 = vld [vmem:[%s1099_s1 + $0xa4] ss:$16 sps:$4 sm:$0xff] (!%p138_p2)   ;;  %v853_v22 = vld [vmem:[%s1099_s1 + $0xac] ss:$16 sps:$4 sm:$0xff] (!%p138_p2)  }
   0xd   : > { %422 = vmatprep.subr.bf16.mxu0 %v833_v9  ;;  %495 = vmatprep.subr.bf16.mxu1 %v835_v10  ;;  %s1103_s13 = smov (!%p161_p3, %s731_s13), 1  ;;  %v855_v23 = vld [vmem:[%s1099_s1 + $0xa0] ss:$16 sps:$4 sm:$0xff]   ;;  %v856_v24 = vld [vmem:[%s1099_s1 + $0xa8] ss:$16 sps:$4 sm:$0xff]   ;;  %v215_v38 = vshrl.u32 %v214_v37, 7 }
   0xe   : > { %s794_s6 = sshll.u32 %s1103_s13, 5  ;;  %v857_v25 = vld [vmem:[%s1099_s1 + $0xc4] ss:$16 sps:$4 sm:$0xff]   ;;  %v859_v26 = vld [vmem:[%s1099_s1 + $0xcc] ss:$16 sps:$4 sm:$0xff]   ;;  %s795_s7 = sshll.u32 %s1103_s13, 7 }
   0xf   : > { %s997_s17 = scalar_lea.vmem %s1098_s0, %s794_s6  ;;  %v861_v27 = vld [vmem:[%s1099_s1 + $0xc0] ss:$16 sps:$4 sm:$0xff]   ;;  %v862_v28 = vld [vmem:[%s1099_s1 + $0xc8] ss:$16 sps:$4 sm:$0xff]   ;;  %v863_v29 = vld [vmem:[%s1099_s1 + $0xe4] ss:$16 sps:$4 sm:$0xff]   ;;  %s1049_s10 = scalar_lea.vmem %s1101_s3, %s795_s7 }
  0x10   : > { %423 = vmatpush1.bf16.msra.mxu0 %v837_v11  ;;  %496 = vmatpush1.bf16.msra.mxu1 %v838_v12  ;;  %v865_v30 = vld [vmem:[%s1099_s1 + $0xec] ss:$16 sps:$4 sm:$0xff]   ;;  %v867_v31 = vld [vmem:[%s1099_s1 + $0xe0] ss:$16 sps:$4 sm:$0xff]   ;;  %v868_v32 = vld [vmem:[%s1099_s1 + $0xe8] ss:$16 sps:$4 sm:$0xff]  }
  0x11   : > { %424 = vmatprep.subr.bf16.mxu0 %v839_v13  ;;  %497 = vmatprep.subr.bf16.mxu1 %v841_v14  ;;  %v869_v33 = vld [vmem:[%s997_s17] sm:$0xff]   ;;  %v870_v34 = vld [vmem:[%s997_s17 + $0x8] sm:$0xff]   ;;  %v871_v35 = vld [vmem:[%s997_s17 + $0x10] sm:$0xff]   ;;  %v216_v39 = vsub.s32 0, %v215_v38  ;;  %v224_v40 = vsub.s32 2, %v215_v38  ;;  %v220_v42 = vsub.s32 1, %v215_v38 }
  0x12   : > { %v872_v36 = vld [vmem:[%s997_s17 + $0x18] sm:$0xff]   ;;  %v212_v41 = vld [vmem:[%s1100_s2] sm:$0xf]  ;;  %v228_v43 = vsub.s32 3, %v215_v38 }
  0x13   : > { %v1033_v44 = vrot.slane %v212_v41, %v216_v39  ;;  %v1035_v45 = vrot.slane %v212_v41, %v224_v40  ;;  %v1037_v46 = vrot.slane %v212_v41, %v220_v42 }
  0x14   : > { %425 = vmatpush1.bf16.msra.mxu0 %v843_v15  ;;  %498 = vmatpush1.bf16.msra.mxu1 %v844_v16  ;;  %v1039_v47 = vrot.slane %v212_v41, %v228_v43 }
  0x15   : > { %426 = vmatprep.subr.bf16.mxu0 %v845_v17  ;;  %499 = vmatprep.subr.bf16.mxu1 %v847_v18 }
  0x18   : > { %427 = vmatpush1.bf16.msra.mxu0 %v849_v19  ;;  %500 = vmatpush1.bf16.msra.mxu1 %v850_v20 }
  0x19   : > { %428 = vmatprep.subr.bf16.mxu0 %v851_v21  ;;  %501 = vmatprep.subr.bf16.mxu1 %v853_v22 }
  0x1c   : > { %429 = vmatpush1.bf16.msra.mxu0 %v855_v23  ;;  %502 = vmatpush1.bf16.msra.mxu1 %v856_v24 }
  0x1d   : > { %430 = vmatprep.subr.bf16.mxu0 %v857_v25  ;;  %503 = vmatprep.subr.bf16.mxu1 %v859_v26 }
  0x20   : > { %431 = vmatpush1.bf16.msra.mxu0 %v861_v27  ;;  %504 = vmatpush1.bf16.msra.mxu1 %v862_v28 }
  0x21   : > { %432 = vmatprep.subr.bf16.mxu0 %v863_v29  ;;  %505 = vmatprep.subr.bf16.mxu1 %v865_v30 }
  0x24   : > { %433 = vmatpush1.bf16.msra.mxu0 %v867_v31  ;;  %506 = vmatpush1.bf16.msra.mxu1 %v868_v32 }
  0x27   : > { %451 = vmatmul.mubr.bf16.vlgmr.msra.gmra.mrb[0].mxu0 %v869_v33  ;;  %524 = vmatmul.mubr.bf16.vlgmr.msra.gmra.mrb[0].mxu1 %v869_v33 }
  0x28   : > { %460 = vmatprep.mubr.bf16.mxu0 %v881_v2  ;;  %533 = vmatprep.mubr.bf16.mxu1 %v881_v2 }
  0x2f   : > { %461 = vmatmul.mubr.bf16.gmra.mrb[4].mxu0 %v870_v34  ;;  %534 = vmatmul.mubr.bf16.gmra.mrb[4].mxu1 %v870_v34 }
  0x30   : > { %470 = vmatprep.mubr.bf16.mxu0 %v881_v2  ;;  %543 = vmatprep.mubr.bf16.mxu1 %v881_v2 }
  0x37   : > { %471 = vmatmul.mubr.bf16.gmra.mrb[8].mxu0 %v871_v35  ;;  %544 = vmatmul.mubr.bf16.gmra.mrb[8].mxu1 %v871_v35 }
  0x38   : > { %480 = vmatprep.mubr.bf16.mxu0 %v881_v2  ;;  %553 = vmatprep.mubr.bf16.mxu1 %v881_v2 }
  0x3f   : > { %481 = vmatmul.mubr.bf16.gmra.mrb[12].mxu0 %v872_v36  ;;  %554 = vmatmul.mubr.bf16.gmra.mrb[12].mxu1 %v872_v36 }
  0xfa   : > { %v452_v48 = vpop.f32.mrb[0].mxu0  ;;  %v525_v49 = vpop.f32.mrb[0].mxu1 }
  0xfb   : > { %v453_v50 = vadd.f32 %v452_v48, %v1033_v44  ;;  %v526_v51 = vadd.f32 %v525_v49, %v1035_v45  ;;  %v454_v52 = vpop.f32.mrb[1].mxu0  ;;  %v527_v53 = vpop.f32.mrb[1].mxu1 }
  0xfc   : > { %v455_v54 = vadd.f32 %v454_v52, %v1037_v46  ;;  %v528_v55 = vadd.f32 %v527_v53, %v1039_v47  ;;  %v456_v56 = vpop.f32.mrb[2].mxu0  ;;  %v529_v57 = vpop.f32.mrb[2].mxu1 }
  0xfd   : > { %v457_v58 = vadd.f32 %v456_v56, %v1033_v44  ;;  %v530_v59 = vadd.f32 %v529_v57, %v1035_v45  ;;  %v458_v60 = vpop.f32.mrb[3].mxu0  ;;  %v531_v61 = vpop.f32.mrb[3].mxu1 }
  0xfe   : > { %v796_v62 = vpack.c.bf16 %v455_v54, %v453_v50  ;;  %v797_v63 = vpack.c.bf16 %v528_v55, %v526_v51  ;;  %v459_v0 = vadd.f32 %v458_v60, %v1037_v46  ;;  %v532_v1 = vadd.f32 %v531_v61, %v1039_v47 }
 0x100   : > { %660 = vst [vmem:[%s1049_s10] sm:$0xff] %v796_v62  ;;  %661 = vst [vmem:[%s1049_s10 + $0x8] sm:$0xff] %v797_v63  ;;  %v798_v2 = vpack.c.bf16 %v459_v0, %v457_v58  ;;  %v799_v3 = vpack.c.bf16 %v532_v1, %v530_v59 }
 0x102   : > { %662 = vst [vmem:[%s1049_s10 + $0x10] sm:$0xff] %v798_v2  ;;  %663 = vst [vmem:[%s1049_s10 + $0x18] sm:$0xff] %v799_v3  ;;  %v462_v4 = vpop.f32.mrb[4].mxu0  ;;  %v535_v5 = vpop.f32.mrb[4].mxu1 }
 0x103   : > { %v463_v6 = vadd.f32 %v462_v4, %v1033_v44  ;;  %v536_v7 = vadd.f32 %v535_v5, %v1035_v45  ;;  %v464_v8 = vpop.f32.mrb[5].mxu0  ;;  %v537_v9 = vpop.f32.mrb[5].mxu1 }
 0x104   : > { %v465_v10 = vadd.f32 %v464_v8, %v1037_v46  ;;  %v538_v11 = vadd.f32 %v537_v9, %v1039_v47  ;;  %v466_v12 = vpop.f32.mrb[6].mxu0  ;;  %v539_v13 = vpop.f32.mrb[6].mxu1 }
 0x105   : > { %v467_v14 = vadd.f32 %v466_v12, %v1033_v44  ;;  %v540_v15 = vadd.f32 %v539_v13, %v1035_v45  ;;  %v468_v16 = vpop.f32.mrb[7].mxu0  ;;  %v541_v17 = vpop.f32.mrb[7].mxu1 }
 0x106   : > { %v800_v18 = vpack.c.bf16 %v465_v10, %v463_v6  ;;  %v801_v19 = vpack.c.bf16 %v538_v11, %v536_v7  ;;  %v469_v20 = vadd.f32 %v468_v16, %v1037_v46  ;;  %v542_v21 = vadd.f32 %v541_v17, %v1039_v47 }
 0x108   : > { %664 = vst [vmem:[%s1049_s10 + $0x20] sm:$0xff] %v800_v18  ;;  %665 = vst [vmem:[%s1049_s10 + $0x28] sm:$0xff] %v801_v19  ;;  %v802_v22 = vpack.c.bf16 %v469_v20, %v467_v14  ;;  %v803_v23 = vpack.c.bf16 %v542_v21, %v540_v15 }
 0x10a   : > { %666 = vst [vmem:[%s1049_s10 + $0x30] sm:$0xff] %v802_v22  ;;  %667 = vst [vmem:[%s1049_s10 + $0x38] sm:$0xff] %v803_v23  ;;  %v472_v24 = vpop.f32.mrb[8].mxu0  ;;  %v545_v25 = vpop.f32.mrb[8].mxu1 }
 0x10b   : > { %v473_v26 = vadd.f32 %v472_v24, %v1033_v44  ;;  %v546_v27 = vadd.f32 %v545_v25, %v1035_v45  ;;  %v474_v28 = vpop.f32.mrb[9].mxu0  ;;  %v547_v29 = vpop.f32.mrb[9].mxu1 }
 0x10c   : > { %v475_v30 = vadd.f32 %v474_v28, %v1037_v46  ;;  %v548_v31 = vadd.f32 %v547_v29, %v1039_v47  ;;  %v476_v32 = vpop.f32.mrb[10].mxu0  ;;  %v549_v33 = vpop.f32.mrb[10].mxu1 }
 0x10d   : > { %v477_v34 = vadd.f32 %v476_v32, %v1033_v44  ;;  %v550_v35 = vadd.f32 %v549_v33, %v1035_v45  ;;  %v478_v36 = vpop.f32.mrb[11].mxu0  ;;  %v551_v37 = vpop.f32.mrb[11].mxu1 }
 0x10e   : > { %v804_v38 = vpack.c.bf16 %v475_v30, %v473_v26  ;;  %v805_v39 = vpack.c.bf16 %v548_v31, %v546_v27  ;;  %v479_v40 = vadd.f32 %v478_v36, %v1037_v46  ;;  %v552_v41 = vadd.f32 %v551_v37, %v1039_v47 }
 0x110   : > { %668 = vst [vmem:[%s1049_s10 + $0x40] sm:$0xff] %v804_v38  ;;  %669 = vst [vmem:[%s1049_s10 + $0x48] sm:$0xff] %v805_v39  ;;  %v806_v42 = vpack.c.bf16 %v479_v40, %v477_v34  ;;  %v807_v43 = vpack.c.bf16 %v552_v41, %v550_v35 }
 0x112   : > { %670 = vst [vmem:[%s1049_s10 + $0x50] sm:$0xff] %v806_v42  ;;  %671 = vst [vmem:[%s1049_s10 + $0x58] sm:$0xff] %v807_v43  ;;  %v482_v48 = vpop.f32.mrb[12].mxu0  ;;  %v555_v49 = vpop.f32.mrb[12].mxu1 }
 0x113   : > { %v483_v50 = vadd.f32 %v482_v48, %v1033_v44  ;;  %v556_v51 = vadd.f32 %v555_v49, %v1035_v45  ;;  %v484_v52 = vpop.f32.mrb[13].mxu0  ;;  %v557_v53 = vpop.f32.mrb[13].mxu1 }
 0x114   : > { %v485_v54 = vadd.f32 %v484_v52, %v1037_v46  ;;  %v558_v55 = vadd.f32 %v557_v53, %v1039_v47  ;;  %v486_v56 = vpop.f32.mrb[14].mxu0  ;;  %v559_v57 = vpop.f32.mrb[14].mxu1 }
 0x115   : > { %v487_v58 = vadd.f32 %v486_v56, %v1033_v44  ;;  %v560_v59 = vadd.f32 %v559_v57, %v1035_v45  ;;  %v488_v60 = vpop.f32.mrb[15].mxu0  ;;  %v561_v61 = vpop.f32.mrb[15].mxu1 }
 0x116   : > { %v808_v62 = vpack.c.bf16 %v485_v54, %v483_v50  ;;  %v809_v63 = vpack.c.bf16 %v558_v55, %v556_v51  ;;  %v489_v0 = vadd.f32 %v488_v60, %v1037_v46  ;;  %v562_v1 = vadd.f32 %v561_v61, %v1039_v47 }
 0x118   : > { %672 = vst [vmem:[%s1049_s10 + $0x60] sm:$0xff] %v808_v62  ;;  %673 = vst [vmem:[%s1049_s10 + $0x68] sm:$0xff] %v809_v63  ;;  %v810_v2 = vpack.c.bf16 %v489_v0, %v487_v58  ;;  %v811_v3 = vpack.c.bf16 %v562_v1, %v560_v59 }
 0x11a   : > { %674 = vst [vmem:[%s1049_s10 + $0x70] sm:$0xff] %v810_v2  ;;  %675 = vst [vmem:[%s1049_s10 + $0x78] sm:$0xff] %v811_v3 }
 0x11b PF: > { %s13_s12 = sadd.s32 1, %s879_s12  }
 0x11c   : > { %p10_p4 = scmp.ge.s32.totalorder %s13_s12, 4  }
 0x11e   :  { %12 = sbr.rel (!%p10_p4) target bundleno = 1 (0x1), region = 62 }

// kernel: up_block_forward.7
= control target key start
LH: loop header
LB: loop body
LE: loop exit
PB: predicated region body
PF: predicated region fallthrough
CT: control target
= control target key end

     0   :  { %s896_s0 = inlined_call_operand.vmem [shape: f32[512,128], index: 0, kind: input, shape index: {}]   ;;  %s897_s1 = inlined_call_operand.vmem [shape: f32[1,128], index: 1, kind: input, shape index: {}]   ;;  %s898_s2 = inlined_call_operand.vmem [shape: f32[1,128], index: 2, kind: input, shape index: {}]   ;;  %s899_s3 = inlined_call_operand.vmem [shape: f32[512,128], index: 3, kind: output, shape index: {}]  }
   0x1   :  { %v14_v0 = vld [vmem:[%s896_s0] sm:$0xff]  ;;  %v15_v4 = vld [vmem:[%s896_s0 + $0x8] sm:$0xff]  ;;  %v16_v5 = vld [vmem:[%s896_s0 + $0x10] sm:$0xff] }
   0x2   :  { %v380_v1 = vld [vmem:[%s897_s1] ss:$0 sm:$0xff]  ;;  %v17_v6 = vld [vmem:[%s896_s0 + $0x18] sm:$0xff]  ;;  %v19_v11 = vld [vmem:[%s896_s0 + $0x28] sm:$0xff] }
   0x3   :  { %v385_v2 = vld [vmem:[%s898_s2] ss:$0 sm:$0xff]  ;;  %v85_v3 = vmul.f32 %v380_v1, %v14_v0  ;;  %v86_v7 = vmul.f32 %v380_v1, %v15_v4  ;;  %v87_v8 = vmul.f32 %v380_v1, %v16_v5  ;;  %v88_v9 = vmul.f32 %v380_v1, %v17_v6  ;;  %v20_v12 = vld [vmem:[%s896_s0 + $0x30] sm:$0xff]  ;;  %v21_v17 = vld [vmem:[%s896_s0 + $0x38] sm:$0xff] }
   0x4   :  { %v18_v10 = vld [vmem:[%s896_s0 + $0x20] sm:$0xff]  ;;  %v90_v15 = vmul.f32 %v380_v1, %v19_v11  ;;  %v91_v16 = vmul.f32 %v380_v1, %v20_v12  ;;  %v92_v21 = vmul.f32 %v380_v1, %v21_v17  ;;  %v23_v27 = vld [vmem:[%s896_s0 + $0x48] sm:$0xff]  ;;  %v24_v28 = vld [vmem:[%s896_s0 + $0x50] sm:$0xff] }
   0x5   :  { %v156_v13 = vadd.f32 %v385_v2, %v85_v3  ;;  %v89_v14 = vmul.f32 %v380_v1, %v18_v10  ;;  %v157_v18 = vadd.f32 %v385_v2, %v86_v7  ;;  %v158_v19 = vadd.f32 %v385_v2, %v87_v8  ;;  %v22_v22 = vld [vmem:[%s896_s0 + $0x40] sm:$0xff]  ;;  %v25_v29 = vld [vmem:[%s896_s0 + $0x58] sm:$0xff]  ;;  %v27_v35 = vld [vmem:[%s896_s0 + $0x68] sm:$0xff] }
   0x6   :  { %v159_v20 = vadd.f32 %v385_v2, %v88_v9  ;;  %v161_v25 = vadd.f32 %v385_v2, %v90_v15  ;;  %v162_v26 = vadd.f32 %v385_v2, %v91_v16  ;;  %v163_v33 = vadd.f32 %v385_v2, %v92_v21  ;;  %v26_v34 = vld [vmem:[%s896_s0 + $0x60] sm:$0xff]  ;;  %v28_v36 = vld [vmem:[%s896_s0 + $0x70] sm:$0xff]  ;;  %v29_v41 = vld [vmem:[%s896_s0 + $0x78] sm:$0xff] }
   0x7   :  { %v220_v23 = vmax.f32 %v156_v13, 0.0  ;;  %v160_v24 = vadd.f32 %v385_v2, %v89_v14  ;;  %v221_v30 = vmax.f32 %v157_v18, 0.0  ;;  %v222_v31 = vmax.f32 %v158_v19, 0.0  ;;  %v30_v54 = vld [vmem:[%s896_s0 + $0x80] sm:$0xff]  ;;  %v31_v59 = vld [vmem:[%s896_s0 + $0x88] sm:$0xff]  ;;  %v32_v60 = vld [vmem:[%s896_s0 + $0x90] sm:$0xff] }
   0x8   :  { %v223_v32 = vmax.f32 %v159_v20, 0.0  ;;  %v225_v38 = vmax.f32 %v161_v25, 0.0  ;;  %v226_v39 = vmax.f32 %v162_v26, 0.0  ;;  %v93_v40 = vmul.f32 %v380_v1, %v22_v22  ;;  %v33_v61 = vld [vmem:[%s896_s0 + $0x98] sm:$0xff]  ;;  %v34_v4 = vld [vmem:[%s896_s0 + $0xa0] sm:$0xff]  ;;  %v35_v5 = vld [vmem:[%s896_s0 + $0xa8] sm:$0xff] }
   0x9   :  { %284 = vst [vmem:[%s899_s3] sm:$0xff] %v220_v23  ;;  %v224_v37 = vmax.f32 %v160_v24, 0.0  ;;  %285 = vst [vmem:[%s899_s3 + $0x8] sm:$0xff] %v221_v30  ;;  %v227_v42 = vmax.f32 %v163_v33, 0.0  ;;  %v94_v43 = vmul.f32 %v380_v1, %v23_v27  ;;  %v95_v44 = vmul.f32 %v380_v1, %v24_v28  ;;  %v36_v6 = vld [vmem:[%s896_s0 + $0xb0] sm:$0xff]  ;;  %v37_v11 = vld [vmem:[%s896_s0 + $0xb8] sm:$0xff] }
   0xa   :  { %286 = vst [vmem:[%s899_s3 + $0x10] sm:$0xff] %v222_v31  ;;  %287 = vst [vmem:[%s899_s3 + $0x18] sm:$0xff] %v223_v32  ;;  %v96_v45 = vmul.f32 %v380_v1, %v25_v29  ;;  %v164_v46 = vadd.f32 %v385_v2, %v93_v40  ;;  %v97_v47 = vmul.f32 %v380_v1, %v26_v34  ;;  %v38_v24 = vld [vmem:[%s896_s0 + $0xc0] sm:$0xff]  ;;  %v39_v29 = vld [vmem:[%s896_s0 + $0xc8] sm:$0xff] }
   0xb   :  { %288 = vst [vmem:[%s899_s3 + $0x20] sm:$0xff] %v224_v37  ;;  %289 = vst [vmem:[%s899_s3 + $0x28] sm:$0xff] %v225_v38  ;;  %v98_v48 = vmul.f32 %v380_v1, %v27_v35  ;;  %v99_v49 = vmul.f32 %v380_v1, %v28_v36  ;;  %v165_v50 = vadd.f32 %v385_v2, %v94_v43  ;;  %v40_v30 = vld [vmem:[%s896_s0 + $0xd0] sm:$0xff]  ;;  %v41_v31 = vld [vmem:[%s896_s0 + $0xd8] sm:$0xff] }
   0xc   :  { %290 = vst [vmem:[%s899_s3 + $0x30] sm:$0xff] %v226_v39  ;;  %291 = vst [vmem:[%s899_s3 + $0x38] sm:$0xff] %v227_v42  ;;  %v166_v51 = vadd.f32 %v385_v2, %v95_v44  ;;  %v167_v52 = vadd.f32 %v385_v2, %v96_v45  ;;  %v100_v53 = vmul.f32 %v380_v1, %v29_v41  ;;  %v228_v55 = vmax.f32 %v164_v46, 0.0  ;;  %v42_v36 = vld [vmem:[%s896_s0 + $0xe0] sm:$0xff]  ;;  %v43_v37 = vld [vmem:[%s896_s0 + $0xe8] sm:$0xff] }
   0xd   :  { %v168_v56 = vadd.f32 %v385_v2, %v97_v47  ;;  %v169_v57 = vadd.f32 %v385_v2, %v98_v48  ;;  %v170_v58 = vadd.f32 %v385_v2, %v99_v49  ;;  %v229_v62 = vmax.f32 %v165_v50, 0.0  ;;  %v44_v38 = vld [vmem:[%s896_s0 + $0xf0] sm:$0xff]  ;;  %v45_v43 = vld [vmem:[%s896_s0 + $0xf8] sm:$0xff] }
   0xe   :  { %v230_v63 = vmax.f32 %v166_v51, 0.0  ;;  %v231_v0 = vmax.f32 %v167_v52, 0.0  ;;  %v171_v3 = vadd.f32 %v385_v2, %v100_v53  ;;  %292 = vst [vmem:[%s899_s3 + $0x40] sm:$0xff] %v228_v55  ;;  %v101_v10 = vmul.f32 %v380_v1, %v30_v54 }
   0xf   :  { %v232_v7 = vmax.f32 %v168_v56, 0.0  ;;  %v233_v8 = vmax.f32 %v169_v57, 0.0  ;;  %v234_v9 = vmax.f32 %v170_v58, 0.0  ;;  %293 = vst [vmem:[%s899_s3 + $0x48] sm:$0xff] %v229_v62  ;;  %v102_v13 = vmul.f32 %v380_v1, %v31_v59  ;;  %v46_v56 = vld [vmem:[%s896_s0 + $0x100] sm:$0xff]  ;;  %v48_v62 = vld [vmem:[%s896_s0 + $0x110] sm:$0xff] }
  0x10   :  { %294 = vst [vmem:[%s899_s3 + $0x50] sm:$0xff] %v230_v63  ;;  %295 = vst [vmem:[%s899_s3 + $0x58] sm:$0xff] %v231_v0  ;;  %v235_v12 = vmax.f32 %v171_v3, 0.0  ;;  %v103_v14 = vmul.f32 %v380_v1, %v32_v60  ;;  %v104_v15 = vmul.f32 %v380_v1, %v33_v61  ;;  %v172_v16 = vadd.f32 %v385_v2, %v101_v10  ;;  %v47_v61 = vld [vmem:[%s896_s0 + $0x108] sm:$0xff]  ;;  %v49_v63 = vld [vmem:[%s896_s0 + $0x118] sm:$0xff] }
  0x11   :  { %296 = vst [vmem:[%s899_s3 + $0x60] sm:$0xff] %v232_v7  ;;  %297 = vst [vmem:[%s899_s3 + $0x68] sm:$0xff] %v233_v8  ;;  %v105_v17 = vmul.f32 %v380_v1, %v34_v4  ;;  %v106_v18 = vmul.f32 %v380_v1, %v35_v5  ;;  %v107_v19 = vmul.f32 %v380_v1, %v36_v6  ;;  %v50_v6 = vld [vmem:[%s896_s0 + $0x120] sm:$0xff]  ;;  %v51_v7 = vld [vmem:[%s896_s0 + $0x128] sm:$0xff] }
  0x12   :  { %298 = vst [vmem:[%s899_s3 + $0x70] sm:$0xff] %v234_v9  ;;  %299 = vst [vmem:[%s899_s3 + $0x78] sm:$0xff] %v235_v12  ;;  %v173_v20 = vadd.f32 %v385_v2, %v102_v13  ;;  %v174_v21 = vadd.f32 %v385_v2, %v103_v14  ;;  %v175_v22 = vadd.f32 %v385_v2, %v104_v15  ;;  %v236_v25 = vmax.f32 %v172_v16, 0.0  ;;  %v52_v8 = vld [vmem:[%s896_s0 + $0x130] sm:$0xff]  ;;  %v53_v13 = vld [vmem:[%s896_s0 + $0x138] sm:$0xff] }
  0x13   :  { %v108_v23 = vmul.f32 %v380_v1, %v37_v11  ;;  %v176_v26 = vadd.f32 %v385_v2, %v105_v17  ;;  %v177_v27 = vadd.f32 %v385_v2, %v106_v18  ;;  %v178_v28 = vadd.f32 %v385_v2, %v107_v19 }
  0x14   :  { %v237_v32 = vmax.f32 %v173_v20, 0.0  ;;  %v238_v33 = vmax.f32 %v174_v21, 0.0  ;;  %v239_v34 = vmax.f32 %v175_v22, 0.0  ;;  %300 = vst [vmem:[%s899_s3 + $0x80] sm:$0xff] %v236_v25  ;;  %v109_v42 = vmul.f32 %v380_v1, %v38_v24 }
  0x15   :  { %v179_v35 = vadd.f32 %v385_v2, %v108_v23  ;;  %v240_v39 = vmax.f32 %v176_v26, 0.0  ;;  %v241_v40 = vmax.f32 %v177_v27, 0.0  ;;  %v242_v41 = vmax.f32 %v178_v28, 0.0  ;;  %v54_v26 = vld [vmem:[%s896_s0 + $0x140] sm:$0xff] }
  0x16   :  { %301 = vst [vmem:[%s899_s3 + $0x88] sm:$0xff] %v237_v32  ;;  %302 = vst [vmem:[%s899_s3 + $0x90] sm:$0xff] %v238_v33  ;;  %v110_v45 = vmul.f32 %v380_v1, %v39_v29  ;;  %v111_v46 = vmul.f32 %v380_v1, %v40_v30  ;;  %v112_v47 = vmul.f32 %v380_v1, %v41_v31  ;;  %v55_v31 = vld [vmem:[%s896_s0 + $0x148] sm:$0xff]  ;;  %v56_v32 = vld [vmem:[%s896_s0 + $0x150] sm:$0xff] }
  0x17   :  { %303 = vst [vmem:[%s899_s3 + $0x98] sm:$0xff] %v239_v34  ;;  %v243_v44 = vmax.f32 %v179_v35, 0.0  ;;  %304 = vst [vmem:[%s899_s3 + $0xa0] sm:$0xff] %v240_v39  ;;  %v180_v48 = vadd.f32 %v385_v2, %v109_v42  ;;  %v113_v49 = vmul.f32 %v380_v1, %v42_v36  ;;  %v114_v50 = vmul.f32 %v380_v1, %v43_v37  ;;  %v57_v33 = vld [vmem:[%s896_s0 + $0x158] sm:$0xff]  ;;  %v59_v39 = vld [vmem:[%s896_s0 + $0x168] sm:$0xff] }
  0x18   :  { %305 = vst [vmem:[%s899_s3 + $0xa8] sm:$0xff] %v241_v40  ;;  %306 = vst [vmem:[%s899_s3 + $0xb0] sm:$0xff] %v242_v41  ;;  %v115_v51 = vmul.f32 %v380_v1, %v44_v38  ;;  %v181_v52 = vadd.f32 %v385_v2, %v110_v45  ;;  %v182_v53 = vadd.f32 %v385_v2, %v111_v46  ;;  %v58_v38 = vld [vmem:[%s896_s0 + $0x160] sm:$0xff]  ;;  %v60_v40 = vld [vmem:[%s896_s0 + $0x170] sm:$0xff] }
  0x19   :  { %307 = vst [vmem:[%s899_s3 + $0xb8] sm:$0xff] %v243_v44  ;;  %v183_v54 = vadd.f32 %v385_v2, %v112_v47  ;;  %v116_v55 = vmul.f32 %v380_v1, %v45_v43  ;;  %v244_v57 = vmax.f32 %v180_v48, 0.0  ;;  %v184_v58 = vadd.f32 %v385_v2, %v113_v49  ;;  %v61_v45 = vld [vmem:[%s896_s0 + $0x178] sm:$0xff] }
  0x1a   :  { %v185_v59 = vadd.f32 %v385_v2, %v114_v50  ;;  %v186_v60 = vadd.f32 %v385_v2, %v115_v51  ;;  %v245_v0 = vmax.f32 %v181_v52, 0.0  ;;  %v246_v3 = vmax.f32 %v182_v53, 0.0 }
  0x1b   :  { %v247_v4 = vmax.f32 %v183_v54, 0.0  ;;  %v187_v5 = vadd.f32 %v385_v2, %v116_v55  ;;  %308 = vst [vmem:[%s899_s3 + $0xc0] sm:$0xff] %v244_v57  ;;  %v248_v9 = vmax.f32 %v184_v58, 0.0  ;;  %v117_v12 = vmul.f32 %v380_v1, %v46_v56  ;;  %v62_v58 = vld [vmem:[%s896_s0 + $0x180] sm:$0xff] }
  0x1c   :  { %v249_v10 = vmax.f32 %v185_v59, 0.0  ;;  %v250_v11 = vmax.f32 %v186_v60, 0.0  ;;  %309 = vst [vmem:[%s899_s3 + $0xc8] sm:$0xff] %v245_v0  ;;  %310 = vst [vmem:[%s899_s3 + $0xd0] sm:$0xff] %v246_v3  ;;  %v118_v15 = vmul.f32 %v380_v1, %v47_v61  ;;  %v119_v16 = vmul.f32 %v380_v1, %v48_v62  ;;  %v64_v0 = vld [vmem:[%s896_s0 + $0x190] sm:$0xff]  ;;  %v65_v3 = vld [vmem:[%s896_s0 + $0x198] sm:$0xff] }
  0x1d   :  { %311 = vst [vmem:[%s899_s3 + $0xd8] sm:$0xff] %v247_v4  ;;  %v251_v14 = vmax.f32 %v187_v5, 0.0  ;;  %v120_v17 = vmul.f32 %v380_v1, %v49_v63  ;;  %312 = vst [vmem:[%s899_s3 + $0xe0] sm:$0xff] %v248_v9  ;;  %v188_v18 = vadd.f32 %v385_v2, %v117_v12  ;;  %v121_v19 = vmul.f32 %v380_v1, %v50_v6  ;;  %v63_v63 = vld [vmem:[%s896_s0 + $0x188] sm:$0xff] }
  0x1e   :  { %313 = vst [vmem:[%s899_s3 + $0xe8] sm:$0xff] %v249_v10  ;;  %314 = vst [vmem:[%s899_s3 + $0xf0] sm:$0xff] %v250_v11  ;;  %v122_v20 = vmul.f32 %v380_v1, %v51_v7  ;;  %v123_v21 = vmul.f32 %v380_v1, %v52_v8  ;;  %v189_v22 = vadd.f32 %v385_v2, %v118_v15  ;;  %v66_v8 = vld [vmem:[%s896_s0 + $0x1a0] sm:$0xff]  ;;  %v67_v9 = vld [vmem:[%s896_s0 + $0x1a8] sm:$0xff] }
  0x1f   :  { %315 = vst [vmem:[%s899_s3 + $0xf8] sm:$0xff] %v251_v14  ;;  %v190_v23 = vadd.f32 %v385_v2, %v119_v16  ;;  %v191_v24 = vadd.f32 %v385_v2, %v120_v17  ;;  %v124_v25 = vmul.f32 %v380_v1, %v53_v13  ;;  %v252_v27 = vmax.f32 %v188_v18, 0.0  ;;  %v68_v10 = vld [vmem:[%s896_s0 + $0x1b0] sm:$0xff]  ;;  %v69_v15 = vld [vmem:[%s896_s0 + $0x1b8] sm:$0xff] }
  0x20   :  { %v192_v28 = vadd.f32 %v385_v2, %v121_v19  ;;  %v193_v29 = vadd.f32 %v385_v2, %v122_v20  ;;  %v194_v30 = vadd.f32 %v385_v2, %v123_v21  ;;  %v253_v34 = vmax.f32 %v189_v22, 0.0 }
  0x21   :  { %v254_v35 = vmax.f32 %v190_v23, 0.0  ;;  %v255_v36 = vmax.f32 %v191_v24, 0.0  ;;  %v195_v37 = vadd.f32 %v385_v2, %v124_v25  ;;  %316 = vst [vmem:[%s899_s3 + $0x100] sm:$0xff] %v252_v27  ;;  %v125_v44 = vmul.f32 %v380_v1, %v54_v26 }
  0x22   :  { %v256_v41 = vmax.f32 %v192_v28, 0.0  ;;  %v257_v42 = vmax.f32 %v193_v29, 0.0  ;;  %v258_v43 = vmax.f32 %v194_v30, 0.0  ;;  %317 = vst [vmem:[%s899_s3 + $0x108] sm:$0xff] %v253_v34  ;;  %v126_v47 = vmul.f32 %v380_v1, %v55_v31  ;;  %v70_v28 = vld [vmem:[%s896_s0 + $0x1c0] sm:$0xff]  ;;  %v72_v34 = vld [vmem:[%s896_s0 + $0x1d0] sm:$0xff] }
  0x23   :  { %318 = vst [vmem:[%s899_s3 + $0x110] sm:$0xff] %v254_v35  ;;  %319 = vst [vmem:[%s899_s3 + $0x118] sm:$0xff] %v255_v36  ;;  %v259_v46 = vmax.f32 %v195_v37, 0.0  ;;  %v127_v48 = vmul.f32 %v380_v1, %v56_v32  ;;  %v128_v49 = vmul.f32 %v380_v1, %v57_v33  ;;  %v196_v50 = vadd.f32 %v385_v2, %v125_v44  ;;  %v71_v33 = vld [vmem:[%s896_s0 + $0x1c8] sm:$0xff]  ;;  %v73_v35 = vld [vmem:[%s896_s0 + $0x1d8] sm:$0xff] }
  0x24   :  { %320 = vst [vmem:[%s899_s3 + $0x120] sm:$0xff] %v256_v41  ;;  %321 = vst [vmem:[%s899_s3 + $0x128] sm:$0xff] %v257_v42  ;;  %v129_v51 = vmul.f32 %v380_v1, %v58_v38  ;;  %v130_v52 = vmul.f32 %v380_v1, %v59_v39  ;;  %v131_v53 = vmul.f32 %v380_v1, %v60_v40  ;;  %v74_v40 = vld [vmem:[%s896_s0 + $0x1e0] sm:$0xff]  ;;  %v75_v41 = vld [vmem:[%s896_s0 + $0x1e8] sm:$0xff] }
  0x25   :  { %322 = vst [vmem:[%s899_s3 + $0x130] sm:$0xff] %v258_v43  ;;  %323 = vst [vmem:[%s899_s3 + $0x138] sm:$0xff] %v259_v46  ;;  %v197_v54 = vadd.f32 %v385_v2, %v126_v47  ;;  %v198_v55 = vadd.f32 %v385_v2, %v127_v48  ;;  %v199_v56 = vadd.f32 %v385_v2, %v128_v49  ;;  %v260_v59 = vmax.f32 %v196_v50, 0.0  ;;  %v76_v42 = vld [vmem:[%s896_s0 + $0x1f0] sm:$0xff]  ;;  %v77_v47 = vld [vmem:[%s896_s0 + $0x1f8] sm:$0xff] }
  0x26   :  { %v132_v57 = vmul.f32 %v380_v1, %v61_v45  ;;  %v200_v60 = vadd.f32 %v385_v2, %v129_v51  ;;  %v201_v61 = vadd.f32 %v385_v2, %v130_v52  ;;  %v202_v62 = vadd.f32 %v385_v2, %v131_v53 }
  0x27   :  { %v261_v4 = vmax.f32 %v197_v54, 0.0  ;;  %v262_v5 = vmax.f32 %v198_v55, 0.0  ;;  %v263_v6 = vmax.f32 %v199_v56, 0.0  ;;  %324 = vst [vmem:[%s899_s3 + $0x140] sm:$0xff] %v260_v59  ;;  %v133_v14 = vmul.f32 %v380_v1, %v62_v58 }
  0x28   :  { %v203_v7 = vadd.f32 %v385_v2, %v132_v57  ;;  %v264_v11 = vmax.f32 %v200_v60, 0.0  ;;  %v265_v12 = vmax.f32 %v201_v61, 0.0  ;;  %v266_v13 = vmax.f32 %v202_v62, 0.0 }
  0x29   :  { %325 = vst [vmem:[%s899_s3 + $0x148] sm:$0xff] %v261_v4  ;;  %326 = vst [vmem:[%s899_s3 + $0x150] sm:$0xff] %v262_v5  ;;  %v134_v17 = vmul.f32 %v380_v1, %v63_v63  ;;  %v135_v18 = vmul.f32 %v380_v1, %v64_v0  ;;  %v136_v19 = vmul.f32 %v380_v1, %v65_v3 }
  0x2a   :  { %327 = vst [vmem:[%s899_s3 + $0x158] sm:$0xff] %v263_v6  ;;  %v267_v16 = vmax.f32 %v203_v7, 0.0  ;;  %328 = vst [vmem:[%s899_s3 + $0x160] sm:$0xff] %v264_v11  ;;  %v204_v20 = vadd.f32 %v385_v2, %v133_v14  ;;  %v137_v21 = vmul.f32 %v380_v1, %v66_v8  ;;  %v138_v22 = vmul.f32 %v380_v1, %v67_v9 }
  0x2b   :  { %329 = vst [vmem:[%s899_s3 + $0x168] sm:$0xff] %v265_v12  ;;  %330 = vst [vmem:[%s899_s3 + $0x170] sm:$0xff] %v266_v13  ;;  %v139_v23 = vmul.f32 %v380_v1, %v68_v10  ;;  %v205_v24 = vadd.f32 %v385_v2, %v134_v17  ;;  %v206_v25 = vadd.f32 %v385_v2, %v135_v18 }
  0x2c   :  { %331 = vst [vmem:[%s899_s3 + $0x178] sm:$0xff] %v267_v16  ;;  %v207_v26 = vadd.f32 %v385_v2, %v136_v19  ;;  %v140_v27 = vmul.f32 %v380_v1, %v69_v15  ;;  %v268_v29 = vmax.f32 %v204_v20, 0.0  ;;  %v208_v30 = vadd.f32 %v385_v2, %v137_v21 }
  0x2d   :  { %v209_v31 = vadd.f32 %v385_v2, %v138_v22  ;;  %v210_v32 = vadd.f32 %v385_v2, %v139_v23  ;;  %v269_v36 = vmax.f32 %v205_v24, 0.0  ;;  %v270_v37 = vmax.f32 %v206_v25, 0.0 }
  0x2e   :  { %v271_v38 = vmax.f32 %v207_v26, 0.0  ;;  %v211_v39 = vadd.f32 %v385_v2, %v140_v27  ;;  %332 = vst [vmem:[%s899_s3 + $0x180] sm:$0xff] %v268_v29  ;;  %v272_v43 = vmax.f32 %v208_v30, 0.0  ;;  %v141_v46 = vmul.f32 %v380_v1, %v70_v28 }
  0x2f   :  { %v273_v44 = vmax.f32 %v209_v31, 0.0  ;;  %v274_v45 = vmax.f32 %v210_v32, 0.0  ;;  %333 = vst [vmem:[%s899_s3 + $0x188] sm:$0xff] %v269_v36  ;;  %334 = vst [vmem:[%s899_s3 + $0x190] sm:$0xff] %v270_v37  ;;  %v142_v49 = vmul.f32 %v380_v1, %v71_v33  ;;  %v143_v50 = vmul.f32 %v380_v1, %v72_v34 }
  0x30   :  { %335 = vst [vmem:[%s899_s3 + $0x198] sm:$0xff] %v271_v38  ;;  %v275_v48 = vmax.f32 %v211_v39, 0.0  ;;  %v144_v51 = vmul.f32 %v380_v1, %v73_v35  ;;  %336 = vst [vmem:[%s899_s3 + $0x1a0] sm:$0xff] %v272_v43  ;;  %v212_v52 = vadd.f32 %v385_v2, %v141_v46  ;;  %v145_v53 = vmul.f32 %v380_v1, %v74_v40 }
  0x31   :  { %337 = vst [vmem:[%s899_s3 + $0x1a8] sm:$0xff] %v273_v44  ;;  %338 = vst [vmem:[%s899_s3 + $0x1b0] sm:$0xff] %v274_v45  ;;  %v146_v54 = vmul.f32 %v380_v1, %v75_v41  ;;  %v147_v55 = vmul.f32 %v380_v1, %v76_v42  ;;  %v213_v56 = vadd.f32 %v385_v2, %v142_v49 }
  0x32   :  { %339 = vst [vmem:[%s899_s3 + $0x1b8] sm:$0xff] %v275_v48  ;;  %v214_v57 = vadd.f32 %v385_v2, %v143_v50  ;;  %v215_v58 = vadd.f32 %v385_v2, %v144_v51  ;;  %v148_v59 = vmul.f32 %v380_v1, %v77_v47  ;;  %v276_v60 = vmax.f32 %v212_v52, 0.0 }
  0x33   :  { %v216_v61 = vadd.f32 %v385_v2, %v145_v53  ;;  %v217_v62 = vadd.f32 %v385_v2, %v146_v54  ;;  %v218_v63 = vadd.f32 %v385_v2, %v147_v55  ;;  %v277_v0 = vmax.f32 %v213_v56, 0.0 }
  0x34   :  { %v278_v3 = vmax.f32 %v214_v57, 0.0  ;;  %v279_v4 = vmax.f32 %v215_v58, 0.0  ;;  %v219_v5 = vadd.f32 %v385_v2, %v148_v59  ;;  %340 = vst [vmem:[%s899_s3 + $0x1c0] sm:$0xff] %v276_v60 }
  0x35   :  { %v280_v6 = vmax.f32 %v216_v61, 0.0  ;;  %v281_v7 = vmax.f32 %v217_v62, 0.0  ;;  %v282_v8 = vmax.f32 %v218_v63, 0.0  ;;  %341 = vst [vmem:[%s899_s3 + $0x1c8] sm:$0xff] %v277_v0 }
  0x36   :  { %342 = vst [vmem:[%s899_s3 + $0x1d0] sm:$0xff] %v278_v3  ;;  %343 = vst [vmem:[%s899_s3 + $0x1d8] sm:$0xff] %v279_v4  ;;  %v283_v1 = vmax.f32 %v219_v5, 0.0 }
  0x37   :  { %344 = vst [vmem:[%s899_s3 + $0x1e0] sm:$0xff] %v280_v6  ;;  %345 = vst [vmem:[%s899_s3 + $0x1e8] sm:$0xff] %v281_v7 }
  0x38   :  { %346 = vst [vmem:[%s899_s3 + $0x1f0] sm:$0xff] %v282_v8  ;;  %347 = vst [vmem:[%s899_s3 + $0x1f8] sm:$0xff] %v283_v1 }

// kernel: up_block_forward.5
= control target key start
LH: loop header
LB: loop body
LE: loop exit
PB: predicated region body
PF: predicated region fallthrough
CT: control target
= control target key end

     0   :  { %s8846_s24 = smov 0   ;;  %s10290_s0 = inlined_call_operand.vmem [shape: bf16[2,18,18,128], index: 0, kind: input, shape index: {}]   ;;  %s10291_s1 = inlined_call_operand.vmem [shape: bf16[2,18,18,128], index: 1, kind: input, shape index: {}]   ;;  %s10292_s2 = inlined_call_operand.vmem [shape: bf16[9,128,128], index: 2, kind: input, shape index: {}]   ;;  %s10293_s3 = inlined_call_operand.vmem [shape: bf16[9,128,128], index: 3, kind: input, shape index: {}]   ;;  %s10294_s4 = inlined_call_operand.vmem [shape: f32[1,128], index: 4, kind: input, shape index: {}]   ;;  %s10295_s5 = inlined_call_operand.vmem [shape: f32[2,16,16,128], index: 5, kind: output, shape index: {0}]   ;;  %s10296_s6 = inlined_call_operand.vmem [shape: f32[1,128], index: 6, kind: output, shape index: {1}]   ;;  %s10297_s7 = inlined_call_operand.vmem [shape: f32[1,128], index: 7, kind: output, shape index: {2}]  }
   0x1 LB: > { %s6147_s25 = sadd.s32 4294967295, %s8803_s24   ;;  %p6151_p0 = scmp.ge.s32.totalorder %s8803_s24, 1  ;;  %s8803_s24 = sphi %s8846_s24, %s18_s24  }
   0x2   : > { %p242_p1 = scmp.lt.s32.totalorder %s8803_s24, 3 }
   0x4   : > { %p243_p2 = pnand %p6151_p0, %p242_p1 }
   0x6   : > { %246 = sbr.rel (%p243_p2) target bundleno = 866 (0x362), region = 40 }
   0xd   : > { %p279_p3 = scmp.lt.s32.totalorder %s6147_s25, 1  ;;  %p6156_p4 = scmp.ne.s32.totalorder %s6147_s25, 0 }
   0xe   : > { %v8805_v0 = vmov (!%p6156_p4), 0.0  }
   0xf   : > { %s280_s26 = scalar_select %p279_p3, %s6147_s25, 1 }
  0x10   : > { %298 = sbr.rel (%p6156_p4) target bundleno = 23 (0x17), region = 44  ;;  %299 = vst [vmem:[%s10296_s6] sm:$0x1] (!%p6156_p4), %v8805_v0  ;;  %300 = vst [vmem:[%s10297_s7] sm:$0x1] (!%p6156_p4), %v8805_v0 }
  0x11   : > { %s8505_s27 = smul.u32 216, %s280_s26  ;;  %s6632_s28 = sshll.u32 %s280_s26, 8 }
  0x12   : > { %s8857_s8 = scalar_lea.vmem %s10295_s5, %s6632_s28 }
  0x13   : > { %s8862_s11 = scalar_lea.vmem %s10290_s0, %s8505_s27  ;;  %s8867_s14 = scalar_lea.vmem %s10291_s1, %s8505_s27 }
  0x17 PF: > { %v8515_v1 = vld [vmem:[%s10292_s2] sm:$0xff]   ;;  %v8517_v3 = vld [vmem:[%s10292_s2 + $0x8] sm:$0xff]   ;;  %v8519_v5 = vld [vmem:[%s10292_s2 + $0x10] sm:$0xff]   ;;  %vm2142_vm0 = vsmask.f32 7424  ;;  %vm4191_vm1 = vcmask 1046528  }
  0x18   : > { %v8516_v2 = vld [vmem:[%s10293_s3 + $0x100] sm:$0xff]   ;;  %7065 = vmatprep.subr.bf16.mxu1 %v8515_v1  ;;  %v8518_v4 = vld [vmem:[%s10293_s3 + $0x108] sm:$0xff]   ;;  %v8520_v6 = vld [vmem:[%s10293_s3 + $0x110] sm:$0xff]  }
  0x19   : > { %7497 = vmatprep.subr.bf16.mxu0 %v8516_v2  ;;  %7066 = vmatpush3.bf16.msra.mxu1 %v8515_v1  ;;  %v8521_v7 = vld [vmem:[%s10292_s2 + $0x18] sm:$0xff]   ;;  %v8523_v9 = vld [vmem:[%s10292_s2 + $0x20] sm:$0xff]   ;;  %v8525_v11 = vld [vmem:[%s10292_s2 + $0x28] sm:$0xff]  }
  0x1a   : > { %7498 = vmatpush3.bf16.msra.mxu0 %v8516_v2  ;;  %7067 = vmatprep.subr.bf16.mxu1 %v8517_v3  ;;  %v8522_v8 = vld [vmem:[%s10293_s3 + $0x118] sm:$0xff]   ;;  %v8524_v10 = vld [vmem:[%s10293_s3 + $0x120] sm:$0xff]   ;;  %v8526_v12 = vld [vmem:[%s10293_s3 + $0x128] sm:$0xff]  }
  0x1b   : > { %7499 = vmatprep.subr.bf16.mxu0 %v8518_v4  ;;  %v8531_v13 = vld [vmem:[%s8862_s11] sm:$0xff]   ;;  %v8913_v14 = vld [vmem:[%s8867_s14 + $0xc] sm:$0xff]   ;;  %v8533_v15 = vld [vmem:[%s8867_s14 + $0x14] ss:$0 sps:$4 sm:$0x11]  }
  0x1c   : > { %7081 = vmatprep.mubr.bf16.mxu1 %v8531_v13  ;;  %v8527_v16 = vld [vmem:[%s10292_s2 + $0x30] sm:$0xff]   ;;  %v2364_v18 = vshrl.u32 %v8913_v14, 16  ;;  %v2366_v19 = vshll.u32 %v8913_v14, 16  ;;  %v2371_v20 = vshll.u32 %v8533_v15, 16  ;;  %v8925_v23 = vld [vmem:[%s8867_s14 + $0x18] sm:$0xff]   ;;  %v8941_v33 = vld [vmem:[%s8867_s14 + $0x24] sm:$0xff]  }
  0x1d   : > { %7068 = vmatpush3.bf16.msra.mxu1 %v8517_v3  ;;  %v8528_v17 = vld [vmem:[%s10293_s3 + $0x130] sm:$0xff]   ;;  %v8537_v24 = vld [vmem:[%s8867_s14 + $0x20] ss:$0 sps:$4 sm:$0x11]   ;;  %v8529_v25 = vld [vmem:[%s10292_s2 + $0x38] sm:$0xff]   ;;  %v2376_v28 = vshrl.u32 %v8925_v23, 16 }
  0x1e   : > { %7500 = vmatpush3.bf16.msra.mxu0 %v8518_v4  ;;  %7069 = vmatprep.subr.bf16.mxu1 %v8519_v5  ;;  %v2368_v21 = vrot.slane %v2366_v19, 1  ;;  %v2373_v22 = vrot.slane %v2371_v20, 1  ;;  %v8530_v27 = vld [vmem:[%s10293_s3 + $0x138] sm:$0xff]   ;;  %v2378_v29 = vshll.u32 %v8925_v23, 16  ;;  %v2383_v30 = vshll.u32 %v8537_v24, 16  ;;  %v8534_v35 = vld [vmem:[%s8862_s11 + $0xc] sm:$0xff]  }
  0x1f   : > { %7501 = vmatprep.subr.bf16.mxu0 %v8520_v6  ;;  %v8541_v34 = vld [vmem:[%s8867_s14 + $0x2c] ss:$0 sps:$4 sm:$0x11]   ;;  %v8535_v36 = vld [vmem:[%s10293_s3] sm:$0xff]   ;;  %v2388_v40 = vshrl.u32 %v8941_v33, 16  ;;  %v2390_v41 = vshll.u32 %v8941_v33, 16 }
  0x20   : > { %v2369_v26 = vor.u32 %v2368_v21, %v2364_v18  ;;  %v2380_v32 = vrot.slane %v2378_v29, 1  ;;  %v2385_v37 = vrot.slane %v2383_v30, 1  ;;  %v8538_v39 = vld [vmem:[%s10292_s2 + $0x1c0] sm:$0xff]   ;;  %v2395_v42 = vshll.u32 %v8541_v34, 16  ;;  %v8954_v43 = vld [vmem:[%s8862_s11 + $0x18] sm:$0xff]   ;;  %v8543_v46 = vld [vmem:[%s10293_s3 + $0x8] sm:$0xff]  }
  0x21   : > { %7070 = vmatpush3.bf16.msra.mxu1 %v8519_v5  ;;  %v2392_v44 = vrot.slane %v2390_v41, 1  ;;  %v8960_v47 = vld [vmem:[%s8867_s14 + $0x30] sm:$0xff]   ;;  %v8545_v49 = vld [vmem:[%s8867_s14 + $0x38] ss:$0 sps:$4 sm:$0x11]   ;;  %v8546_v50 = vld [vmem:[%s10292_s2 + $0x1c8] sm:$0xff]  }
  0x22   : > { %7502 = vmatpush3.bf16.msra.mxu0 %v8520_v6  ;;  %7071 = vmatprep.subr.bf16.mxu1 %v8521_v7  ;;  %v8937_v31 = vsel %vm2142_vm0, %v2369_v26, %v2373_v22  ;;  %v2381_v38 = vor.u32 %v2380_v32, %v2376_v28  ;;  %v2397_v45 = vrot.slane %v2395_v42, 1  ;;  %v2400_v52 = vshrl.u32 %v8960_v47, 16  ;;  %v8972_v55 = vld [vmem:[%s8867_s14 + $0x3c] sm:$0xff]   ;;  %v8980_v58 = vld [vmem:[%s8862_s11 + $0x24] sm:$0xff]   ;;  %v8987_v0 = vld [vmem:[%s8862_s11 + $0x30] sm:$0xff]  }
  0x23   : > { %7503 = vmatprep.subr.bf16.mxu0 %v8522_v8  ;;  %10337 = vst [vmem:[#allocation2_spill] sm:$0xff] %v8937_v31  ;;  %7513 = vmatprep.mubr.bf16.mxu0 %v8937_v31  ;;  %v2393_v51 = vor.u32 %v2392_v44, %v2388_v40  ;;  %v2402_v53 = vshll.u32 %v8960_v47, 16  ;;  %v2407_v54 = vshll.u32 %v8545_v49, 16  ;;  %v8549_v60 = vld [vmem:[%s8867_s14 + $0x44] ss:$0 sps:$4 sm:$0x11]  }
  0x24   : > { %v8963_v48 = vsel %vm2142_vm0, %v2381_v38, %v2385_v37  ;;  %v2412_v61 = vshrl.u32 %v8972_v55, 16  ;;  %v2414_v62 = vshll.u32 %v8972_v55, 16  ;;  %v2419_v2 = vshll.u32 %v8549_v60, 16  ;;  %v8551_v3 = vld [vmem:[%s10293_s3 + $0x10] sm:$0xff]   ;;  %v8993_v4 = vld [vmem:[%s8867_s14 + $0x48] sm:$0xff]   ;;  %v8559_v26 = vld [vmem:[%s10293_s3 + $0x18] sm:$0xff]  }
  0x25   : > { %7072 = vmatpush3.bf16.msra.mxu1 %v8521_v7  ;;  %10338 = vst [vmem:[#allocation3_spill] sm:$0xff] %v8963_v48  ;;  %v8976_v56 = vsel %vm2142_vm0, %v2393_v51, %v2397_v45  ;;  %v2404_v57 = vrot.slane %v2402_v53, 1  ;;  %v2409_v59 = vrot.slane %v2407_v54, 1  ;;  %v9015_v19 = vld [vmem:[%s8867_s14 + $0x54] sm:$0xff]   ;;  %v9018_v20 = vld [vmem:[%s8862_s11 + $0x48] sm:$0xff]   ;;  %v9030_v29 = vld [vmem:[%s8867_s14 + $0x60] sm:$0xff]  }
  0x26   : > { %7504 = vmatpush3.bf16.msra.mxu0 %v8522_v8  ;;  %7073 = vmatprep.subr.bf16.mxu1 %v8523_v9  ;;  %10339 = vst [vmem:[#allocation4_spill] sm:$0xff] %v8976_v56  ;;  %v2416_v1 = vrot.slane %v2414_v62, 1  ;;  %v2421_v7 = vrot.slane %v2419_v2, 1  ;;  %v8553_v8 = vld [vmem:[%s8867_s14 + $0x50] ss:$0 sps:$4 sm:$0x11]  }
  0x27   : > { %7505 = vmatprep.subr.bf16.mxu0 %v8524_v10  ;;  %v2405_v63 = vor.u32 %v2404_v57, %v2400_v52  ;;  %v2431_v15 = vshll.u32 %v8553_v8, 16  ;;  %v8557_v21 = vld [vmem:[%s8867_s14 + $0x5c] ss:$0 sps:$4 sm:$0x11]   ;;  %v2436_v22 = vshrl.u32 %v9015_v19, 16  ;;  %v2438_v24 = vshll.u32 %v9015_v19, 16 }
  0x28   : > { %v2417_v6 = vor.u32 %v2416_v1, %v2412_v61  ;;  %v8561_v32 = vld [vmem:[%s8867_s14 + $0x68] ss:$0 sps:$4 sm:$0x11]   ;;  %v8562_v37 = vld [vmem:[%s10292_s2 + $0x1d8] sm:$0xff]   ;;  %v2170_v38 = vshll.u32 %v8954_v43, 16  ;;  %v9043_v40 = vld [vmem:[%s8867_s14 + $0x6c] sm:$0xff]  }
  0x29   : > { %7074 = vmatpush3.bf16.msra.mxu1 %v8523_v9  ;;  %v8996_v5 = vsel %vm2142_vm0, %v2405_v63, %v2409_v59  ;;  %v2424_v9 = vshrl.u32 %v8993_v4, 16  ;;  %v2433_v18 = vrot.slane %v2431_v15, 1  ;;  %v2440_v28 = vrot.slane %v2438_v24, 1  ;;  %v9049_v42 = vld [vmem:[%s8862_s11 + $0x54] sm:$0xff]   ;;  %v8567_v57 = vld [vmem:[%s10293_s3 + $0x20] sm:$0xff]  }
  0x2a   : > { %7506 = vmatpush3.bf16.msra.mxu0 %v8524_v10  ;;  %7075 = vmatprep.subr.bf16.mxu1 %v8525_v11  ;;  %10340 = vst [vmem:[#allocation5_spill] sm:$0xff] %v8996_v5  ;;  %v2426_v10 = vshll.u32 %v8993_v4, 16  ;;  %v8565_v49 = vld [vmem:[%s8867_s14 + $0x74] ss:$0 sps:$4 sm:$0x11]   ;;  %v2462_v51 = vshll.u32 %v9043_v40, 16 }
  0x2b   : > { %7507 = vmatprep.subr.bf16.mxu0 %v8526_v12  ;;  %v2441_v34 = vor.u32 %v2440_v28, %v2436_v22  ;;  %v2467_v54 = vshll.u32 %v8565_v49, 16  ;;  %v9062_v59 = vld [vmem:[%s8867_s14 + $0x78] sm:$0xff]   ;;  %v8569_v63 = vld [vmem:[%s8867_s14 + $0x80] ss:$0 sps:$4 sm:$0x11]   ;;  %v8575_v28 = vld [vmem:[%s10293_s3 + $0x28] sm:$0xff]  }
  0x2c   : > { %v2428_v13 = vrot.slane %v2426_v10, 1  ;;  %v2464_v53 = vrot.slane %v2462_v51, 1  ;;  %v2472_v1 = vshrl.u32 %v9062_v59, 16  ;;  %v2474_v2 = vshll.u32 %v9062_v59, 16  ;;  %v9082_v10 = vld [vmem:[%s8862_s11 + $0x6c] sm:$0xff]  }
  0x2d   : > { %7076 = vmatpush3.bf16.msra.mxu1 %v8525_v11  ;;  %v8554_v11 = vld [vmem:[%s10292_s2 + $0x1d0] sm:$0xff]   ;;  %v2469_v62 = vrot.slane %v2467_v54, 1 }
  0x2e   : > { %7508 = vmatpush3.bf16.msra.mxu0 %v8526_v12  ;;  %7077 = vmatprep.subr.bf16.mxu1 %v8527_v16  ;;  %v9006_v12 = vsel %vm2142_vm0, %v2417_v6, %v2421_v7  ;;  %v2168_v6 = vshrl.u32 %v8954_v43, 16  ;;  %v2476_v8 = vrot.slane %v2474_v2, 1 }
  0x2f   : > { %7509 = vmatprep.subr.bf16.mxu0 %v8528_v17  ;;  %10341 = vst [vmem:[#allocation6_spill] sm:$0xff] %v9006_v12 }
  0x31   : > { %7078 = vmatpush3.bf16.msra.mxu1 %v8527_v16  ;;  %v9012_v16 = vld [vmem:[%s8862_s11 + $0x3c] sm:$0xff]  }
  0x32   : > { %7510 = vmatpush3.bf16.msra.mxu0 %v8528_v17  ;;  %7079 = vmatprep.subr.bf16.mxu1 %v8529_v25  ;;  %v2429_v17 = vor.u32 %v2428_v13, %v2424_v9  ;;  %v2479_v9 = vshll.u32 %v8569_v63, 16  ;;  %v2477_v13 = vor.u32 %v2476_v8, %v2472_v1  ;;  %v9134_v8 = vld [vmem:[%s8867_s14 + $0xa8] sm:$0xff]  }
  0x33   : > { %7511 = vmatprep.subr.bf16.mxu0 %v8530_v27 }
  0x34   : > { %v2481_v15 = vrot.slane %v2479_v9, 1 }
  0x35   : > { %7080 = vmatpush3.bf16.msra.mxu1 %v8529_v25  ;;  %v2443_v25 = vshll.u32 %v8557_v21, 16  ;;  %v8573_v21 = vld [vmem:[%s8867_s14 + $0x8c] ss:$0 sps:$4 sm:$0x11]  }
  0x36   : > { %7512 = vmatpush3.bf16.msra.mxu0 %v8530_v27  ;;  %7113 = vmatprep.subr.bf16.mxu1 %v8535_v36  ;;  %v9027_v27 = vsel %vm2142_vm0, %v2429_v17, %v2433_v18  ;;  %v9087_v17 = vld [vmem:[%s8867_s14 + $0x84] sm:$0xff]   ;;  %v9090_v18 = vld [vmem:[%s8862_s11 + $0x78] sm:$0xff]  }
  0x37   : > { %7545 = vmatprep.subr.bf16.mxu0 %v8538_v39  ;;  %10342 = vst [vmem:[#allocation7_spill] sm:$0xff] %v9027_v27  ;;  %v2445_v30 = vrot.slane %v2443_v25, 1  ;;  %v2484_v22 = vshrl.u32 %v9087_v17, 16  ;;  %v2486_v24 = vshll.u32 %v9087_v17, 16  ;;  %v9096_v25 = vsel %vm2142_vm0, %v2477_v13, %v2481_v15 }
  0x38   : > { %7082 = vmatmul.mubr.bf16.vlgmr.msra.gmra.mrb[0].mxu1 %v8534_v35  ;;  %v2448_v35 = vshrl.u32 %v9030_v29, 16  ;;  %10346 = vst [vmem:[#allocation11_spill] sm:$0xff] %v9096_v25 }
  0x39   : > { %7514 = vmatmul.mubr.bf16.vlgmr.msra.gmra.mrb[0].mxu0 %v8963_v48  ;;  %7114 = vmatpush3.bf16.msra.mxu1 %v8535_v36  ;;  %v2450_v36 = vshll.u32 %v9030_v29, 16  ;;  %v9046_v41 = vsel %vm2142_vm0, %v2441_v34, %v2445_v30  ;;  %v2488_v30 = vrot.slane %v2486_v24, 1  ;;  %v2522_v24 = vshll.u32 %v9134_v8, 16 }
  0x3a   : > { %7546 = vmatpush3.bf16.msra.mxu0 %v8538_v39  ;;  %7085 = vmatprep.mubr.bf16.mxu1 %v8954_v43  ;;  %v2455_v39 = vshll.u32 %v8561_v32, 16  ;;  %10343 = vst [vmem:[#allocation8_spill] sm:$0xff] %v9046_v41  ;;  %v9102_v32 = vld [vmem:[%s8867_s14 + $0x90] sm:$0xff]   ;;  %v2192_v43 = vshrl.u32 %v8987_v0, 16 }
  0x3b   : > { %7517 = vmatprep.mubr.bf16.mxu0 %v8976_v56  ;;  %7115 = vmatprep.subr.bf16.mxu1 %v8543_v46  ;;  %v2452_v44 = vrot.slane %v2450_v36, 1  ;;  %v2489_v36 = vor.u32 %v2488_v30, %v2484_v22  ;;  %v2520_v22 = vshrl.u32 %v9134_v8, 16 }
  0x3c   : > { %7547 = vmatprep.subr.bf16.mxu0 %v8546_v50  ;;  %v2457_v45 = vrot.slane %v2455_v39, 1  ;;  %v8578_v39 = vld [vmem:[%s10292_s2 + $0x1e8] sm:$0xff]  }
  0x3d   : > { %7116 = vmatpush3.bf16.msra.mxu1 %v8543_v46  ;;  %v9053_v46 = vld [vmem:[%s8862_s11 + $0x60] sm:$0xff]   ;;  %v2453_v52 = vor.u32 %v2452_v44, %v2448_v35  ;;  %v8577_v35 = vld [vmem:[%s8867_s14 + $0x98] ss:$0 sps:$4 sm:$0x11]   ;;  %v2182_v44 = vshll.u32 %v8980_v58, 16 }
  0x3e   : > { %7548 = vmatpush3.bf16.msra.mxu0 %v8546_v50  ;;  %7117 = vmatprep.subr.bf16.mxu1 %v8551_v3  ;;  %v2460_v50 = vshrl.u32 %v9043_v40, 16  ;;  %v2503_v49 = vshll.u32 %v8577_v35, 16 }
  0x3f   : > { %7549 = vmatprep.subr.bf16.mxu0 %v8554_v11  ;;  %v9065_v60 = vsel %vm2142_vm0, %v2453_v52, %v2457_v45  ;;  %v9115_v45 = vld [vmem:[%s8862_s11 + $0x84] sm:$0xff]  }
  0x40   : > { %7086 = vmatmul.mubr.bf16.gmra.mrb[4].mxu1 %v8980_v58  ;;  %10344 = vst [vmem:[#allocation9_spill] sm:$0xff] %v9065_v60  ;;  %v2465_v61 = vor.u32 %v2464_v53, %v2460_v50  ;;  %v9118_v50 = vld [vmem:[%s8867_s14 + $0x9c] sm:$0xff]   ;;  %v9124_v53 = vld [vmem:[%s8862_s11 + $0x90] sm:$0xff]   ;;  %v2505_v54 = vrot.slane %v2503_v49, 1 }
  0x41   : > { %7518 = vmatmul.mubr.bf16.gmra.mrb[4].mxu0 %v8996_v5  ;;  %7089 = vmatprep.mubr.bf16.mxu1 %v8987_v0  ;;  %v9157_v49 = vld [vmem:[%s8867_s14 + $0xb4] sm:$0xff]  }
  0x42   : > { %7521 = vmatprep.mubr.bf16.mxu0 %v9006_v12  ;;  %7118 = vmatpush3.bf16.msra.mxu1 %v8551_v3  ;;  %v8570_v3 = vld [vmem:[%s10292_s2 + $0x1e0] sm:$0xff]   ;;  %v9078_v7 = vsel %vm2142_vm0, %v2465_v61, %v2469_v62  ;;  %v2508_v61 = vshrl.u32 %v9118_v50, 16  ;;  %v2510_v62 = vshll.u32 %v9118_v50, 16 }
  0x43   : > { %7550 = vmatpush3.bf16.msra.mxu0 %v8554_v11  ;;  %7119 = vmatprep.subr.bf16.mxu1 %v8559_v26  ;;  %10345 = vst [vmem:[#allocation10_spill] sm:$0xff] %v9078_v7  ;;  %v9084_v11 = vrot.slane %v2170_v38, 1  ;;  %v2498_v38 = vshll.u32 %v9102_v32, 16 }
  0x44   : > { %7551 = vmatprep.subr.bf16.mxu0 %v8562_v37  ;;  %v2512_v1 = vrot.slane %v2510_v62, 1  ;;  %v2534_v62 = vshll.u32 %v9157_v49, 16 }
  0x45   : > { %v2500_v52 = vrot.slane %v2498_v38, 1 }
  0x46   : > { %7120 = vmatpush3.bf16.msra.mxu1 %v8559_v26  ;;  %v2491_v26 = vshll.u32 %v8573_v21, 16  ;;  %v2513_v13 = vor.u32 %v2512_v1, %v2508_v61  ;;  %v8585_v21 = vld [vmem:[%s8867_s14 + $0xb0] ss:$0 sps:$4 sm:$0x11]   ;;  %v2532_v61 = vshrl.u32 %v9157_v49, 16  ;;  %v2536_v1 = vrot.slane %v2534_v62, 1 }
  0x47   : > { %7552 = vmatpush3.bf16.msra.mxu0 %v8562_v37  ;;  %7121 = vmatprep.subr.bf16.mxu1 %v8567_v57  ;;  %v2496_v37 = vshrl.u32 %v9102_v32, 16  ;;  %v2527_v35 = vshll.u32 %v8585_v21, 16  ;;  %v9177_v21 = vld [vmem:[%s8862_s11 + $0xb4] sm:$0xff]  }
  0x48   : > { %7090 = vmatmul.mubr.bf16.gmra.mrb[8].mxu1 %v9012_v16  ;;  %7553 = vmatprep.subr.bf16.mxu0 %v8570_v3  ;;  %v2493_v34 = vrot.slane %v2491_v26, 1  ;;  %v8586_v26 = vld [vmem:[%s10292_s2 + $0x1f0] sm:$0xff]  }
  0x49   : > { %7522 = vmatmul.mubr.bf16.gmra.mrb[8].mxu0 %v9027_v27  ;;  %7093 = vmatprep.mubr.bf16.mxu1 %v9018_v20  ;;  %v2501_v63 = vor.u32 %v2500_v52, %v2496_v37  ;;  %v2184_v37 = vrot.slane %v2182_v44, 1  ;;  %v9160_v52 = vld [vmem:[%s8862_s11 + $0xa8] sm:$0xff]   ;;  %v8591_v44 = vld [vmem:[%s10293_s3 + $0x38] sm:$0xff]  }
  0x4a   : > { %7525 = vmatprep.mubr.bf16.mxu0 %v9046_v41  ;;  %7122 = vmatpush3.bf16.msra.mxu1 %v8567_v57  ;;  %v9121_v51 = vsel %vm2142_vm0, %v2489_v36, %v2493_v34  ;;  %v8581_v57 = vld [vmem:[%s8867_s14 + $0xa4] ss:$0 sps:$4 sm:$0x11]   ;;  %v2524_v34 = vrot.slane %v2522_v24, 1  ;;  %v9154_v36 = vld [vmem:[%s8862_s11 + $0x9c] sm:$0xff]  }
  0x4b   : > { %7554 = vmatpush3.bf16.msra.mxu0 %v8570_v3  ;;  %7123 = vmatprep.subr.bf16.mxu1 %v8575_v28  ;;  %10347 = vst [vmem:[#allocation12_spill] sm:$0xff] %v9121_v51  ;;  %v2515_v2 = vshll.u32 %v8581_v57, 16  ;;  %v8583_v3 = vld [vmem:[%s10293_s3 + $0x30] sm:$0xff]   ;;  %v9137_v9 = vsel %vm2142_vm0, %v2501_v63, %v2505_v54  ;;  %v8589_v54 = vld [vmem:[%s8867_s14 + $0xbc] ss:$0 sps:$4 sm:$0x11]  }
  0x4c   : > { %7555 = vmatprep.subr.bf16.mxu0 %v8578_v39  ;;  %10348 = vst [vmem:[#allocation13_spill] sm:$0xff] %v9137_v9  ;;  %v2525_v38 = vor.u32 %v2524_v34, %v2520_v22  ;;  %v2539_v63 = vshll.u32 %v8589_v54, 16 }
  0x4d   : > { %v2517_v15 = vrot.slane %v2515_v2, 1  ;;  %v8592_v2 = vld [vmem:[%s8867_s14 + $0xc0] sm:$0xff]  }
  0x4e   : > { %7124 = vmatpush3.bf16.msra.mxu1 %v8575_v28  ;;  %v2180_v28 = vshrl.u32 %v8980_v58, 16  ;;  %v3089_v22 = vshrl.u32 %v8592_v2, 16  ;;  %v3091_v24 = vshll.u32 %v8592_v2, 16  ;;  %v8601_v58 = vld [vmem:[%s10292_s2 + $0xc8] sm:$0xff]  }
  0x4f   : > { %7556 = vmatpush3.bf16.msra.mxu0 %v8578_v39  ;;  %7125 = vmatprep.subr.bf16.mxu1 %v8583_v3  ;;  %v9150_v30 = vsel %vm2142_vm0, %v2513_v13, %v2517_v15  ;;  %v2529_v39 = vrot.slane %v2527_v35, 1  ;;  %v8593_v13 = vld [vmem:[%s8867_s14 + $0xc8] ss:$0 sps:$4 sm:$0x11]   ;;  %v2537_v15 = vor.u32 %v2536_v1, %v2532_v61  ;;  %v8595_v35 = vld [vmem:[%s8867_s14] sm:$0xff]   ;;  %v2173_v1 = vor.u32 %v9084_v11, %v2168_v6 }
  0x50   : > { %7094 = vmatmul.mubr.bf16.gmra.mrb[12].mxu1 %v9049_v42  ;;  %10349 = vst [vmem:[#allocation14_spill] sm:$0xff] %v9150_v30  ;;  %7557 = vmatprep.subr.bf16.mxu0 %v8586_v26  ;;  %v3096_v34 = vshll.u32 %v8593_v13, 16  ;;  %v3093_v54 = vrot.slane %v3091_v24, 1  ;;  %v8596_v61 = vld [vmem:[%s8862_s11 + $0x20] ss:$0 sps:$4 sm:$0x11]  }
  0x51   : > { %7526 = vmatmul.mubr.bf16.gmra.mrb[12].mxu0 %v9065_v60  ;;  %7097 = vmatprep.mubr.bf16.mxu1 %v9053_v46  ;;  %v9164_v57 = vsel %vm2142_vm0, %v2525_v38, %v2529_v39  ;;  %v8597_v38 = vld [vmem:[%s10292_s2 + $0xc0] sm:$0xff]   ;;  %v2175_v2 = vshll.u32 %v8596_v61, 16  ;;  %v2194_v13 = vshll.u32 %v8987_v0, 16  ;;  %v2206_v11 = vshll.u32 %v9012_v16, 16 }
  0x52   : > { %7529 = vmatprep.mubr.bf16.mxu0 %v9078_v7  ;;  %7126 = vmatpush3.bf16.msra.mxu1 %v8583_v3  ;;  %10350 = vst [vmem:[#allocation15_spill] sm:$0xff] %v9164_v57  ;;  %v2541_v3 = vrot.slane %v2539_v63, 1  ;;  %v3098_v62 = vrot.slane %v3096_v34, 1  ;;  %v8599_v63 = vld [vmem:[%s10293_s3 + $0x1c0] sm:$0xff]   ;;  %v2218_v0 = vshll.u32 %v9018_v20, 16 }
  0x53   : > { %7558 = vmatpush3.bf16.msra.mxu0 %v8586_v26  ;;  %7127 = vmatprep.subr.bf16.mxu1 %v8591_v44  ;;  %v8594_v26 = vld [vmem:[%s10292_s2 + $0x1f8] sm:$0xff]   ;;  %v2177_v24 = vrot.slane %v2175_v2, 1  ;;  %v2196_v6 = vrot.slane %v2194_v13, 1  ;;  %v8604_v13 = vld [vmem:[%s8862_s11 + $0x50] ss:$0 sps:$4 sm:$0x11]  }
  0x54   : > { %v9187_v39 = vsel %vm2142_vm0, %v2537_v15, %v2541_v3  ;;  %7559 = vmatprep.subr.bf16.mxu0 %v8594_v26  ;;  %v8598_v3 = vld [vmem:[%s8862_s11 + $0x2c] ss:$0 sps:$4 sm:$0x11]   ;;  %v8600_v34 = vld [vmem:[%s8862_s11 + $0x38] ss:$0 sps:$4 sm:$0x11]  }
  0x55   : > { %10351 = vst [vmem:[#allocation16_spill] sm:$0xff] %v9187_v39  ;;  %v2197_v2 = vor.u32 %v2196_v6, %v2192_v43  ;;  %v8605_v43 = vld [vmem:[%s10292_s2 + $0xd0] sm:$0xff]  }
  0x56   : > { %7128 = vmatpush3.bf16.msra.mxu1 %v8591_v44  ;;  %v3094_v44 = vor.u32 %v3093_v54, %v3089_v22  ;;  %v9208_v22 = vsel %vm2142_vm0, %v2173_v1, %v2177_v24  ;;  %v2185_v54 = vor.u32 %v2184_v37, %v2180_v28  ;;  %v2208_v1 = vrot.slane %v2206_v11, 1 }
  0x57   : > { %7560 = vmatpush3.bf16.msra.mxu0 %v8594_v26  ;;  %7161 = vmatprep.subr.bf16.mxu1 %v8597_v38  ;;  %v2187_v26 = vshll.u32 %v8598_v3, 16  ;;  %v2216_v28 = vshrl.u32 %v9018_v20, 16  ;;  %v2220_v37 = vrot.slane %v2218_v0, 1  ;;  %v8606_v20 = vld [vmem:[%s8862_s11 + $0x5c] ss:$0 sps:$4 sm:$0x11]  }
  0x58   : > { %7098 = vmatmul.mubr.bf16.gmra.mrb[16].mxu1 %v9082_v10  ;;  %7593 = vmatprep.subr.bf16.mxu0 %v8599_v63  ;;  %v9201_v15 = vsel %vm2142_vm0, %v3094_v44, %v3098_v62  ;;  %v2199_v62 = vshll.u32 %v8600_v34, 16  ;;  %v8602_v44 = vld [vmem:[%s8862_s11 + $0x44] ss:$0 sps:$4 sm:$0x11]   ;;  %v2230_v11 = vshll.u32 %v9049_v42, 16  ;;  %v2240_v0 = vshrl.u32 %v9053_v46, 16 }
  0x59   : > { %7530 = vmatmul.mubr.bf16.gmra.mrb[16].mxu0 %v9096_v25  ;;  %7101 = vmatprep.mubr.bf16.mxu1 %v9090_v18  ;;  %v2189_v61 = vrot.slane %v2187_v26, 1  ;;  %v2211_v24 = vshll.u32 %v8602_v44, 16  ;;  %v2223_v26 = vshll.u32 %v8604_v13, 16  ;;  %v2242_v44 = vshll.u32 %v9053_v46, 16 }
  0x5a   : > { %7533 = vmatprep.mubr.bf16.mxu0 %v9121_v51  ;;  %v2201_v3 = vrot.slane %v2199_v62, 1  ;;  %v8610_v46 = vld [vmem:[%s8862_s11 + $0x74] ss:$0 sps:$4 sm:$0x11]  }
  0x5b   : > { %v9218_v31 = vsel %vm2142_vm0, %v2185_v54, %v2189_v61  ;;  %v8607_v54 = vld [vmem:[%s10293_s3 + $0x1d0] sm:$0xff]   ;;  %v8608_v61 = vld [vmem:[%s8862_s11 + $0x68] ss:$0 sps:$4 sm:$0x11]   ;;  %v2225_v62 = vrot.slane %v2223_v26, 1  ;;  %v2244_v13 = vrot.slane %v2242_v44, 1 }
  0x5c   : > { %v9226_v34 = vsel %vm2142_vm0, %v2197_v2, %v2201_v3  ;;  %v2232_v2 = vrot.slane %v2230_v11, 1  ;;  %v2235_v3 = vshll.u32 %v8606_v20, 16 }
  0x5d   : > { %v2245_v20 = vor.u32 %v2244_v13, %v2240_v0  ;;  %v2278_v0 = vshll.u32 %v9115_v45, 16 }
  0x5e   : > { %v2237_v26 = vrot.slane %v2235_v3, 1 }
  0x60   : > { %7102 = vmatmul.mubr.bf16.gmra.mrb[20].mxu1 %v9115_v45 }
  0x61   : > { %7534 = vmatmul.mubr.bf16.gmra.mrb[20].mxu0 %v9137_v9  ;;  %7105 = vmatprep.mubr.bf16.mxu1 %v9124_v53 }
  0x62   : > { %7537 = vmatprep.mubr.bf16.mxu0 %v9150_v30 }
  0x68   : > { %7106 = vmatmul.mubr.bf16.gmra.mrb[24].mxu1 %v9154_v36 }
  0x69   : > { %7538 = vmatmul.mubr.bf16.gmra.mrb[24].mxu0 %v9164_v57  ;;  %7109 = vmatprep.mubr.bf16.mxu1 %v9160_v52 }
  0x6a   : > { %7541 = vmatprep.mubr.bf16.mxu0 %v9187_v39 }
  0x70   : > { %7110 = vmatmul.mubr.bf16.gmra.mrb[28].mxu1 %v9177_v21 }
  0x71   : > { %7542 = vmatmul.mubr.bf16.gmra.mrb[28].mxu0 %v9201_v15  ;;  %7129 = vmatprep.mubr.bf16.mxu1 %v8595_v35  ;;  %v2204_v35 = vshrl.u32 %v9012_v16, 16  ;;  %v8603_v16 = vld [vmem:[%s10293_s3 + $0x1c8] sm:$0xff]  }
  0x72   : > { %7561 = vmatprep.mubr.bf16.mxu0 %v9208_v22 }
  0x73   : > { %v2209_v6 = vor.u32 %v2208_v1, %v2204_v35  ;;  %v2247_v1 = vshll.u32 %v8608_v61, 16  ;;  %v2264_v61 = vshrl.u32 %v9090_v18, 16 }
  0x78   : > { %7130 = vmatmul.mubr.bf16.vlgmr.msra.gmra.mrb[0].mxu1 %v8913_v14  ;;  %v2213_v14 = vrot.slane %v2211_v24, 1  ;;  %v2254_v24 = vshll.u32 %v9082_v10, 16 }
  0x79   : > { %7562 = vmatmul.mubr.bf16.vlgmr.msra.gmra.mrb[0].mxu0 %v9218_v31  ;;  %7162 = vmatpush3.bf16.msra.mxu1 %v8597_v38  ;;  %v2221_v38 = vor.u32 %v2220_v37, %v2216_v28  ;;  %v8612_v28 = vld [vmem:[%s8862_s11 + $0x80] ss:$0 sps:$4 sm:$0x11]  }
  0x7a   : > { %7594 = vmatpush3.bf16.msra.mxu0 %v8599_v63  ;;  %7133 = vmatprep.mubr.bf16.mxu1 %v8925_v23  ;;  %v2228_v23 = vshrl.u32 %v9049_v42, 16  ;;  %v9246_v63 = vsel %vm2142_vm0, %v2209_v6, %v2213_v14  ;;  %v8609_v42 = vld [vmem:[%s10292_s2 + $0xd8] sm:$0xff]   ;;  %v2249_v6 = vrot.slane %v2247_v1, 1  ;;  %v2252_v14 = vshrl.u32 %v9082_v10, 16  ;;  %v8617_v10 = vld [vmem:[%s10292_s2 + $0xe8] sm:$0xff]  }
  0x7b   : > { %7565 = vmatprep.mubr.bf16.mxu0 %v9226_v34  ;;  %7163 = vmatprep.subr.bf16.mxu1 %v8601_v58  ;;  %v9250_v35 = vsel %vm2142_vm0, %v2221_v38, %v2225_v62  ;;  %v2256_v11 = vrot.slane %v2254_v24, 1  ;;  %v2271_v44 = vshll.u32 %v8612_v28, 16  ;;  %v8623_v24 = vld [vmem:[%s10293_s3 + $0x1f0] sm:$0xff]   ;;  %v2280_v28 = vrot.slane %v2278_v0, 1 }
  0x7c   : > { %7595 = vmatprep.subr.bf16.mxu0 %v8603_v16  ;;  %10352 = vst [vmem:[#allocation17_spill] sm:$0xff] %v9250_v35  ;;  %v2233_v37 = vor.u32 %v2232_v2, %v2228_v23  ;;  %v9278_v62 = vsel %vm2142_vm0, %v2245_v20, %v2249_v6  ;;  %v8619_v23 = vld [vmem:[%s10293_s3 + $0x1e8] sm:$0xff]  }
  0x7d   : > { %7164 = vmatpush3.bf16.msra.mxu1 %v8601_v58  ;;  %v8611_v58 = vld [vmem:[%s10293_s3 + $0x1d8] sm:$0xff]   ;;  %10354 = vst [vmem:[#allocation19_spill] sm:$0xff] %v9278_v62  ;;  %v2257_v2 = vor.u32 %v2256_v11, %v2252_v14  ;;  %v2273_v1 = vrot.slane %v2271_v44, 1  ;;  %v9326_v11 = vld [vmem:[%s8862_s11 + $0xb0] ss:$0 sps:$4 sm:$0x11]  }
  0x7e   : > { %7596 = vmatpush3.bf16.msra.mxu0 %v8603_v16  ;;  %7165 = vmatprep.subr.bf16.mxu1 %v8605_v43  ;;  %v2266_v16 = vshll.u32 %v9090_v18, 16  ;;  %v8614_v18 = vld [vmem:[%s8862_s11 + $0x8c] ss:$0 sps:$4 sm:$0x11]   ;;  %v2300_v44 = vshrl.u32 %v9154_v36, 16 }
  0x7f   : > { %7597 = vmatprep.subr.bf16.mxu0 %v8607_v54 }
  0x80   : > { %7134 = vmatmul.mubr.bf16.gmra.mrb[4].mxu1 %v8941_v33  ;;  %v8613_v33 = vld [vmem:[%s10292_s2 + $0xe0] sm:$0xff]   ;;  %v2268_v38 = vrot.slane %v2266_v16, 1  ;;  %v2288_v16 = vshrl.u32 %v9124_v53, 16 }
  0x81   : > { %7566 = vmatmul.mubr.bf16.gmra.mrb[4].mxu0 %v9246_v63  ;;  %7137 = vmatprep.mubr.bf16.mxu1 %v8960_v47  ;;  %v8615_v47 = vld [vmem:[%s10293_s3 + $0x1e0] sm:$0xff]  }
  0x82   : > { %7569 = vmatprep.mubr.bf16.mxu0 %v9250_v35  ;;  %7166 = vmatpush3.bf16.msra.mxu1 %v8605_v43  ;;  %v9274_v43 = vsel %vm2142_vm0, %v2233_v37, %v2237_v26  ;;  %v2269_v13 = vor.u32 %v2268_v38, %v2264_v61  ;;  %v2283_v37 = vshll.u32 %v8614_v18, 16  ;;  %v9339_v18 = vld [vmem:[%s10292_s2 + $0x80] sm:$0xff]  }
  0x83   : > { %7598 = vmatpush3.bf16.msra.mxu0 %v8607_v54  ;;  %7167 = vmatprep.subr.bf16.mxu1 %v8609_v42  ;;  %10353 = vst [vmem:[#allocation18_spill] sm:$0xff] %v9274_v43  ;;  %v2259_v54 = vshll.u32 %v8610_v46, 16 }
  0x84   : > { %7599 = vmatprep.subr.bf16.mxu0 %v8611_v58  ;;  %v9307_v26 = vsel %vm2142_vm0, %v2269_v13, %v2273_v1  ;;  %v2285_v14 = vrot.slane %v2283_v37, 1  ;;  %v9350_v1 = vld [vmem:[%s8862_s11 + $0xbc] ss:$0 sps:$4 sm:$0x11]  }
  0x85   : > { %v2261_v3 = vrot.slane %v2259_v54, 1  ;;  %10356 = vst [vmem:[#allocation21_spill] sm:$0xff] %v9307_v26  ;;  %v2314_v54 = vshll.u32 %v9160_v52, 16 }
  0x86   : > { %7168 = vmatpush3.bf16.msra.mxu1 %v8609_v42  ;;  %v2290_v42 = vshll.u32 %v9124_v53, 16  ;;  %v2302_v53 = vshll.u32 %v9154_v36, 16  ;;  %v2319_v36 = vshll.u32 %v9326_v11, 16 }
  0x87   : > { %7600 = vmatpush3.bf16.msra.mxu0 %v8611_v58  ;;  %7169 = vmatprep.subr.bf16.mxu1 %v8613_v33  ;;  %v2276_v58 = vshrl.u32 %v9115_v45, 16  ;;  %v9304_v46 = vsel %vm2142_vm0, %v2257_v2, %v2261_v3  ;;  %v9313_v45 = vld [vmem:[%s8862_s11 + $0xa4] ss:$0 sps:$4 sm:$0x11]   ;;  %v2312_v3 = vshrl.u32 %v9160_v52, 16  ;;  %v2316_v0 = vrot.slane %v2314_v54, 1 }
  0x88   : > { %7138 = vmatmul.mubr.bf16.gmra.mrb[8].mxu1 %v8972_v55  ;;  %7601 = vmatprep.subr.bf16.mxu0 %v8615_v47  ;;  %v9293_v55 = vld [vmem:[%s8862_s11 + $0x98] ss:$0 sps:$4 sm:$0x11]   ;;  %10355 = vst [vmem:[#allocation20_spill] sm:$0xff] %v9304_v46  ;;  %v2292_v20 = vrot.slane %v2290_v42, 1  ;;  %v9353_v42 = vld [vmem:[%s8862_s11 + $0xc0] sm:$0xff]  }
  0x89   : > { %7570 = vmatmul.mubr.bf16.gmra.mrb[8].mxu0 %v9274_v43  ;;  %7141 = vmatprep.mubr.bf16.mxu1 %v8993_v4  ;;  %v8621_v4 = vld [vmem:[%s10292_s2 + $0xf0] sm:$0xff]   ;;  %v2295_v6 = vshll.u32 %v9293_v55, 16  ;;  %v2326_v52 = vshll.u32 %v9177_v21, 16  ;;  %v2321_v37 = vrot.slane %v2319_v36, 1  ;;  %v9749_v43 = vld [vmem:[%s8867_s14 + $0xc0] sm:$0xff]  }
  0x8a   : > { %7573 = vmatprep.mubr.bf16.mxu0 %v9278_v62  ;;  %7170 = vmatpush3.bf16.msra.mxu1 %v8613_v33  ;;  %v8626_v33 = vld [vmem:[%s10292_s2 + $0xf8] sm:$0xff]   ;;  %v2293_v61 = vor.u32 %v2292_v20, %v2288_v16  ;;  %v3078_v16 = vshll.u32 %v9353_v42, 16  ;;  %v8628_v54 = vld [vmem:[%s8862_s11 + $0xd4] ss:$0 sps:$4 sm:$0x11]  }
  0x8b   : > { %7602 = vmatpush3.bf16.msra.mxu0 %v8615_v47  ;;  %7171 = vmatprep.subr.bf16.mxu1 %v8617_v10  ;;  %v8629_v47 = vld [vmem:[%s10293_s3 + $0x1f8] sm:$0xff]   ;;  %v2297_v38 = vrot.slane %v2295_v6, 1  ;;  %v2328_v20 = vrot.slane %v2326_v52, 1  ;;  %v2331_v6 = vshll.u32 %v9350_v1, 16 }
  0x8c   : > { %7603 = vmatprep.subr.bf16.mxu0 %v8619_v23 }
  0x8d   : > { %v9346_v13 = vsel %vm2142_vm0, %v2293_v61, %v2297_v38 }
  0x8e   : > { %7172 = vmatpush3.bf16.msra.mxu1 %v8617_v10  ;;  %v2307_v10 = vshll.u32 %v9313_v45, 16  ;;  %10358 = vst [vmem:[#allocation23_spill] sm:$0xff] %v9346_v13 }
  0x8f   : > { %7604 = vmatpush3.bf16.msra.mxu0 %v8619_v23  ;;  %7173 = vmatprep.subr.bf16.mxu1 %v8621_v4  ;;  %v2304_v23 = vrot.slane %v2302_v53, 1  ;;  %v8627_v53 = vld [vmem:[%s8862_s11 + $0xcc] sm:$0xff]  }
  0x90   : > { %7142 = vmatmul.mubr.bf16.gmra.mrb[12].mxu1 %v9015_v19  ;;  %7605 = vmatprep.subr.bf16.mxu0 %v8623_v24  ;;  %v2281_v19 = vor.u32 %v2280_v28, %v2276_v58  ;;  %v2309_v58 = vrot.slane %v2307_v10, 1  ;;  %v2317_v28 = vor.u32 %v2316_v0, %v2312_v3  ;;  %v3618_v0 = vshrl.u32 %v8627_v53, 16 }
  0x91   : > { %7574 = vmatmul.mubr.bf16.gmra.mrb[12].mxu0 %v9304_v46  ;;  %7145 = vmatprep.mubr.bf16.mxu1 %v9030_v29  ;;  %v9332_v29 = vld [vmem:[%s10293_s3 + $0xc0] sm:$0xff]  }
  0x92   : > { %7577 = vmatprep.mubr.bf16.mxu0 %v9307_v26  ;;  %7174 = vmatpush3.bf16.msra.mxu1 %v8621_v4  ;;  %v9342_v2 = vsel %vm2142_vm0, %v2281_v19, %v2285_v14  ;;  %v8625_v4 = vld [vmem:[%s8862_s11 + $0xc8] ss:$0 sps:$4 sm:$0x11]   ;;  %v3076_v19 = vshrl.u32 %v9353_v42, 16  ;;  %v3080_v14 = vrot.slane %v3078_v16, 1  ;;  %v8637_v16 = vld [vmem:[%s10292_s2 + $0x98] sm:$0xff]  }
  0x93   : > { %7606 = vmatpush3.bf16.msra.mxu0 %v8623_v24  ;;  %7175 = vmatprep.subr.bf16.mxu1 %v8626_v33  ;;  %10357 = vst [vmem:[#allocation22_spill] sm:$0xff] %v9342_v2  ;;  %v2305_v24 = vor.u32 %v2304_v23, %v2300_v44  ;;  %v3620_v44 = vshll.u32 %v8627_v53, 16  ;;  %v3625_v23 = vshll.u32 %v8628_v54, 16  ;;  %v9446_v53 = vld [vmem:[%s8862_s11 + $0x48] sm:$0xff]   ;;  %v8642_v54 = vld [vmem:[%s10293_s3 + $0xf0] sm:$0xff]  }
  0x94   : > { %7607 = vmatprep.subr.bf16.mxu0 %v8629_v47  ;;  %v3081_v10 = vor.u32 %v3080_v14, %v3076_v19  ;;  %v8641_v19 = vld [vmem:[%s10292_s2 + $0xa8] sm:$0xff]   ;;  %v9454_v14 = vld [vmem:[%s8862_s11 + $0x54] sm:$0xff]  }
  0x95   : > { %v3622_v36 = vrot.slane %v3620_v44, 1  ;;  %v8647_v44 = vld [vmem:[%s10292_s2 + $0xb8] sm:$0xff]   ;;  %v9728_v26 = vld [vmem:[%s8867_s14 + $0xa8] sm:$0xff]  }
  0x96   : > { %7176 = vmatpush3.bf16.msra.mxu1 %v8626_v33  ;;  %v9367_v33 = vsel %vm2142_vm0, %v2305_v24, %v2309_v58  ;;  %v9392_v24 = vld [vmem:[%s8862_s11 + $0xc] sm:$0xff]   ;;  %v9403_v58 = vld [vmem:[%s8862_s11 + $0x18] sm:$0xff]  }
  0x97   : > { %7608 = vmatpush3.bf16.msra.mxu0 %v8629_v47  ;;  %7209 = vmatprep.subr.bf16.mxu1 %v9332_v29  ;;  %10359 = vst [vmem:[#allocation24_spill] sm:$0xff] %v9367_v33  ;;  %v9371_v47 = vsel %vm2142_vm0, %v2317_v28, %v2321_v37  ;;  %v8634_v28 = vld [vmem:[%s10293_s3 + $0xd0] sm:$0xff]  }
  0x98   : > { %7146 = vmatmul.mubr.bf16.gmra.mrb[16].mxu1 %v9043_v40  ;;  %7641 = vmatprep.subr.bf16.mxu0 %v9339_v18  ;;  %v2324_v40 = vshrl.u32 %v9177_v21, 16  ;;  %10360 = vst [vmem:[#allocation25_spill] sm:$0xff] %v9371_v47  ;;  %v2333_v21 = vrot.slane %v2331_v6, 1  ;;  %v8635_v37 = vld [vmem:[%s10292_s2 + $0x90] sm:$0xff]   ;;  %v8639_v6 = vld [vmem:[%s10292_s2 + $0xa0] sm:$0xff]  }
  0x99   : > { %7578 = vmatmul.mubr.bf16.gmra.mrb[16].mxu0 %v9342_v2  ;;  %7149 = vmatprep.mubr.bf16.mxu1 %v9062_v59  ;;  %v3083_v59 = vshll.u32 %v8625_v4, 16  ;;  %v3623_v4 = vor.u32 %v3622_v36, %v3618_v0  ;;  %v8651_v0 = vld [vmem:[%s10293_s3 + $0x80] sm:$0xff]   ;;  %v9487_v36 = vld [vmem:[%s8862_s11 + $0x78] sm:$0xff]   ;;  %v9725_v2 = vld [vmem:[%s8867_s14 + $0x8] ss:$0 sps:$4 sm:$0x11]  }
  0x9a   : > { %7581 = vmatprep.mubr.bf16.mxu0 %v9346_v13  ;;  %v2329_v61 = vor.u32 %v2328_v20, %v2324_v40  ;;  %v9432_v40 = vld [vmem:[%s8862_s11 + $0x3c] sm:$0xff]   ;;  %10363 = vst [vmem:[#allocation28_spill] sm:$0xff] %v9725_v2 }
  0x9b   : > { %v3085_v38 = vrot.slane %v3083_v59, 1  ;;  %v8638_v20 = vld [vmem:[%s10293_s3 + $0xe0] sm:$0xff]   ;;  %v8640_v59 = vld [vmem:[%s10293_s3 + $0xe8] sm:$0xff]  }
  0x9c   : > { %v9380_v3 = vsel %vm2142_vm0, %v2329_v61, %v2333_v21  ;;  %v8643_v21 = vld [vmem:[%s10292_s2 + $0xb0] sm:$0xff]   ;;  %v8644_v61 = vld [vmem:[%s10293_s3 + $0xf8] sm:$0xff]  }
  0x9d   : > { %10361 = vst [vmem:[#allocation26_spill] sm:$0xff] %v9380_v3 }
  0xa0   : > { %7150 = vmatmul.mubr.bf16.gmra.mrb[20].mxu1 %v9087_v17  ;;  %v9383_v17 = vsel %vm2142_vm0, %v3081_v10, %v3085_v38  ;;  %v9468_v38 = vld [vmem:[%s8862_s11 + $0x60] sm:$0xff]   ;;  %v9476_v10 = vld [vmem:[%s8862_s11 + $0x6c] sm:$0xff]  }
  0xa1   : > { %7582 = vmatmul.mubr.bf16.gmra.mrb[20].mxu0 %v9367_v33  ;;  %7153 = vmatprep.mubr.bf16.mxu1 %v9102_v32  ;;  %10362 = vst [vmem:[#allocation27_spill] sm:$0xff] %v9383_v17  ;;  %v3627_v32 = vrot.slane %v3625_v23, 1  ;;  %v8649_v23 = vld [vmem:[%s10292_s2 + $0x180] sm:$0xff]   ;;  %v9705_v33 = vld [vmem:[%s8867_s14 + $0x90] sm:$0xff]  }
  0xa2   : > { %7585 = vmatprep.mubr.bf16.mxu0 %v9371_v47 }
  0xa3   : > { %v3628_v52 = vsel %vm2142_vm0, %v3623_v4, %v3627_v32  ;;  %v9492_v32 = vld [vmem:[%s8862_s11 + $0x84] sm:$0xff]   ;;  %v9497_v4 = vld [vmem:[%s8867_s14 + $0xcc] sm:$0xff]  }
  0xa8   : > { %7154 = vmatmul.mubr.bf16.gmra.mrb[24].mxu1 %v9118_v50  ;;  %v8632_v50 = vld [vmem:[%s10293_s3 + $0xc8] sm:$0xff]  }
  0xa9   : > { %7586 = vmatmul.mubr.bf16.gmra.mrb[24].mxu0 %v9380_v3  ;;  %7157 = vmatprep.mubr.bf16.mxu1 %v9134_v8  ;;  %v8633_v8 = vld [vmem:[%s10292_s2 + $0x88] sm:$0xff]   ;;  %v9674_v3 = vld [vmem:[%s10292_s2 + $0x140] sm:$0xff]  }
  0xaa   : > { %7589 = vmatprep.mubr.bf16.mxu0 %v9383_v17 }
  0xb0   : > { %7158 = vmatmul.mubr.bf16.gmra.mrb[28].mxu1 %v9157_v49  ;;  %v9410_v49 = vld [vmem:[%s8862_s11 + $0x24] sm:$0xff]  }
  0xb1   : > { %7590 = vmatmul.mubr.bf16.gmra.mrb[28].mxu0 %v3628_v52  ;;  %7177 = vmatprep.mubr.bf16.mxu1 %v9392_v24  ;;  %v8646_v52 = vld [vmem:[%s8867_s14 + $0xd4] ss:$0 sps:$4 sm:$0x11]  }
  0xb2   : > { %7609 = vmatprep.mubr.bf16.mxu0 %v8963_v48  ;;  %v9669_v48 = vld [vmem:[%s10293_s3 + $0x180] sm:$0xff]  }
  0xb8   : > { %7178 = vmatmul.mubr.bf16.vlgmr.msra.gmra.mrb[0].mxu1 %v9403_v58 }
  0xb9   : > { %7610 = vmatmul.mubr.bf16.vlgmr.msra.gmra.mrb[0].mxu0 %v8976_v56  ;;  %7210 = vmatpush3.bf16.msra.mxu1 %v9332_v29  ;;  %v8636_v29 = vld [vmem:[%s10293_s3 + $0xd8] sm:$0xff]  }
  0xba   : > { %7642 = vmatpush3.bf16.msra.mxu0 %v9339_v18  ;;  %7181 = vmatprep.mubr.bf16.mxu1 %v9410_v49  ;;  %v9424_v18 = vld [vmem:[%s8862_s11 + $0x30] sm:$0xff]  }
  0xbb   : > { %7613 = vmatprep.mubr.bf16.mxu0 %v8996_v5  ;;  %7211 = vmatprep.subr.bf16.mxu1 %v8632_v50  ;;  %v8764_v5 = vld [vmem:[%s8862_s11 + $0x80] ss:$0 sps:$4 sm:$0x11]  }
  0xbc   : > { %7643 = vmatprep.subr.bf16.mxu0 %v8633_v8  ;;  %v4223_v56 = vrot.slane %v8764_v5, 1 }
  0xbd   : > { %7212 = vmatpush3.bf16.msra.mxu1 %v8632_v50  ;;  %v9501_v50 = vld [vmem:[%s8862_s11 + $0x90] sm:$0xff]  }
  0xbe   : > { %7644 = vmatpush3.bf16.msra.mxu0 %v8633_v8  ;;  %7213 = vmatprep.subr.bf16.mxu1 %v8634_v28  ;;  %v9506_v8 = vld [vmem:[%s8862_s11 + $0x9c] sm:$0xff]  }
  0xbf   : > { %7645 = vmatprep.subr.bf16.mxu0 %v8635_v37 }
  0xc0   : > { %7182 = vmatmul.mubr.bf16.gmra.mrb[4].mxu1 %v9424_v18 }
  0xc1   : > { %7614 = vmatmul.mubr.bf16.gmra.mrb[4].mxu0 %v9006_v12  ;;  %7185 = vmatprep.mubr.bf16.mxu1 %v9432_v40  ;;  %v8663_v12 = vld [vmem:[%s10293_s3 + $0xb0] sm:$0xff]  }
  0xc2   : > { %7617 = vmatprep.mubr.bf16.mxu0 %v9027_v27  ;;  %7214 = vmatpush3.bf16.msra.mxu1 %v8634_v28  ;;  %v3633_v28 = vshll.u32 %v9497_v4, 16  ;;  %v8662_v27 = vld [vmem:[%s10292_s2 + $0x1b0] sm:$0xff]  }
  0xc3   : > { %7646 = vmatpush3.bf16.msra.mxu0 %v8635_v37  ;;  %7215 = vmatprep.subr.bf16.mxu1 %v8636_v29  ;;  %v3638_v37 = vshll.u32 %v8646_v52, 16 }
  0xc4   : > { %7647 = vmatprep.subr.bf16.mxu0 %v8637_v16 }
  0xc6   : > { %7216 = vmatpush3.bf16.msra.mxu1 %v8636_v29  ;;  %v9512_v29 = vld [vmem:[%s8862_s11 + $0x8] ss:$0 sps:$4 sm:$0x11]  }
  0xc7   : > { %7648 = vmatpush3.bf16.msra.mxu0 %v8637_v16  ;;  %7217 = vmatprep.subr.bf16.mxu1 %v8638_v20  ;;  %v3631_v16 = vshrl.u32 %v9497_v4, 16 }
  0xc8   : > { %7186 = vmatmul.mubr.bf16.gmra.mrb[8].mxu1 %v9446_v53  ;;  %7649 = vmatprep.subr.bf16.mxu0 %v8639_v6 }
  0xc9   : > { %7618 = vmatmul.mubr.bf16.gmra.mrb[8].mxu0 %v9046_v41  ;;  %7189 = vmatprep.mubr.bf16.mxu1 %v9454_v14 }
  0xca   : > { %7621 = vmatprep.mubr.bf16.mxu0 %v9065_v60  ;;  %7218 = vmatpush3.bf16.msra.mxu1 %v8638_v20  ;;  %v3635_v20 = vrot.slane %v3633_v28, 1  ;;  %v9532_v28 = vld [vmem:[%s8862_s11 + $0x14] ss:$0 sps:$4 sm:$0x11]  }
  0xcb   : > { %7650 = vmatpush3.bf16.msra.mxu0 %v8639_v6  ;;  %7219 = vmatprep.subr.bf16.mxu1 %v8640_v59  ;;  %v9516_v6 = vld [vmem:[%s8862_s11 + $0xa8] sm:$0xff]  }
  0xcc   : > { %7651 = vmatprep.subr.bf16.mxu0 %v8641_v19  ;;  %v8760_v60 = vld [vmem:[%s8862_s11 + $0x68] ss:$0 sps:$4 sm:$0x11]  }
  0xcd   : > { %v4217_v41 = vrot.slane %v8760_v60, 1  ;;  %v8664_v60 = vld [vmem:[%s10292_s2 + $0x1b8] sm:$0xff]  }
  0xce   : > { %7220 = vmatpush3.bf16.msra.mxu1 %v8640_v59  ;;  %v9521_v59 = vld [vmem:[%s8862_s11 + $0xb4] sm:$0xff]  }
  0xcf   : > { %7652 = vmatpush3.bf16.msra.mxu0 %v8641_v19  ;;  %7221 = vmatprep.subr.bf16.mxu1 %v8642_v54  ;;  %v3640_v19 = vrot.slane %v3638_v37, 1  ;;  %v9537_v37 = vld [vmem:[%s8867_s14 + $0xc] sm:$0xff]  }
  0xd0   : > { %7190 = vmatmul.mubr.bf16.gmra.mrb[12].mxu1 %v9468_v38  ;;  %7653 = vmatprep.subr.bf16.mxu0 %v8643_v21 }
  0xd1   : > { %7622 = vmatmul.mubr.bf16.gmra.mrb[12].mxu0 %v9078_v7  ;;  %7193 = vmatprep.mubr.bf16.mxu1 %v9476_v10  ;;  %v8659_v7 = vld [vmem:[%s10293_s3 + $0xa0] sm:$0xff]  }
  0xd2   : > { %7625 = vmatprep.mubr.bf16.mxu0 %v9096_v25  ;;  %7222 = vmatpush3.bf16.msra.mxu1 %v8642_v54  ;;  %v9525_v54 = vld [vmem:[%s8862_s11] sm:$0xff]  }
  0xd3   : > { %7654 = vmatpush3.bf16.msra.mxu0 %v8643_v21  ;;  %7223 = vmatprep.subr.bf16.mxu1 %v8644_v61  ;;  %v4192_v21 = vrot.slane %v9525_v54, 1  ;;  %v8658_v25 = vld [vmem:[%s10292_s2 + $0x1a0] sm:$0xff]  }
  0xd4   : > { %7655 = vmatprep.subr.bf16.mxu0 %v8647_v44 }
  0xd6   : > { %7224 = vmatpush3.bf16.msra.mxu1 %v8644_v61  ;;  %v4193_v61 = vrot.slane %v9512_v29, 1 }
  0xd7   : > { %7656 = vmatpush3.bf16.msra.mxu0 %v8647_v44  ;;  %7257 = vmatprep.subr.bf16.mxu1 %v8649_v23  ;;  %v3636_v44 = vor.u32 %v3635_v20, %v3631_v16  ;;  %v4198_v16 = vrot.slane %v9403_v58, 1  ;;  %v8748_v20 = vld [vmem:[%s8862_s11 + $0x20] ss:$0 sps:$4 sm:$0x11]  }
  0xd8   : > { %7194 = vmatmul.mubr.bf16.gmra.mrb[16].mxu1 %v9487_v36  ;;  %7689 = vmatprep.subr.bf16.mxu0 %v8651_v0  ;;  %v4194_v17 = vsel %vm4191_vm1, %v4192_v21, %v4193_v61  ;;  %v9551_v61 = vld [vmem:[%s8867_s14 + $0x18] sm:$0xff]  }
  0xd9   : > { %7626 = vmatmul.mubr.bf16.gmra.mrb[16].mxu0 %v9121_v51  ;;  %7197 = vmatprep.mubr.bf16.mxu1 %v9492_v32  ;;  %v3641_v52 = vsel %vm2142_vm0, %v3636_v44, %v3640_v19  ;;  %v4199_v19 = vrot.slane %v8748_v20, 1  ;;  %v4201_v44 = vrot.slane %v9410_v49, 1  ;;  %v4204_v20 = vrot.slane %v9424_v18, 1 }
  0xda   : > { %7629 = vmatprep.mubr.bf16.mxu0 %v9137_v9  ;;  %v8756_v9 = vld [vmem:[%s8862_s11 + $0x50] ss:$0 sps:$4 sm:$0x11]  }
  0xdb   : > { %v4211_v51 = vrot.slane %v8756_v9, 1  ;;  %v8660_v9 = vld [vmem:[%s10292_s2 + $0x1a8] sm:$0xff]  }
  0xe0   : > { %7198 = vmatmul.mubr.bf16.gmra.mrb[20].mxu1 %v9501_v50 }
  0xe1   : > { %7630 = vmatmul.mubr.bf16.gmra.mrb[20].mxu0 %v9150_v30  ;;  %7201 = vmatprep.mubr.bf16.mxu1 %v9506_v8  ;;  %v9586_v30 = vld [vmem:[%s8867_s14 + $0x30] sm:$0xff]  }
  0xe2   : > { %7633 = vmatprep.mubr.bf16.mxu0 %v9164_v57 }
  0xe8   : > { %7202 = vmatmul.mubr.bf16.gmra.mrb[24].mxu1 %v9516_v6 }
  0xe9   : > { %7634 = vmatmul.mubr.bf16.gmra.mrb[24].mxu0 %v9187_v39  ;;  %7205 = vmatprep.mubr.bf16.mxu1 %v9521_v59  ;;  %v4195_v39 = vrot.slane %v9392_v24, 1  ;;  %v8653_v24 = vld [vmem:[%s10293_s3 + $0x88] sm:$0xff]  }
  0xea   : > { %7637 = vmatprep.mubr.bf16.mxu0 %v9201_v15  ;;  %v4196_v15 = vrot.slane %v9532_v28, 1 }
  0xec   : > { %v9545_v21 = vsel %vm4191_vm1, %v4195_v39, %v4196_v15  ;;  %v9562_v39 = vld [vmem:[%s8867_s14 + $0x24] sm:$0xff]  }
  0xf0   : > { %7206 = vmatmul.mubr.bf16.gmra.mrb[28].mxu1 %v9353_v42  ;;  %v8652_v42 = vld [vmem:[%s10292_s2 + $0x188] sm:$0xff]  }
  0xf1   : > { %7638 = vmatmul.mubr.bf16.gmra.mrb[28].mxu0 %v3641_v52  ;;  %7225 = vmatprep.mubr.bf16.mxu1 %v9537_v37  ;;  %v8751_v52 = vld [vmem:[%s8862_s11 + $0x2c] ss:$0 sps:$4 sm:$0x11]  }
  0xf2   : > { %7657 = vmatprep.mubr.bf16.mxu0 %v4194_v17  ;;  %v9555_v17 = vsel %vm4191_vm1, %v4198_v16, %v4199_v19  ;;  %v4202_v15 = vrot.slane %v8751_v52, 1  ;;  %v8654_v16 = vld [vmem:[%s10292_s2 + $0x190] sm:$0xff]  }
  0xf3   : > { %v8655_v19 = vld [vmem:[%s10293_s3 + $0x90] sm:$0xff]  }
  0xf4   : > { %v9577_v52 = vsel %vm4191_vm1, %v4201_v44, %v4202_v15  ;;  %v4207_v44 = vrot.slane %v9432_v40, 1  ;;  %v8755_v15 = vld [vmem:[%s8862_s11 + $0x44] ss:$0 sps:$4 sm:$0x11]  }
  0xf8   : > { %7226 = vmatmul.mubr.bf16.vlgmr.msra.gmra.mrb[0].mxu1 %v9551_v61 }
  0xf9   : > { %7658 = vmatmul.mubr.bf16.vlgmr.msra.gmra.mrb[0].mxu0 %v9545_v21  ;;  %7258 = vmatpush3.bf16.msra.mxu1 %v8649_v23  ;;  %v8752_v23 = vld [vmem:[%s8862_s11 + $0x38] ss:$0 sps:$4 sm:$0x11]  }
  0xfa   : > { %7690 = vmatpush3.bf16.msra.mxu0 %v8651_v0  ;;  %7229 = vmatprep.mubr.bf16.mxu1 %v9562_v39  ;;  %v4205_v0 = vrot.slane %v8752_v23, 1  ;;  %v8656_v23 = vld [vmem:[%s10292_s2 + $0x198] sm:$0xff]  }
  0xfb   : > { %7661 = vmatprep.mubr.bf16.mxu0 %v9555_v17  ;;  %7259 = vmatprep.subr.bf16.mxu1 %v8652_v42 }
  0xfc   : > { %7691 = vmatprep.subr.bf16.mxu0 %v8653_v24  ;;  %v9580_v57 = vsel %vm4191_vm1, %v4204_v20, %v4205_v0  ;;  %v4208_v20 = vrot.slane %v8755_v15, 1  ;;  %v4210_v0 = vrot.slane %v9446_v53, 1 }
  0xfd   : > { %7260 = vmatpush3.bf16.msra.mxu1 %v8652_v42  ;;  %v8657_v42 = vld [vmem:[%s10293_s3 + $0x98] sm:$0xff]  }
  0xfe   : > { %7692 = vmatpush3.bf16.msra.mxu0 %v8653_v24  ;;  %7261 = vmatprep.subr.bf16.mxu1 %v8654_v16  ;;  %v9594_v24 = vld [vmem:[%s8867_s14 + $0x3c] sm:$0xff]   ;;  %v9609_v15 = vsel %vm4191_vm1, %v4207_v44, %v4208_v20  ;;  %v8661_v44 = vld [vmem:[%s10293_s3 + $0xa8] sm:$0xff]  }
  0xff   : > { %7693 = vmatprep.subr.bf16.mxu0 %v8655_v19 }
 0x100   : > { %7230 = vmatmul.mubr.bf16.gmra.mrb[4].mxu1 %v9586_v30 }
 0x101   : > { %7662 = vmatmul.mubr.bf16.gmra.mrb[4].mxu0 %v9577_v52  ;;  %7233 = vmatprep.mubr.bf16.mxu1 %v9594_v24 }
 0x102   : > { %7665 = vmatprep.mubr.bf16.mxu0 %v9580_v57  ;;  %7262 = vmatpush3.bf16.msra.mxu1 %v8654_v16  ;;  %v9612_v16 = vsel %vm4191_vm1, %v4210_v0, %v4211_v51  ;;  %v9626_v51 = vld [vmem:[%s8867_s14 + $0x54] sm:$0xff]   ;;  %v4216_v0 = vrot.slane %v9468_v38, 1 }
 0x103   : > { %7694 = vmatpush3.bf16.msra.mxu0 %v8655_v19  ;;  %7263 = vmatprep.subr.bf16.mxu1 %v8656_v23  ;;  %v9618_v19 = vld [vmem:[%s8867_s14 + $0x48] sm:$0xff]  }
 0x104   : > { %7695 = vmatprep.subr.bf16.mxu0 %v8657_v42 }
 0x106   : > { %7264 = vmatpush3.bf16.msra.mxu1 %v8656_v23  ;;  %v4213_v23 = vrot.slane %v9454_v14, 1 }
 0x107   : > { %7696 = vmatpush3.bf16.msra.mxu0 %v8657_v42  ;;  %7265 = vmatprep.subr.bf16.mxu1 %v8658_v25  ;;  %v8759_v42 = vld [vmem:[%s8862_s11 + $0x5c] ss:$0 sps:$4 sm:$0x11]  }
 0x108   : > { %7234 = vmatmul.mubr.bf16.gmra.mrb[8].mxu1 %v9618_v19  ;;  %7697 = vmatprep.subr.bf16.mxu0 %v8659_v7  ;;  %v4214_v20 = vrot.slane %v8759_v42, 1 }
 0x109   : > { %7666 = vmatmul.mubr.bf16.gmra.mrb[8].mxu0 %v9609_v15  ;;  %7237 = vmatprep.mubr.bf16.mxu1 %v9626_v51 }
 0x10a   : > { %7669 = vmatprep.mubr.bf16.mxu0 %v9612_v16  ;;  %7266 = vmatpush3.bf16.msra.mxu1 %v8658_v25  ;;  %v9641_v42 = vsel %vm4191_vm1, %v4213_v23, %v4214_v20  ;;  %v9644_v25 = vsel %vm4191_vm1, %v4216_v0, %v4217_v41  ;;  %v8665_v23 = vld [vmem:[%s10293_s3 + $0xb8] sm:$0xff]   ;;  %v9658_v41 = vld [vmem:[%s8867_s14 + $0x6c] sm:$0xff]   ;;  %v4222_v0 = vrot.slane %v9487_v36, 1 }
 0x10b   : > { %7698 = vmatpush3.bf16.msra.mxu0 %v8659_v7  ;;  %7267 = vmatprep.subr.bf16.mxu1 %v8660_v9  ;;  %v9650_v7 = vld [vmem:[%s8867_s14 + $0x60] sm:$0xff]  }
 0x10c   : > { %7699 = vmatprep.subr.bf16.mxu0 %v8661_v44  ;;  %v9680_v5 = vsel %vm4191_vm1, %v4222_v0, %v4223_v56  ;;  %v4225_v56 = vrot.slane %v9492_v32, 1 }
 0x10e   : > { %7268 = vmatpush3.bf16.msra.mxu1 %v8660_v9  ;;  %v4219_v9 = vrot.slane %v9476_v10, 1 }
 0x10f   : > { %7700 = vmatpush3.bf16.msra.mxu0 %v8661_v44  ;;  %7269 = vmatprep.subr.bf16.mxu1 %v8662_v27  ;;  %v8763_v44 = vld [vmem:[%s8862_s11 + $0x74] ss:$0 sps:$4 sm:$0x11]  }
 0x110   : > { %7238 = vmatmul.mubr.bf16.gmra.mrb[12].mxu1 %v9650_v7  ;;  %7701 = vmatprep.subr.bf16.mxu0 %v8663_v12  ;;  %v4220_v20 = vrot.slane %v8763_v44, 1  ;;  %v9690_v44 = vld [vmem:[%s8867_s14 + $0x84] sm:$0xff]  }
 0x111   : > { %7670 = vmatmul.mubr.bf16.gmra.mrb[12].mxu0 %v9641_v42  ;;  %7241 = vmatprep.mubr.bf16.mxu1 %v9658_v41 }
 0x112   : > { %7673 = vmatprep.mubr.bf16.mxu0 %v9644_v25  ;;  %7270 = vmatpush3.bf16.msra.mxu1 %v8662_v27  ;;  %v9677_v27 = vsel %vm4191_vm1, %v4219_v9, %v4220_v20  ;;  %v4228_v9 = vrot.slane %v9501_v50, 1  ;;  %v4229_v20 = vrot.slane %v9293_v55, 1  ;;  %v4231_v55 = vrot.slane %v9506_v8, 1 }
 0x113   : > { %7702 = vmatpush3.bf16.msra.mxu0 %v8663_v12  ;;  %7271 = vmatprep.subr.bf16.mxu1 %v8664_v60  ;;  %v9684_v12 = vld [vmem:[%s8867_s14 + $0x78] sm:$0xff]  }
 0x114   : > { %7703 = vmatprep.subr.bf16.mxu0 %v8665_v23  ;;  %v9702_v47 = vsel %vm4191_vm1, %v4228_v9, %v4229_v20  ;;  %v4235_v9 = vrot.slane %v9326_v11, 1  ;;  %v4237_v11 = vrot.slane %v9521_v59, 1 }
 0x116   : > { %7272 = vmatpush3.bf16.msra.mxu1 %v8664_v60  ;;  %v8767_v60 = vld [vmem:[%s8862_s11 + $0x8c] ss:$0 sps:$4 sm:$0x11]  }
 0x117   : > { %7704 = vmatpush3.bf16.msra.mxu0 %v8665_v23  ;;  %7305 = vmatprep.subr.bf16.mxu1 %v9669_v48  ;;  %v4226_v23 = vrot.slane %v8767_v60, 1  ;;  %v9710_v60 = vld [vmem:[%s8867_s14 + $0x9c] sm:$0xff]  }
 0x118   : > { %7242 = vmatmul.mubr.bf16.gmra.mrb[16].mxu1 %v9684_v12  ;;  %7737 = vmatprep.subr.bf16.mxu0 %v9674_v3 }
 0x119   : > { %7674 = vmatmul.mubr.bf16.gmra.mrb[16].mxu0 %v9677_v27  ;;  %7245 = vmatprep.mubr.bf16.mxu1 %v9690_v44  ;;  %v9699_v0 = vsel %vm4191_vm1, %v4225_v56, %v4226_v23  ;;  %v4232_v56 = vrot.slane %v9313_v45, 1  ;;  %v4234_v23 = vrot.slane %v9516_v6, 1  ;;  %v9733_v45 = vld [vmem:[%s8867_s14 + $0xb4] sm:$0xff]  }
 0x11a   : > { %7677 = vmatprep.mubr.bf16.mxu0 %v9680_v5 }
 0x11b   : > { %v9719_v20 = vsel %vm4191_vm1, %v4231_v55, %v4232_v56  ;;  %v9722_v13 = vsel %vm4191_vm1, %v4234_v23, %v4235_v9  ;;  %v4238_v55 = vrot.slane %v9350_v1, 1  ;;  %v9740_v56 = vld [vmem:[%s8867_s14] sm:$0xff]   ;;  %v4289_v9 = vrot.slane %v9725_v2, 1  ;;  %v8774_v1 = vld [vmem:[%s8867_s14 + $0x14] ss:$0 sps:$4 sm:$0x11]  }
 0x11c   : > { %10364 = vst [vmem:[#allocation29_spill] sm:$0xff] %v9740_v56  ;;  %v4288_v23 = vrot.slane %v9740_v56, 1  ;;  %v4292_v35 = vrot.slane %v8774_v1, 1  ;;  %v4291_v56 = vrot.slane %v9537_v37, 1  ;;  %v4294_v2 = vrot.slane %v9551_v61, 1 }
 0x11d   : > { %v9745_v46 = vsel %vm4191_vm1, %v4237_v11, %v4238_v55  ;;  %v8775_v11 = vld [vmem:[%s8867_s14 + $0x20] ss:$0 sps:$4 sm:$0x11]   ;;  %v8776_v37 = vld [vmem:[%s8867_s14 + $0x2c] ss:$0 sps:$4 sm:$0x11]  }
 0x11e   : > { %v4290_v62 = vsel %vm4191_vm1, %v4288_v23, %v4289_v9  ;;  %v4295_v55 = vrot.slane %v8775_v11, 1  ;;  %v9759_v23 = vsel %vm4191_vm1, %v4291_v56, %v4292_v35  ;;  %v8669_v9 = vld [vmem:[%s10293_s3 + $0x188] sm:$0xff]   ;;  %v4297_v35 = vrot.slane %v9562_v39, 1  ;;  %v8777_v1 = vld [vmem:[%s8867_s14 + $0x38] ss:$0 sps:$4 sm:$0x11]  }
 0x11f   : > { %v4298_v56 = vrot.slane %v8776_v37, 1  ;;  %v4301_v11 = vrot.slane %v8777_v1, 1  ;;  %v8675_v1 = vld [vmem:[%s10293_s3 + $0x1a0] sm:$0xff]  }
 0x120   : > { %7246 = vmatmul.mubr.bf16.gmra.mrb[20].mxu1 %v9705_v33 }
 0x121   : > { %7678 = vmatmul.mubr.bf16.gmra.mrb[20].mxu0 %v9699_v0  ;;  %7249 = vmatprep.mubr.bf16.mxu1 %v9710_v60 }
 0x122   : > { %7681 = vmatprep.mubr.bf16.mxu0 %v9702_v47 }
 0x128   : > { %7250 = vmatmul.mubr.bf16.gmra.mrb[24].mxu1 %v9728_v26 }
 0x129   : > { %7682 = vmatmul.mubr.bf16.gmra.mrb[24].mxu0 %v9719_v20  ;;  %7253 = vmatprep.mubr.bf16.mxu1 %v9733_v45 }
 0x12a   : > { %7685 = vmatprep.mubr.bf16.mxu0 %v9722_v13 }
 0x130   : > { %7254 = vmatmul.mubr.bf16.gmra.mrb[28].mxu1 %v9749_v43 }
 0x131   : > { %7686 = vmatmul.mubr.bf16.gmra.mrb[28].mxu0 %v9745_v46  ;;  %7273 = vmatprep.mubr.bf16.mxu1 %v9403_v58  ;;  %v9766_v58 = vsel %vm4191_vm1, %v4294_v2, %v4295_v55  ;;  %v8671_v2 = vld [vmem:[%s10293_s3 + $0x190] sm:$0xff]   ;;  %v8673_v55 = vld [vmem:[%s10293_s3 + $0x198] sm:$0xff]  }
 0x132   : > { %7705 = vmatprep.mubr.bf16.mxu0 %v4290_v62  ;;  %v8670_v62 = vld [vmem:[%s10292_s2 + $0x148] sm:$0xff]  }
 0x138   : > { %7274 = vmatmul.mubr.bf16.vlgmr.msra.gmra.mrb[0].mxu1 %v9410_v49  ;;  %v4300_v49 = vrot.slane %v9586_v30, 1 }
 0x139   : > { %7706 = vmatmul.mubr.bf16.vlgmr.msra.gmra.mrb[0].mxu0 %v9759_v23  ;;  %7306 = vmatpush3.bf16.msra.mxu1 %v9669_v48  ;;  %v8672_v48 = vld [vmem:[%s10292_s2 + $0x150] sm:$0xff]  }
 0x13a   : > { %7738 = vmatpush3.bf16.msra.mxu0 %v9674_v3  ;;  %7277 = vmatprep.mubr.bf16.mxu1 %v9424_v18  ;;  %v9787_v3 = vsel %vm4191_vm1, %v4297_v35, %v4298_v56  ;;  %v9790_v18 = vsel %vm4191_vm1, %v4300_v49, %v4301_v11  ;;  %v8778_v35 = vld [vmem:[%s8867_s14 + $0x44] ss:$0 sps:$4 sm:$0x11]   ;;  %v4306_v56 = vrot.slane %v9618_v19, 1 }
 0x13b   : > { %7709 = vmatprep.mubr.bf16.mxu0 %v9766_v58  ;;  %7307 = vmatprep.subr.bf16.mxu1 %v8669_v9  ;;  %v4304_v37 = vrot.slane %v8778_v35, 1  ;;  %v8779_v49 = vld [vmem:[%s8867_s14 + $0x50] ss:$0 sps:$4 sm:$0x11]   ;;  %v8678_v35 = vld [vmem:[%s10292_s2 + $0x168] sm:$0xff]  }
 0x13c   : > { %7739 = vmatprep.subr.bf16.mxu0 %v8670_v62 }
 0x13d   : > { %7308 = vmatpush3.bf16.msra.mxu1 %v8669_v9  ;;  %v8674_v9 = vld [vmem:[%s10292_s2 + $0x158] sm:$0xff]  }
 0x13e   : > { %7740 = vmatpush3.bf16.msra.mxu0 %v8670_v62  ;;  %7309 = vmatprep.subr.bf16.mxu1 %v8671_v2  ;;  %v4303_v62 = vrot.slane %v9594_v24, 1 }
 0x13f   : > { %7741 = vmatprep.subr.bf16.mxu0 %v8672_v48 }
 0x140   : > { %7278 = vmatmul.mubr.bf16.gmra.mrb[4].mxu1 %v9432_v40  ;;  %v4307_v40 = vrot.slane %v8779_v49, 1  ;;  %v9813_v11 = vsel %vm4191_vm1, %v4303_v62, %v4304_v37  ;;  %v4312_v37 = vrot.slane %v9650_v7, 1  ;;  %v8679_v49 = vld [vmem:[%s10293_s3 + $0x1b0] sm:$0xff]  }
 0x141   : > { %7710 = vmatmul.mubr.bf16.gmra.mrb[4].mxu0 %v9787_v3  ;;  %7281 = vmatprep.mubr.bf16.mxu1 %v9446_v53  ;;  %v8676_v53 = vld [vmem:[%s10292_s2 + $0x160] sm:$0xff]  }
 0x142   : > { %7713 = vmatprep.mubr.bf16.mxu0 %v9790_v18  ;;  %7310 = vmatpush3.bf16.msra.mxu1 %v8671_v2  ;;  %v9816_v2 = vsel %vm4191_vm1, %v4306_v56, %v4307_v40  ;;  %v8781_v56 = vld [vmem:[%s8867_s14 + $0x68] ss:$0 sps:$4 sm:$0x11]  }
 0x143   : > { %7742 = vmatpush3.bf16.msra.mxu0 %v8672_v48  ;;  %7311 = vmatprep.subr.bf16.mxu1 %v8673_v55  ;;  %v8677_v48 = vld [vmem:[%s10293_s3 + $0x1a8] sm:$0xff]  }
 0x144   : > { %7743 = vmatprep.subr.bf16.mxu0 %v8674_v9 }
 0x146   : > { %7312 = vmatpush3.bf16.msra.mxu1 %v8673_v55  ;;  %v4309_v55 = vrot.slane %v9626_v51, 1 }
 0x147   : > { %7744 = vmatpush3.bf16.msra.mxu0 %v8674_v9  ;;  %7313 = vmatprep.subr.bf16.mxu1 %v8675_v1  ;;  %v8780_v9 = vld [vmem:[%s8867_s14 + $0x5c] ss:$0 sps:$4 sm:$0x11]  }
 0x148   : > { %7282 = vmatmul.mubr.bf16.gmra.mrb[8].mxu1 %v9454_v14  ;;  %7745 = vmatprep.subr.bf16.mxu0 %v8676_v53  ;;  %v4310_v62 = vrot.slane %v8780_v9, 1  ;;  %v4313_v14 = vrot.slane %v8781_v56, 1  ;;  %v8682_v9 = vld [vmem:[%s10292_s2 + $0x178] sm:$0xff]   ;;  %v8683_v56 = vld [vmem:[%s10292_s2 + $0x40] sm:$0xff]  }
 0x149   : > { %7714 = vmatmul.mubr.bf16.gmra.mrb[8].mxu0 %v9813_v11  ;;  %7285 = vmatprep.mubr.bf16.mxu1 %v9468_v38  ;;  %v8680_v38 = vld [vmem:[%s10292_s2 + $0x170] sm:$0xff]  }
 0x14a   : > { %7717 = vmatprep.mubr.bf16.mxu0 %v9816_v2  ;;  %7314 = vmatpush3.bf16.msra.mxu1 %v8675_v1  ;;  %v9839_v40 = vsel %vm4191_vm1, %v4309_v55, %v4310_v62  ;;  %v9842_v1 = vsel %vm4191_vm1, %v4312_v37, %v4313_v14  ;;  %v4318_v62 = vrot.slane %v9684_v12, 1  ;;  %v8783_v37 = vld [vmem:[%s8867_s14 + $0x80] ss:$0 sps:$4 sm:$0x11]  }
 0x14b   : > { %7746 = vmatpush3.bf16.msra.mxu0 %v8676_v53  ;;  %7315 = vmatprep.subr.bf16.mxu1 %v8677_v48  ;;  %v8681_v53 = vld [vmem:[%s10293_s3 + $0x1b8] sm:$0xff]  }
 0x14c   : > { %7747 = vmatprep.subr.bf16.mxu0 %v8678_v35 }
 0x14e   : > { %7316 = vmatpush3.bf16.msra.mxu1 %v8677_v48  ;;  %v4315_v48 = vrot.slane %v9658_v41, 1 }
 0x14f   : > { %7748 = vmatpush3.bf16.msra.mxu0 %v8678_v35  ;;  %7317 = vmatprep.subr.bf16.mxu1 %v8679_v49  ;;  %v8782_v35 = vld [vmem:[%s8867_s14 + $0x74] ss:$0 sps:$4 sm:$0x11]  }
 0x150   : > { %7286 = vmatmul.mubr.bf16.gmra.mrb[12].mxu1 %v9476_v10  ;;  %7749 = vmatprep.subr.bf16.mxu0 %v8680_v38  ;;  %v4316_v55 = vrot.slane %v8782_v35, 1  ;;  %v4319_v10 = vrot.slane %v8783_v37, 1  ;;  %v4324_v35 = vrot.slane %v9705_v33, 1  ;;  %v8786_v37 = vld [vmem:[%s8867_s14 + $0xa4] ss:$0 sps:$4 sm:$0x11]  }
 0x151   : > { %7718 = vmatmul.mubr.bf16.gmra.mrb[12].mxu0 %v9839_v40  ;;  %7289 = vmatprep.mubr.bf16.mxu1 %v9487_v36  ;;  %v8684_v36 = vld [vmem:[%s10293_s3 + $0x140] sm:$0xff]  }
 0x152   : > { %7721 = vmatprep.mubr.bf16.mxu0 %v9842_v1  ;;  %7318 = vmatpush3.bf16.msra.mxu1 %v8679_v49  ;;  %v9865_v14 = vsel %vm4191_vm1, %v4315_v48, %v4316_v55  ;;  %v9868_v49 = vsel %vm4191_vm1, %v4318_v62, %v4319_v10  ;;  %v8784_v48 = vld [vmem:[%s8867_s14 + $0x8c] ss:$0 sps:$4 sm:$0x11]   ;;  %v8785_v55 = vld [vmem:[%s8867_s14 + $0x98] ss:$0 sps:$4 sm:$0x11]  }
 0x153   : > { %7750 = vmatpush3.bf16.msra.mxu0 %v8680_v38  ;;  %7319 = vmatprep.subr.bf16.mxu1 %v8681_v53  ;;  %v4321_v38 = vrot.slane %v9690_v44, 1  ;;  %v4328_v10 = vrot.slane %v8786_v37, 1 }
 0x154   : > { %7751 = vmatprep.subr.bf16.mxu0 %v8682_v9 }
 0x156   : > { %7320 = vmatpush3.bf16.msra.mxu1 %v8681_v53  ;;  %v4322_v53 = vrot.slane %v8784_v48, 1  ;;  %v8787_v48 = vld [vmem:[%s8867_s14 + $0xb0] ss:$0 sps:$4 sm:$0x11]  }
 0x157   : > { %7752 = vmatpush3.bf16.msra.mxu0 %v8682_v9  ;;  %7353 = vmatprep.subr.bf16.mxu1 %v8683_v56  ;;  %v4325_v9 = vrot.slane %v8785_v55, 1  ;;  %v4333_v55 = vrot.slane %v9733_v45, 1 }
 0x158   : > { %7290 = vmatmul.mubr.bf16.gmra.mrb[16].mxu1 %v9492_v32  ;;  %7785 = vmatprep.subr.bf16.mxu0 %v8684_v36  ;;  %v9879_v62 = vsel %vm4191_vm1, %v4321_v38, %v4322_v53  ;;  %v4330_v38 = vrot.slane %v9728_v26, 1  ;;  %v4331_v53 = vrot.slane %v8787_v48, 1  ;;  %v8695_v48 = vld [vmem:[%s10292_s2 + $0x70] sm:$0xff]  }
 0x159   : > { %7722 = vmatmul.mubr.bf16.gmra.mrb[16].mxu0 %v9865_v14  ;;  %7293 = vmatprep.mubr.bf16.mxu1 %v9501_v50  ;;  %v9882_v32 = vsel %vm4191_vm1, %v4324_v35, %v4325_v9  ;;  %v4327_v50 = vrot.slane %v9710_v60, 1  ;;  %v8789_v9 = vld [vmem:[%s8867_s14 + $0xbc] ss:$0 sps:$4 sm:$0x11]  }
 0x15a   : > { %7725 = vmatprep.mubr.bf16.mxu0 %v9868_v49  ;;  %v4334_v37 = vrot.slane %v8789_v9, 1 }
 0x15b   : > { %v9893_v35 = vsel %vm4191_vm1, %v4327_v50, %v4328_v10  ;;  %v9911_v10 = vld [vmem:[%s8862_s11 + $0xcc] sm:$0xff]  }
 0x15c   : > { %v9908_v50 = vsel %vm4191_vm1, %v4333_v55, %v4334_v37  ;;  %v8699_v55 = vld [vmem:[%s10293_s3 + $0x40] sm:$0xff]   ;;  %v2151_v37 = vshll.u32 %v9512_v29, 16  ;;  %v2163_v29 = vshll.u32 %v9532_v28, 16  ;;  %v8701_v28 = vld [vmem:[%s10293_s3 + $0x48] sm:$0xff]  }
 0x160   : > { %7294 = vmatmul.mubr.bf16.gmra.mrb[20].mxu1 %v9506_v8  ;;  %v9896_v8 = vsel %vm4191_vm1, %v4330_v38, %v4331_v53  ;;  %v8686_v38 = vld [vmem:[%s10293_s3 + $0x148] sm:$0xff]   ;;  %v8698_v53 = vld [vmem:[%s10293_s3 + $0x178] sm:$0xff]  }
 0x161   : > { %7726 = vmatmul.mubr.bf16.gmra.mrb[20].mxu0 %v9879_v62  ;;  %7297 = vmatprep.mubr.bf16.mxu1 %v9516_v6  ;;  %v9901_v6 = vld [vmem:[%s8862_s11 + $0xc0] sm:$0xff]  }
 0x162   : > { %7729 = vmatprep.mubr.bf16.mxu0 %v9882_v32 }
 0x168   : > { %7298 = vmatmul.mubr.bf16.gmra.mrb[24].mxu1 %v9521_v59  ;;  %v8685_v59 = vld [vmem:[%s10292_s2 + $0x48] sm:$0xff]  }
 0x169   : > { %7730 = vmatmul.mubr.bf16.gmra.mrb[24].mxu0 %v9893_v35  ;;  %7301 = vmatprep.mubr.bf16.mxu1 %v9901_v6 }
 0x16a   : > { %7733 = vmatprep.mubr.bf16.mxu0 %v9896_v8 }
 0x170   : > { %7302 = vmatmul.mubr.bf16.gmra.mrb[28].mxu1 %v9911_v10 }
 0x171   : > { %7734 = vmatmul.mubr.bf16.gmra.mrb[28].mxu0 %v9908_v50  ;;  %7321 = vmatprep.mubr.bf16.mxu1 %v9551_v61  ;;  %v8688_v61 = vld [vmem:[%s10293_s3 + $0x150] sm:$0xff]  }
 0x172   : > { %7753 = vmatprep.mubr.bf16.mxu0 %v9545_v21  ;;  %v8687_v21 = vld [vmem:[%s10292_s2 + $0x50] sm:$0xff]  }
 0x178   : > { %7322 = vmatmul.mubr.bf16.vlgmr.msra.gmra.mrb[0].mxu1 %v9562_v39  ;;  %v8690_v39 = vld [vmem:[%s10293_s3 + $0x158] sm:$0xff]  }
 0x179   : > { %7754 = vmatmul.mubr.bf16.vlgmr.msra.gmra.mrb[0].mxu0 %v9555_v17  ;;  %7354 = vmatpush3.bf16.msra.mxu1 %v8683_v56  ;;  %v8691_v56 = vld [vmem:[%s10292_s2 + $0x60] sm:$0xff]  }
 0x17a   : > { %7786 = vmatpush3.bf16.msra.mxu0 %v8684_v36  ;;  %7325 = vmatprep.mubr.bf16.mxu1 %v9586_v30  ;;  %v8689_v30 = vld [vmem:[%s10292_s2 + $0x58] sm:$0xff]   ;;  %v8694_v36 = vld [vmem:[%s10293_s3 + $0x168] sm:$0xff]  }
 0x17b   : > { %7757 = vmatprep.mubr.bf16.mxu0 %v9577_v52  ;;  %7355 = vmatprep.subr.bf16.mxu1 %v8685_v59 }
 0x17c   : > { %7787 = vmatprep.subr.bf16.mxu0 %v8686_v38 }
 0x17d   : > { %7356 = vmatpush3.bf16.msra.mxu1 %v8685_v59  ;;  %v8792_v59 = vld [vmem:[%s8862_s11 + $0xc8] ss:$0 sps:$4 sm:$0x11]  }
 0x17e   : > { %7788 = vmatpush3.bf16.msra.mxu0 %v8686_v38  ;;  %7357 = vmatprep.subr.bf16.mxu1 %v8687_v21  ;;  %v4871_v38 = vrot.slane %v8792_v59, 1  ;;  %v8716_v59 = vld [vmem:[%s10293_s3 + $0x200] sm:$0xff]  }
 0x17f   : > { %7789 = vmatprep.subr.bf16.mxu0 %v8688_v61 }
 0x180   : > { %7326 = vmatmul.mubr.bf16.gmra.mrb[4].mxu1 %v9594_v24  ;;  %v8692_v24 = vld [vmem:[%s10293_s3 + $0x160] sm:$0xff]  }
 0x181   : > { %7758 = vmatmul.mubr.bf16.gmra.mrb[4].mxu0 %v9580_v57  ;;  %7329 = vmatprep.mubr.bf16.mxu1 %v9618_v19  ;;  %v8693_v19 = vld [vmem:[%s10292_s2 + $0x68] sm:$0xff]  }
 0x182   : > { %7761 = vmatprep.mubr.bf16.mxu0 %v9609_v15  ;;  %7358 = vmatpush3.bf16.msra.mxu1 %v8687_v21 }
 0x183   : > { %7790 = vmatpush3.bf16.msra.mxu0 %v8688_v61  ;;  %7359 = vmatprep.subr.bf16.mxu1 %v8689_v30  ;;  %v2153_v61 = vrot.slane %v2151_v37, 1  ;;  %v10366_v37 = vld [vmem:[#allocation18_spill] sm:$0xff] }
 0x184   : > { %7791 = vmatprep.subr.bf16.mxu0 %v8690_v39 }
 0x186   : > { %7360 = vmatpush3.bf16.msra.mxu1 %v8689_v30 }
 0x187   : > { %7792 = vmatpush3.bf16.msra.mxu0 %v8690_v39  ;;  %7361 = vmatprep.subr.bf16.mxu1 %v8691_v56 }
 0x188   : > { %7330 = vmatmul.mubr.bf16.gmra.mrb[8].mxu1 %v9626_v51  ;;  %7793 = vmatprep.subr.bf16.mxu0 %v8692_v24  ;;  %v8696_v51 = vld [vmem:[%s10293_s3 + $0x170] sm:$0xff]  }
 0x189   : > { %7762 = vmatmul.mubr.bf16.gmra.mrb[8].mxu0 %v9612_v16  ;;  %7333 = vmatprep.mubr.bf16.mxu1 %v9650_v7  ;;  %v8697_v7 = vld [vmem:[%s10292_s2 + $0x78] sm:$0xff]  }
 0x18a   : > { %7765 = vmatprep.mubr.bf16.mxu0 %v9641_v42  ;;  %7362 = vmatpush3.bf16.msra.mxu1 %v8691_v56 }
 0x18b   : > { %7794 = vmatpush3.bf16.msra.mxu0 %v8692_v24  ;;  %7363 = vmatprep.subr.bf16.mxu1 %v8693_v19 }
 0x18c   : > { %7795 = vmatprep.subr.bf16.mxu0 %v8694_v36 }
 0x18e   : > { %7364 = vmatpush3.bf16.msra.mxu1 %v8693_v19  ;;  %v8704_v19 = vld [vmem:[%s10292_s2 + $0x210] sm:$0xff]  }
 0x18f   : > { %7796 = vmatpush3.bf16.msra.mxu0 %v8694_v36  ;;  %7365 = vmatprep.subr.bf16.mxu1 %v8695_v48  ;;  %v8705_v36 = vld [vmem:[%s10293_s3 + $0x58] sm:$0xff]  }
 0x190   : > { %7334 = vmatmul.mubr.bf16.gmra.mrb[12].mxu1 %v9658_v41  ;;  %7797 = vmatprep.subr.bf16.mxu0 %v8696_v51  ;;  %v8700_v41 = vld [vmem:[%s10292_s2 + $0x200] sm:$0xff]  }
 0x191   : > { %7766 = vmatmul.mubr.bf16.gmra.mrb[12].mxu0 %v9644_v25  ;;  %7337 = vmatprep.mubr.bf16.mxu1 %v9684_v12  ;;  %v2146_v12 = vshll.u32 %v9525_v54, 16 }
 0x192   : > { %7769 = vmatprep.mubr.bf16.mxu0 %v9677_v27  ;;  %7366 = vmatpush3.bf16.msra.mxu1 %v8695_v48  ;;  %v8706_v48 = vld [vmem:[%s10292_s2 + $0x218] sm:$0xff]  }
 0x193   : > { %7798 = vmatpush3.bf16.msra.mxu0 %v8696_v51  ;;  %7367 = vmatprep.subr.bf16.mxu1 %v8697_v7  ;;  %v2148_v9 = vrot.slane %v2146_v12, 1  ;;  %v8707_v51 = vld [vmem:[%s10293_s3 + $0x60] sm:$0xff]   ;;  %v8711_v12 = vld [vmem:[%s10293_s3 + $0x70] sm:$0xff]  }
 0x194   : > { %7799 = vmatprep.subr.bf16.mxu0 %v8698_v53 }
 0x196   : > { %7368 = vmatpush3.bf16.msra.mxu1 %v8697_v7  ;;  %v8708_v7 = vld [vmem:[%s10292_s2 + $0x220] sm:$0xff]  }
 0x197   : > { %7800 = vmatpush3.bf16.msra.mxu0 %v8698_v53  ;;  %7401 = vmatprep.subr.bf16.mxu1 %v8699_v55  ;;  %v8709_v53 = vld [vmem:[%s10293_s3 + $0x68] sm:$0xff]  }
 0x198   : > { %7338 = vmatmul.mubr.bf16.gmra.mrb[16].mxu1 %v9690_v44  ;;  %7833 = vmatprep.subr.bf16.mxu0 %v8700_v41  ;;  %v2144_v44 = vshrl.u32 %v9525_v54, 16 }
 0x199   : > { %7770 = vmatmul.mubr.bf16.gmra.mrb[16].mxu0 %v9680_v5  ;;  %7341 = vmatprep.mubr.bf16.mxu1 %v9705_v33  ;;  %v8791_v33 = vld [vmem:[%s8862_s11 + $0xc] sm:$0xff]  }
 0x19a   : > { %7773 = vmatprep.mubr.bf16.mxu0 %v9699_v0  ;;  %v2149_v21 = vor.u32 %v2148_v9, %v2144_v44  ;;  %v2156_v54 = vshrl.u32 %v8791_v33, 16  ;;  %v8712_v44 = vld [vmem:[%s10292_s2 + $0x230] sm:$0xff]   ;;  %v8713_v9 = vld [vmem:[%s10293_s3 + $0x78] sm:$0xff]  }
 0x19c   : > { %v2154_v39 = vsel %vm2142_vm0, %v2149_v21, %v2153_v61  ;;  %v10369_v21 = vld [vmem:[#allocation21_spill] sm:$0xff]  ;;  %v10370_v61 = vld [vmem:[#allocation22_spill] sm:$0xff] }
 0x1a0   : > { %7342 = vmatmul.mubr.bf16.gmra.mrb[20].mxu1 %v9710_v60  ;;  %v2158_v60 = vshll.u32 %v8791_v33, 16  ;;  %v8714_v33 = vld [vmem:[%s10292_s2 + $0x238] sm:$0xff]  }
 0x1a1   : > { %7774 = vmatmul.mubr.bf16.gmra.mrb[20].mxu0 %v9702_v47  ;;  %7345 = vmatprep.mubr.bf16.mxu1 %v9728_v26  ;;  %v4870_v26 = vrot.slane %v9901_v6, 1  ;;  %v2165_v6 = vrot.slane %v2163_v29, 1 }
 0x1a2   : > { %7777 = vmatprep.mubr.bf16.mxu0 %v9719_v20  ;;  %v2160_v30 = vrot.slane %v2158_v60, 1  ;;  %v10367_v60 = vld [vmem:[#allocation19_spill] sm:$0xff] }
 0x1a4   : > { %v2161_v56 = vor.u32 %v2160_v30, %v2156_v54  ;;  %v10371_v54 = vld [vmem:[#allocation23_spill] sm:$0xff]  ;;  %v10372_v30 = vld [vmem:[#allocation29_spill] sm:$0xff] }
 0x1a5   : > { %v2354_v29 = vshll.u32 %v10372_v30, 16 }
 0x1a6   : > { %v10008_v24 = vsel %vm2142_vm0, %v2161_v56, %v2165_v6  ;;  %v10373_v6 = vld [vmem:[#allocation28_spill] sm:$0xff] }
 0x1a7   : > { %v2356_v56 = vrot.slane %v2354_v29, 1  ;;  %v8723_v29 = vld [vmem:[%s10292_s2 + $0x120] sm:$0xff]  }
 0x1a8   : > { %7346 = vmatmul.mubr.bf16.gmra.mrb[24].mxu1 %v9733_v45  ;;  %v10001_v45 = vsel %vm4191_vm1, %v4870_v26, %v4871_v38  ;;  %v8715_v26 = vld [vmem:[%s10292_s2 + $0x100] sm:$0xff]   ;;  %v10368_v38 = vld [vmem:[#allocation20_spill] sm:$0xff] }
 0x1a9   : > { %7778 = vmatmul.mubr.bf16.gmra.mrb[24].mxu0 %v9722_v13  ;;  %7349 = vmatprep.mubr.bf16.mxu1 %v9749_v43 }
 0x1aa   : > { %7781 = vmatprep.mubr.bf16.mxu0 %v9745_v46 }
 0x1b0   : > { %7350 = vmatmul.mubr.bf16.gmra.mrb[28].mxu1 %v9497_v4  ;;  %v8702_v4 = vld [vmem:[%s10292_s2 + $0x208] sm:$0xff]  }
 0x1b1   : > { %7782 = vmatmul.mubr.bf16.gmra.mrb[28].mxu0 %v10001_v45  ;;  %7369 = vmatprep.mubr.bf16.mxu1 %v2154_v39  ;;  %v2352_v39 = vshrl.u32 %v10372_v30, 16  ;;  %v8720_v30 = vld [vmem:[%s10293_s3 + $0x210] sm:$0xff]  }
 0x1b2   : > { %7801 = vmatprep.mubr.bf16.mxu0 %v9759_v23  ;;  %v8703_v23 = vld [vmem:[%s10293_s3 + $0x50] sm:$0xff]  }
 0x1b8   : > { %7370 = vmatmul.mubr.bf16.vlgmr.msra.gmra.mrb[0].mxu1 %v10008_v24 }
 0x1b9   : > { %7802 = vmatmul.mubr.bf16.vlgmr.msra.gmra.mrb[0].mxu0 %v9766_v58  ;;  %7402 = vmatpush3.bf16.msra.mxu1 %v8699_v55  ;;  %v8710_v55 = vld [vmem:[%s10292_s2 + $0x228] sm:$0xff]  }
 0x1ba   : > { %7834 = vmatpush3.bf16.msra.mxu0 %v8700_v41  ;;  %7373 = vmatprep.mubr.bf16.mxu1 %v9208_v22  ;;  %v10365_v41 = vld [vmem:[#allocation17_spill] sm:$0xff] }
 0x1bb   : > { %7805 = vmatprep.mubr.bf16.mxu0 %v9787_v3  ;;  %7403 = vmatprep.subr.bf16.mxu1 %v8701_v28 }
 0x1bc   : > { %7835 = vmatprep.subr.bf16.mxu0 %v8702_v4 }
 0x1bd   : > { %7404 = vmatpush3.bf16.msra.mxu1 %v8701_v28  ;;  %v2359_v28 = vshll.u32 %v10373_v6, 16  ;;  %v10382_v6 = vld [vmem:[#allocation7_spill] sm:$0xff] }
 0x1be   : > { %7836 = vmatpush3.bf16.msra.mxu0 %v8702_v4  ;;  %7405 = vmatprep.subr.bf16.mxu1 %v8703_v23  ;;  %v10374_v4 = vld [vmem:[#allocation24_spill] sm:$0xff] }
 0x1bf   : > { %7837 = vmatprep.subr.bf16.mxu0 %v8704_v19 }
 0x1c0   : > { %7374 = vmatmul.mubr.bf16.gmra.mrb[4].mxu1 %v9218_v31 }
 0x1c1   : > { %7806 = vmatmul.mubr.bf16.gmra.mrb[4].mxu0 %v9790_v18  ;;  %7377 = vmatprep.mubr.bf16.mxu1 %v9226_v34 }
 0x1c2   : > { %7809 = vmatprep.mubr.bf16.mxu0 %v9813_v11  ;;  %7406 = vmatpush3.bf16.msra.mxu1 %v8703_v23  ;;  %v10375_v23 = vld [vmem:[#allocation25_spill] sm:$0xff] }
 0x1c3   : > { %7838 = vmatpush3.bf16.msra.mxu0 %v8704_v19  ;;  %7407 = vmatprep.subr.bf16.mxu1 %v8705_v36  ;;  %v4876_v19 = vrot.slane %v9749_v43, 1  ;;  %v8717_v43 = vld [vmem:[%s10292_s2 + $0x108] sm:$0xff]  }
 0x1c4   : > { %7839 = vmatprep.subr.bf16.mxu0 %v8706_v48 }
 0x1c6   : > { %7408 = vmatpush3.bf16.msra.mxu1 %v8705_v36  ;;  %v8793_v36 = vld [vmem:[%s8867_s14 + $0xc8] ss:$0 sps:$4 sm:$0x11]  }
 0x1c7   : > { %7840 = vmatpush3.bf16.msra.mxu0 %v8706_v48  ;;  %7409 = vmatprep.subr.bf16.mxu1 %v8707_v51  ;;  %v4877_v48 = vrot.slane %v8793_v36, 1  ;;  %v8730_v36 = vld [vmem:[%s10293_s3 + $0x238] sm:$0xff]  }
 0x1c8   : > { %7378 = vmatmul.mubr.bf16.gmra.mrb[8].mxu1 %v9246_v63  ;;  %7841 = vmatprep.subr.bf16.mxu0 %v8708_v7 }
 0x1c9   : > { %7810 = vmatmul.mubr.bf16.gmra.mrb[8].mxu0 %v9816_v2  ;;  %7381 = vmatprep.mubr.bf16.mxu1 %v10365_v41 }
 0x1ca   : > { %7813 = vmatprep.mubr.bf16.mxu0 %v9839_v40  ;;  %7410 = vmatpush3.bf16.msra.mxu1 %v8707_v51  ;;  %v2357_v51 = vor.u32 %v2356_v56, %v2352_v39  ;;  %v8724_v39 = vld [vmem:[%s10293_s3 + $0x220] sm:$0xff]   ;;  %v8726_v56 = vld [vmem:[%s10293_s3 + $0x228] sm:$0xff]  }
 0x1cb   : > { %7842 = vmatpush3.bf16.msra.mxu0 %v8708_v7  ;;  %7411 = vmatprep.subr.bf16.mxu1 %v8709_v53  ;;  %v2361_v7 = vrot.slane %v2359_v28, 1  ;;  %v8727_v28 = vld [vmem:[%s10292_s2 + $0x130] sm:$0xff]  }
 0x1cc   : > { %7843 = vmatprep.subr.bf16.mxu0 %v8710_v55 }
 0x1ce   : > { %7412 = vmatpush3.bf16.msra.mxu1 %v8709_v53  ;;  %v10092_v53 = vsel %vm4191_vm1, %v4876_v19, %v4877_v48  ;;  %v8728_v19 = vld [vmem:[%s10293_s3 + $0x230] sm:$0xff]   ;;  %v10384_v48 = vld [vmem:[#allocation9_spill] sm:$0xff] }
 0x1cf   : > { %7844 = vmatpush3.bf16.msra.mxu0 %v8710_v55  ;;  %7413 = vmatprep.subr.bf16.mxu1 %v8711_v12  ;;  %v2362_v55 = vsel %vm2142_vm0, %v2357_v51, %v2361_v7  ;;  %v10385_v51 = vld [vmem:[#allocation10_spill] sm:$0xff]  ;;  %v10386_v7 = vld [vmem:[#allocation11_spill] sm:$0xff] }
 0x1d0   : > { %7382 = vmatmul.mubr.bf16.gmra.mrb[12].mxu1 %v10366_v37  ;;  %7845 = vmatprep.subr.bf16.mxu0 %v8712_v44 }
 0x1d1   : > { %7814 = vmatmul.mubr.bf16.gmra.mrb[12].mxu0 %v9842_v1  ;;  %7385 = vmatprep.mubr.bf16.mxu1 %v10367_v60 }
 0x1d2   : > { %7817 = vmatprep.mubr.bf16.mxu0 %v9865_v14  ;;  %7414 = vmatpush3.bf16.msra.mxu1 %v8711_v12  ;;  %v10376_v12 = vld [vmem:[#allocation26_spill] sm:$0xff] }
 0x1d3   : > { %7846 = vmatpush3.bf16.msra.mxu0 %v8712_v44  ;;  %7415 = vmatprep.subr.bf16.mxu1 %v8713_v9  ;;  %v10377_v44 = vld [vmem:[#allocation2_spill] sm:$0xff] }
 0x1d4   : > { %7847 = vmatprep.subr.bf16.mxu0 %v8714_v33 }
 0x1d6   : > { %7416 = vmatpush3.bf16.msra.mxu1 %v8713_v9  ;;  %v8718_v9 = vld [vmem:[%s10293_s3 + $0x208] sm:$0xff]  }
 0x1d7   : > { %7848 = vmatpush3.bf16.msra.mxu0 %v8714_v33  ;;  %7449 = vmatprep.subr.bf16.mxu1 %v8715_v26  ;;  %v10378_v33 = vld [vmem:[#allocation3_spill] sm:$0xff] }
 0x1d8   : > { %7386 = vmatmul.mubr.bf16.gmra.mrb[16].mxu1 %v10368_v38  ;;  %7881 = vmatprep.subr.bf16.mxu0 %v8716_v59 }
 0x1d9   : > { %7818 = vmatmul.mubr.bf16.gmra.mrb[16].mxu0 %v9868_v49  ;;  %7389 = vmatprep.mubr.bf16.mxu1 %v10369_v21 }
 0x1da   : > { %7821 = vmatprep.mubr.bf16.mxu0 %v9879_v62 }
 0x1e0   : > { %7390 = vmatmul.mubr.bf16.gmra.mrb[20].mxu1 %v10370_v61 }
 0x1e1   : > { %7822 = vmatmul.mubr.bf16.gmra.mrb[20].mxu0 %v9882_v32  ;;  %7393 = vmatprep.mubr.bf16.mxu1 %v10371_v54 }
 0x1e2   : > { %7825 = vmatprep.mubr.bf16.mxu0 %v9893_v35 }
 0x1e8   : > { %7394 = vmatmul.mubr.bf16.gmra.mrb[24].mxu1 %v10374_v4 }
 0x1e9   : > { %7826 = vmatmul.mubr.bf16.gmra.mrb[24].mxu0 %v9896_v8  ;;  %7397 = vmatprep.mubr.bf16.mxu1 %v10375_v23 }
 0x1ea   : > { %7829 = vmatprep.mubr.bf16.mxu0 %v9908_v50 }
 0x1f0   : > { %7398 = vmatmul.mubr.bf16.gmra.mrb[28].mxu1 %v10376_v12 }
 0x1f1   : > { %7830 = vmatmul.mubr.bf16.gmra.mrb[28].mxu0 %v10092_v53  ;;  %7417 = vmatprep.mubr.bf16.mxu1 %v2362_v55  ;;  %v10389_v55 = vld [vmem:[#allocation14_spill] sm:$0xff] }
 0x1f2   : > { %7849 = vmatprep.mubr.bf16.mxu0 %v9555_v17  ;;  %v8719_v17 = vld [vmem:[%s10292_s2 + $0x110] sm:$0xff]  }
 0x1f8   : > { %7418 = vmatmul.mubr.bf16.vlgmr.msra.gmra.mrb[0].mxu1 %v10377_v44  ;;  %v8794_v44 = vld [vmem:[%s8862_s11 + $0xd4] ss:$0 sps:$4 sm:$0x11]  }
 0x1f9   : > { %7850 = vmatmul.mubr.bf16.vlgmr.msra.gmra.mrb[0].mxu0 %v9577_v52  ;;  %7450 = vmatpush3.bf16.msra.mxu1 %v8715_v26  ;;  %v8721_v52 = vld [vmem:[%s10292_s2 + $0x118] sm:$0xff]   ;;  %v10379_v26 = vld [vmem:[#allocation4_spill] sm:$0xff] }
 0x1fa   : > { %7882 = vmatpush3.bf16.msra.mxu0 %v8716_v59  ;;  %7421 = vmatprep.mubr.bf16.mxu1 %v10378_v33  ;;  %v10380_v59 = vld [vmem:[#allocation5_spill] sm:$0xff]  ;;  %v10391_v33 = vld [vmem:[#allocation16_spill] sm:$0xff] }
 0x1fb   : > { %7853 = vmatprep.mubr.bf16.mxu0 %v9580_v57  ;;  %7451 = vmatprep.subr.bf16.mxu1 %v8717_v43  ;;  %v8722_v57 = vld [vmem:[%s10293_s3 + $0x218] sm:$0xff]  }
 0x1fc   : > { %7883 = vmatprep.subr.bf16.mxu0 %v8718_v9 }
 0x1fd   : > { %7452 = vmatpush3.bf16.msra.mxu1 %v8717_v43  ;;  %v10390_v43 = vld [vmem:[#allocation15_spill] sm:$0xff] }
 0x1fe   : > { %7884 = vmatpush3.bf16.msra.mxu0 %v8718_v9  ;;  %7453 = vmatprep.subr.bf16.mxu1 %v8719_v17 }
 0x1ff   : > { %7885 = vmatprep.subr.bf16.mxu0 %v8720_v30 }
 0x200   : > { %7422 = vmatmul.mubr.bf16.gmra.mrb[4].mxu1 %v10379_v26 }
 0x201   : > { %7854 = vmatmul.mubr.bf16.gmra.mrb[4].mxu0 %v9609_v15  ;;  %7425 = vmatprep.mubr.bf16.mxu1 %v10380_v59  ;;  %v8725_v15 = vld [vmem:[%s10292_s2 + $0x128] sm:$0xff]  }
 0x202   : > { %7857 = vmatprep.mubr.bf16.mxu0 %v9612_v16  ;;  %7454 = vmatpush3.bf16.msra.mxu1 %v8719_v17  ;;  %v10381_v16 = vld [vmem:[#allocation6_spill] sm:$0xff] }
 0x203   : > { %7886 = vmatpush3.bf16.msra.mxu0 %v8720_v30  ;;  %7455 = vmatprep.subr.bf16.mxu1 %v8721_v52 }
 0x204   : > { %7887 = vmatprep.subr.bf16.mxu0 %v8722_v57 }
 0x206   : > { %7456 = vmatpush3.bf16.msra.mxu1 %v8721_v52 }
 0x207   : > { %7888 = vmatpush3.bf16.msra.mxu0 %v8722_v57  ;;  %7457 = vmatprep.subr.bf16.mxu1 %v8723_v29 }
 0x208   : > { %7426 = vmatmul.mubr.bf16.gmra.mrb[8].mxu1 %v10381_v16  ;;  %7889 = vmatprep.subr.bf16.mxu0 %v8724_v39 }
 0x209   : > { %7858 = vmatmul.mubr.bf16.gmra.mrb[8].mxu0 %v9641_v42  ;;  %7429 = vmatprep.mubr.bf16.mxu1 %v10382_v6  ;;  %v8729_v42 = vld [vmem:[%s10292_s2 + $0x138] sm:$0xff]  }
 0x20a   : > { %7861 = vmatprep.mubr.bf16.mxu0 %v9644_v25  ;;  %7458 = vmatpush3.bf16.msra.mxu1 %v8723_v29  ;;  %v10383_v25 = vld [vmem:[#allocation8_spill] sm:$0xff] }
 0x20b   : > { %7890 = vmatpush3.bf16.msra.mxu0 %v8724_v39  ;;  %7459 = vmatprep.subr.bf16.mxu1 %v8725_v15 }
 0x20c   : > { %7891 = vmatprep.subr.bf16.mxu0 %v8726_v56 }
 0x20e   : > { %7460 = vmatpush3.bf16.msra.mxu1 %v8725_v15 }
 0x20f   : > { %7892 = vmatpush3.bf16.msra.mxu0 %v8726_v56  ;;  %7461 = vmatprep.subr.bf16.mxu1 %v8727_v28 }
 0x210   : > { %7430 = vmatmul.mubr.bf16.gmra.mrb[12].mxu1 %v10383_v25  ;;  %7893 = vmatprep.subr.bf16.mxu0 %v8728_v19 }
 0x211   : > { %7862 = vmatmul.mubr.bf16.gmra.mrb[12].mxu0 %v9677_v27  ;;  %7433 = vmatprep.mubr.bf16.mxu1 %v10384_v48  ;;  %v10387_v27 = vld [vmem:[#allocation12_spill] sm:$0xff] }
 0x212   : > { %7865 = vmatprep.mubr.bf16.mxu0 %v9680_v5  ;;  %7462 = vmatpush3.bf16.msra.mxu1 %v8727_v28  ;;  %v10388_v5 = vld [vmem:[#allocation13_spill] sm:$0xff] }
 0x213   : > { %7894 = vmatpush3.bf16.msra.mxu0 %v8728_v19  ;;  %7463 = vmatprep.subr.bf16.mxu1 %v8729_v42 }
 0x214   : > { %7895 = vmatprep.subr.bf16.mxu0 %v8730_v36 }
 0x216   : > { %7464 = vmatpush3.bf16.msra.mxu1 %v8729_v42 }
 0x217   : > { %7896 = vmatpush3.bf16.msra.mxu0 %v8730_v36 }
 0x218   : > { %7434 = vmatmul.mubr.bf16.gmra.mrb[16].mxu1 %v10385_v51 }
 0x219   : > { %7866 = vmatmul.mubr.bf16.gmra.mrb[16].mxu0 %v9699_v0  ;;  %7437 = vmatprep.mubr.bf16.mxu1 %v10386_v7  ;;  %v5398_v0 = vrot.slane %v9911_v10, 1 }
 0x21a   : > { %7869 = vmatprep.mubr.bf16.mxu0 %v9702_v47  ;;  %v5399_v47 = vrot.slane %v8794_v44, 1 }
 0x21c   : > { %v5400_v9 = vsel %vm4191_vm1, %v5398_v0, %v5399_v47 }
 0x220   : > { %7438 = vmatmul.mubr.bf16.gmra.mrb[20].mxu1 %v10387_v27 }
 0x221   : > { %7870 = vmatmul.mubr.bf16.gmra.mrb[20].mxu0 %v9719_v20  ;;  %7441 = vmatprep.mubr.bf16.mxu1 %v10388_v5  ;;  %v10209_v20 = vld [vmem:[%s10294_s4] ss:$0 sm:$0xff] }
 0x222   : > { %7873 = vmatprep.mubr.bf16.mxu0 %v9722_v13  ;;  %v10392_v13 = vld [vmem:[#allocation27_spill] sm:$0xff] }
 0x228   : > { %7442 = vmatmul.mubr.bf16.gmra.mrb[24].mxu1 %v10389_v55 }
 0x229   : > { %7874 = vmatmul.mubr.bf16.gmra.mrb[24].mxu0 %v9745_v46  ;;  %7445 = vmatprep.mubr.bf16.mxu1 %v10390_v43 }
 0x22a   : > { %7877 = vmatprep.mubr.bf16.mxu0 %v10001_v45 }
 0x230   : > { %7446 = vmatmul.mubr.bf16.gmra.mrb[28].mxu1 %v10391_v33 }
 0x231   : > { %7878 = vmatmul.mubr.bf16.gmra.mrb[28].mxu0 %v5400_v9  ;;  %7465 = vmatprep.mubr.bf16.mxu1 %v10008_v24 }
 0x232   : > { %7897 = vmatprep.mubr.bf16.mxu0 %v9766_v58 }
 0x238   : > { %7466 = vmatmul.mubr.bf16.vlgmr.msra.gmra.mrb[0].mxu1 %v9208_v22 }
 0x239   : > { %7898 = vmatmul.mubr.bf16.vlgmr.msra.gmra.mrb[0].mxu0 %v9787_v3  ;;  %7469 = vmatprep.mubr.bf16.mxu1 %v9218_v31  ;;  %v8795_v31 = vld [vmem:[%s8867_s14 + $0xcc] sm:$0xff]  }
 0x23a   : > { %7901 = vmatprep.mubr.bf16.mxu0 %v9790_v18  ;;  %v5404_v22 = vrot.slane %v8795_v31, 1 }
 0x240   : > { %7470 = vmatmul.mubr.bf16.gmra.mrb[4].mxu1 %v9226_v34  ;;  %v8796_v34 = vld [vmem:[%s8867_s14 + $0xd4] ss:$0 sps:$4 sm:$0x11]  }
 0x241   : > { %7902 = vmatmul.mubr.bf16.gmra.mrb[4].mxu0 %v9813_v11  ;;  %7473 = vmatprep.mubr.bf16.mxu1 %v9246_v63  ;;  %v5405_v63 = vrot.slane %v8796_v34, 1 }
 0x242   : > { %7905 = vmatprep.mubr.bf16.mxu0 %v9816_v2 }
 0x243   : > { %v5406_v46 = vsel %vm4191_vm1, %v5404_v22, %v5405_v63 }
 0x248   : > { %7474 = vmatmul.mubr.bf16.gmra.mrb[8].mxu1 %v10365_v41 }
 0x249   : > { %7906 = vmatmul.mubr.bf16.gmra.mrb[8].mxu0 %v9839_v40  ;;  %7477 = vmatprep.mubr.bf16.mxu1 %v10366_v37 }
 0x24a   : > { %7909 = vmatprep.mubr.bf16.mxu0 %v9842_v1 }
 0x250   : > { %7478 = vmatmul.mubr.bf16.gmra.mrb[12].mxu1 %v10367_v60 }
 0x251   : > { %7910 = vmatmul.mubr.bf16.gmra.mrb[12].mxu0 %v9865_v14  ;;  %7481 = vmatprep.mubr.bf16.mxu1 %v10368_v38 }
 0x252   : > { %7913 = vmatprep.mubr.bf16.mxu0 %v9868_v49 }
 0x258   : > { %7482 = vmatmul.mubr.bf16.gmra.mrb[16].mxu1 %v10369_v21 }
 0x259   : > { %7914 = vmatmul.mubr.bf16.gmra.mrb[16].mxu0 %v9879_v62  ;;  %7485 = vmatprep.mubr.bf16.mxu1 %v10370_v61 }
 0x25a   : > { %7917 = vmatprep.mubr.bf16.mxu0 %v9882_v32 }
 0x260   : > { %7486 = vmatmul.mubr.bf16.gmra.mrb[20].mxu1 %v10371_v54 }
 0x261   : > { %7918 = vmatmul.mubr.bf16.gmra.mrb[20].mxu0 %v9893_v35  ;;  %7489 = vmatprep.mubr.bf16.mxu1 %v10374_v4 }
 0x262   : > { %7921 = vmatprep.mubr.bf16.mxu0 %v9896_v8 }
 0x268   : > { %7490 = vmatmul.mubr.bf16.gmra.mrb[24].mxu1 %v10375_v23 }
 0x269   : > { %7922 = vmatmul.mubr.bf16.gmra.mrb[24].mxu0 %v9908_v50  ;;  %7493 = vmatprep.mubr.bf16.mxu1 %v10376_v12 }
 0x26a   : > { %7925 = vmatprep.mubr.bf16.mxu0 %v10092_v53 }
 0x270   : > { %7494 = vmatmul.mubr.bf16.gmra.mrb[28].mxu1 %v10392_v13 }
 0x271   : > { %7926 = vmatmul.mubr.bf16.gmra.mrb[28].mxu0 %v5406_v46 }
 0x30b   : > { %v7467_v58 = vpop.f32.mrb[0].mxu1 }
 0x30c   : > { %v7929_v3 = vadd.f32 %v7467_v58, %v10209_v20  ;;  %v7899_v18 = vpop.f32.mrb[0].mxu0  ;;  %v3200_v11 = vpop.f32.mrb[1].mxu1 }
 0x30d   : > { %v7931_v2 = vadd.f32 %v10209_v20, %v3200_v11  ;;  %v5765_v40 = vpop.f32.mrb[1].mxu0  ;;  %v7468_v1 = vpop.f32.mrb[2].mxu1 }
 0x30e   : > { %v7930_v14 = vadd.f32 %v7929_v3, %v7899_v18  ;;  %v7933_v49 = vadd.f32 %v7468_v1, %v10209_v20  ;;  %v7900_v62 = vpop.f32.mrb[2].mxu0  ;;  %v3203_v32 = vpop.f32.mrb[3].mxu1 }
 0x30f   : > { %v7932_v35 = vadd.f32 %v7931_v2, %v5765_v40  ;;  %v7935_v8 = vadd.f32 %v10209_v20, %v3203_v32  ;;  %v5768_v50 = vpop.f32.mrb[3].mxu0 }
 0x310   : > { %5926 = vst [vmem:[%s8857_s8 + $0x10] sm:$0xff] %v7930_v14  ;;  %v7934_v10 = vadd.f32 %v7933_v49, %v7900_v62  ;;  %v5999_v54 = vmul.f32 %v7930_v14, %v7930_v14 }
 0x311   : > { %5924 = vst [vmem:[%s8857_s8] sm:$0xff] %v7932_v35  ;;  %v7936_v45 = vadd.f32 %v7935_v8, %v5768_v50  ;;  %v5997_v24 = vmul.f32 %v7932_v35, %v7932_v35 }
 0x312   : > { %5927 = vst [vmem:[%s8857_s8 + $0x18] sm:$0xff] %v7934_v10  ;;  %v6000_v30 = vmul.f32 %v7934_v10, %v7934_v10 }
 0x313   : > { %5925 = vst [vmem:[%s8857_s8 + $0x8] sm:$0xff] %v7936_v45  ;;  %v5957_v41 = vadd.f32 %v7936_v45, %v7932_v35  ;;  %v5998_v37 = vmul.f32 %v7936_v45, %v7936_v45  ;;  %v7471_v60 = vpop.f32.mrb[4].mxu1 }
 0x314   : > { %v7937_v38 = vadd.f32 %v7471_v60, %v10209_v20  ;;  %v7903_v21 = vpop.f32.mrb[4].mxu0  ;;  %v3216_v61 = vpop.f32.mrb[5].mxu1 }
 0x315   : > { %v5958_v4 = vadd.f32 %v7930_v14, %v5957_v41  ;;  %v6029_v23 = vadd.f32 %v5998_v37, %v5997_v24  ;;  %v7939_v53 = vadd.f32 %v10209_v20, %v3216_v61  ;;  %v5781_v12 = vpop.f32.mrb[5].mxu0  ;;  %v7472_v17 = vpop.f32.mrb[6].mxu1 }
 0x316   : > { %v7938_v52 = vadd.f32 %v7937_v38, %v7903_v21  ;;  %v7941_v26 = vadd.f32 %v7472_v17, %v10209_v20  ;;  %v7904_v57 = vpop.f32.mrb[6].mxu0  ;;  %v3219_v59 = vpop.f32.mrb[7].mxu1 }
 0x317   : > { %v6030_v29 = vadd.f32 %v6029_v23, %v5999_v54  ;;  %v7940_v39 = vadd.f32 %v7939_v53, %v5781_v12  ;;  %v5959_v15 = vadd.f32 %v7934_v10, %v5958_v4  ;;  %v7943_v16 = vadd.f32 %v10209_v20, %v3219_v59  ;;  %v5784_v56 = vpop.f32.mrb[7].mxu0 }
 0x318   : > { %5930 = vst [vmem:[%s8857_s8 + $0x30] sm:$0xff] %v7938_v52  ;;  %v7942_v6 = vadd.f32 %v7941_v26, %v7904_v57  ;;  %v6003_v43 = vmul.f32 %v7938_v52, %v7938_v52 }
 0x319   : > { %5928 = vst [vmem:[%s8857_s8 + $0x20] sm:$0xff] %v7940_v39  ;;  %v5960_v28 = vadd.f32 %v7940_v39, %v5959_v15  ;;  %v6001_v19 = vmul.f32 %v7940_v39, %v7940_v39  ;;  %v6031_v42 = vadd.f32 %v6030_v29, %v6000_v30  ;;  %v7944_v25 = vadd.f32 %v7943_v16, %v5784_v56 }
 0x31a   : > { %5931 = vst [vmem:[%s8857_s8 + $0x38] sm:$0xff] %v7942_v6  ;;  %v6004_v31 = vmul.f32 %v7942_v6, %v7942_v6 }
 0x31b   : > { %v6032_v36 = vadd.f32 %v6031_v42, %v6001_v19  ;;  %5929 = vst [vmem:[%s8857_s8 + $0x28] sm:$0xff] %v7944_v25  ;;  %v5961_v48 = vadd.f32 %v7944_v25, %v5960_v28  ;;  %v6002_v51 = vmul.f32 %v7944_v25, %v7944_v25  ;;  %v7475_v7 = vpop.f32.mrb[8].mxu1 }
 0x31c   : > { %v7945_v27 = vadd.f32 %v7475_v7, %v10209_v20  ;;  %v7907_v5 = vpop.f32.mrb[8].mxu0  ;;  %v3232_v55 = vpop.f32.mrb[9].mxu1 }
 0x31d   : > { %v5962_v0 = vadd.f32 %v7938_v52, %v5961_v48  ;;  %v6033_v44 = vadd.f32 %v6032_v36, %v6002_v51  ;;  %v7947_v47 = vadd.f32 %v10209_v20, %v3232_v55  ;;  %v5797_v9 = vpop.f32.mrb[9].mxu0  ;;  %v7476_v33 = vpop.f32.mrb[10].mxu1 }
 0x31e   : > { %v7946_v22 = vadd.f32 %v7945_v27, %v7907_v5  ;;  %v7949_v34 = vadd.f32 %v7476_v33, %v10209_v20  ;;  %v7908_v63 = vpop.f32.mrb[10].mxu0  ;;  %v3235_v46 = vpop.f32.mrb[11].mxu1 }
 0x31f   : > { %v6034_v13 = vadd.f32 %v6033_v44, %v6003_v43  ;;  %v7948_v58 = vadd.f32 %v7947_v47, %v5797_v9  ;;  %v5963_v3 = vadd.f32 %v7942_v6, %v5962_v0  ;;  %v7951_v18 = vadd.f32 %v10209_v20, %v3235_v46  ;;  %v5800_v11 = vpop.f32.mrb[11].mxu0 }
 0x320   : > { %5934 = vst [vmem:[%s8857_s8 + $0x50] sm:$0xff] %v7946_v22  ;;  %v7950_v2 = vadd.f32 %v7949_v34, %v7908_v63  ;;  %v6007_v24 = vmul.f32 %v7946_v22, %v7946_v22 }
 0x321   : > { %5932 = vst [vmem:[%s8857_s8 + $0x40] sm:$0xff] %v7948_v58  ;;  %v5964_v40 = vadd.f32 %v7948_v58, %v5963_v3  ;;  %v6005_v1 = vmul.f32 %v7948_v58, %v7948_v58  ;;  %v6035_v14 = vadd.f32 %v6034_v13, %v6004_v31  ;;  %v7952_v49 = vadd.f32 %v7951_v18, %v5800_v11 }
 0x322   : > { %5935 = vst [vmem:[%s8857_s8 + $0x58] sm:$0xff] %v7950_v2  ;;  %v6008_v61 = vmul.f32 %v7950_v2, %v7950_v2 }
 0x323   : > { %v6036_v62 = vadd.f32 %v6035_v14, %v6005_v1  ;;  %5933 = vst [vmem:[%s8857_s8 + $0x48] sm:$0xff] %v7952_v49  ;;  %v5965_v32 = vadd.f32 %v7952_v49, %v5964_v40  ;;  %v6006_v35 = vmul.f32 %v7952_v49, %v7952_v49  ;;  %v7479_v8 = vpop.f32.mrb[12].mxu1 }
 0x324   : > { %v7953_v50 = vadd.f32 %v7479_v8, %v10209_v20  ;;  %v7911_v10 = vpop.f32.mrb[12].mxu0  ;;  %v3248_v45 = vpop.f32.mrb[13].mxu1 }
 0x325   : > { %v5966_v41 = vadd.f32 %v7946_v22, %v5965_v32  ;;  %v6037_v37 = vadd.f32 %v6036_v62, %v6006_v35  ;;  %v7955_v60 = vadd.f32 %v10209_v20, %v3248_v45  ;;  %v5813_v38 = vpop.f32.mrb[13].mxu0  ;;  %v7480_v21 = vpop.f32.mrb[14].mxu1 }
 0x326   : > { %v7954_v54 = vadd.f32 %v7953_v50, %v7911_v10  ;;  %v7957_v4 = vadd.f32 %v7480_v21, %v10209_v20  ;;  %v7912_v23 = vpop.f32.mrb[14].mxu0  ;;  %v3251_v53 = vpop.f32.mrb[15].mxu1 }
 0x327   : > { %v6038_v12 = vadd.f32 %v6037_v37, %v6007_v24  ;;  %v7956_v17 = vadd.f32 %v7955_v60, %v5813_v38  ;;  %v5967_v30 = vadd.f32 %v7950_v2, %v5966_v41  ;;  %v7959_v52 = vadd.f32 %v10209_v20, %v3251_v53  ;;  %v5816_v26 = vpop.f32.mrb[15].mxu0 }
 0x328   : > { %5938 = vst [vmem:[%s8857_s8 + $0x70] sm:$0xff] %v7954_v54  ;;  %v7958_v57 = vadd.f32 %v7957_v4, %v7912_v23  ;;  %v6011_v36 = vmul.f32 %v7954_v54, %v7954_v54 }
 0x329   : > { %5936 = vst [vmem:[%s8857_s8 + $0x60] sm:$0xff] %v7956_v17  ;;  %v5968_v59 = vadd.f32 %v7956_v17, %v5967_v30  ;;  %v6009_v29 = vmul.f32 %v7956_v17, %v7956_v17  ;;  %v6039_v39 = vadd.f32 %v6038_v12, %v6008_v61  ;;  %v7960_v15 = vadd.f32 %v7959_v52, %v5816_v26 }
 0x32a   : > { %5939 = vst [vmem:[%s8857_s8 + $0x78] sm:$0xff] %v7958_v57  ;;  %v6012_v55 = vmul.f32 %v7958_v57, %v7958_v57 }
 0x32b   : > { %v6040_v16 = vadd.f32 %v6039_v39, %v6009_v29  ;;  %5937 = vst [vmem:[%s8857_s8 + $0x68] sm:$0xff] %v7960_v15  ;;  %v5969_v56 = vadd.f32 %v7960_v15, %v5968_v59  ;;  %v6010_v6 = vmul.f32 %v7960_v15, %v7960_v15  ;;  %v7483_v28 = vpop.f32.mrb[16].mxu1 }
 0x32c   : > { %v7961_v19 = vadd.f32 %v7483_v28, %v10209_v20  ;;  %v7915_v42 = vpop.f32.mrb[16].mxu0  ;;  %v3264_v25 = vpop.f32.mrb[17].mxu1 }
 0x32d   : > { %v5970_v48 = vadd.f32 %v7954_v54, %v5969_v56  ;;  %v6041_v51 = vadd.f32 %v6040_v16, %v6010_v6  ;;  %v7963_v7 = vadd.f32 %v10209_v20, %v3264_v25  ;;  %v5829_v27 = vpop.f32.mrb[17].mxu0  ;;  %v7484_v5 = vpop.f32.mrb[18].mxu1 }
 0x32e   : > { %v7962_v43 = vadd.f32 %v7961_v19, %v7915_v42  ;;  %v7965_v0 = vadd.f32 %v7484_v5, %v10209_v20  ;;  %v7916_v44 = vpop.f32.mrb[18].mxu0  ;;  %v3267_v47 = vpop.f32.mrb[19].mxu1 }
 0x32f   : > { %v6042_v9 = vadd.f32 %v6041_v51, %v6011_v36  ;;  %v7964_v33 = vadd.f32 %v7963_v7, %v5829_v27  ;;  %v5971_v31 = vadd.f32 %v7958_v57, %v5970_v48  ;;  %v7967_v22 = vadd.f32 %v10209_v20, %v3267_v47  ;;  %v5832_v34 = vpop.f32.mrb[19].mxu0 }
 0x330   : > { %5942 = vst [vmem:[%s8857_s8 + $0x90] sm:$0xff] %v7962_v43  ;;  %v7966_v63 = vadd.f32 %v7965_v0, %v7916_v44  ;;  %v6015_v62 = vmul.f32 %v7962_v43, %v7962_v43 }
 0x331   : > { %5940 = vst [vmem:[%s8857_s8 + $0x80] sm:$0xff] %v7964_v33  ;;  %v5972_v46 = vadd.f32 %v7964_v33, %v5971_v31  ;;  %v6013_v13 = vmul.f32 %v7964_v33, %v7964_v33  ;;  %v6043_v58 = vadd.f32 %v6042_v9, %v6012_v55  ;;  %v7968_v3 = vadd.f32 %v7967_v22, %v5832_v34 }
 0x332   : > { %5943 = vst [vmem:[%s8857_s8 + $0x98] sm:$0xff] %v7966_v63  ;;  %v6016_v45 = vmul.f32 %v7966_v63, %v7966_v63 }
 0x333   : > { %v6044_v18 = vadd.f32 %v6043_v58, %v6013_v13  ;;  %5941 = vst [vmem:[%s8857_s8 + $0x88] sm:$0xff] %v7968_v3  ;;  %v5973_v11 = vadd.f32 %v7968_v3, %v5972_v46  ;;  %v6014_v2 = vmul.f32 %v7968_v3, %v7968_v3  ;;  %v7487_v40 = vpop.f32.mrb[20].mxu1 }
 0x334   : > { %v7969_v1 = vadd.f32 %v7487_v40, %v10209_v20  ;;  %v7919_v14 = vpop.f32.mrb[20].mxu0  ;;  %v3280_v49 = vpop.f32.mrb[21].mxu1 }
 0x335   : > { %v5974_v32 = vadd.f32 %v7962_v43, %v5973_v11  ;;  %v6045_v35 = vadd.f32 %v6044_v18, %v6014_v2  ;;  %v7971_v8 = vadd.f32 %v10209_v20, %v3280_v49  ;;  %v5845_v50 = vpop.f32.mrb[21].mxu0  ;;  %v7488_v10 = vpop.f32.mrb[22].mxu1 }
 0x336   : > { %v7970_v24 = vadd.f32 %v7969_v1, %v7919_v14  ;;  %v7973_v41 = vadd.f32 %v7488_v10, %v10209_v20  ;;  %v7920_v37 = vpop.f32.mrb[22].mxu0  ;;  %v3283_v60 = vpop.f32.mrb[23].mxu1 }
 0x337   : > { %v6046_v38 = vadd.f32 %v6045_v35, %v6015_v62  ;;  %v7972_v21 = vadd.f32 %v7971_v8, %v5845_v50  ;;  %v5975_v61 = vadd.f32 %v7966_v63, %v5974_v32  ;;  %v7975_v54 = vadd.f32 %v10209_v20, %v3283_v60  ;;  %v5848_v4 = vpop.f32.mrb[23].mxu0 }
 0x338   : > { %5946 = vst [vmem:[%s8857_s8 + $0xb0] sm:$0xff] %v7970_v24  ;;  %v7974_v23 = vadd.f32 %v7973_v41, %v7920_v37  ;;  %v6019_v16 = vmul.f32 %v7970_v24, %v7970_v24 }
 0x339   : > { %5944 = vst [vmem:[%s8857_s8 + $0xa0] sm:$0xff] %v7972_v21  ;;  %v5976_v53 = vadd.f32 %v7972_v21, %v5975_v61  ;;  %v6017_v12 = vmul.f32 %v7972_v21, %v7972_v21  ;;  %v6047_v17 = vadd.f32 %v6046_v38, %v6016_v45  ;;  %v7976_v30 = vadd.f32 %v7975_v54, %v5848_v4 }
 0x33a   : > { %5947 = vst [vmem:[%s8857_s8 + $0xb8] sm:$0xff] %v7974_v23  ;;  %v6020_v25 = vmul.f32 %v7974_v23, %v7974_v23 }
 0x33b   : > { %v6048_v52 = vadd.f32 %v6047_v17, %v6017_v12  ;;  %5945 = vst [vmem:[%s8857_s8 + $0xa8] sm:$0xff] %v7976_v30  ;;  %v5977_v26 = vadd.f32 %v7976_v30, %v5976_v53  ;;  %v6018_v57 = vmul.f32 %v7976_v30, %v7976_v30  ;;  %v7491_v59 = vpop.f32.mrb[24].mxu1 }
 0x33c   : > { %v7977_v29 = vadd.f32 %v7491_v59, %v10209_v20  ;;  %v7923_v39 = vpop.f32.mrb[24].mxu0  ;;  %v3296_v15 = vpop.f32.mrb[25].mxu1 }
 0x33d   : > { %v5978_v56 = vadd.f32 %v7970_v24, %v5977_v26  ;;  %v6049_v6 = vadd.f32 %v6048_v52, %v6018_v57  ;;  %v7979_v28 = vadd.f32 %v10209_v20, %v3296_v15  ;;  %v5861_v19 = vpop.f32.mrb[25].mxu0  ;;  %v7492_v42 = vpop.f32.mrb[26].mxu1 }
 0x33e   : > { %v7978_v36 = vadd.f32 %v7977_v29, %v7923_v39  ;;  %v7981_v48 = vadd.f32 %v7492_v42, %v10209_v20  ;;  %v7924_v51 = vpop.f32.mrb[26].mxu0  ;;  %v3299_v7 = vpop.f32.mrb[27].mxu1 }
 0x33f   : > { %v6050_v27 = vadd.f32 %v6049_v6, %v6019_v16  ;;  %v7980_v5 = vadd.f32 %v7979_v28, %v5861_v19  ;;  %v5979_v55 = vadd.f32 %v7974_v23, %v5978_v56  ;;  %v7983_v43 = vadd.f32 %v10209_v20, %v3299_v7  ;;  %v5864_v0 = vpop.f32.mrb[27].mxu0  ;;  %v5956_v19 = vld [vmem:[%s10296_s6] sm:$0x1] }
 0x340   : > { %5950 = vst [vmem:[%s8857_s8 + $0xd0] sm:$0xff] %v7978_v36  ;;  %v7982_v44 = vadd.f32 %v7981_v48, %v7924_v51  ;;  %v6023_v18 = vmul.f32 %v7978_v36, %v7978_v36 }
 0x341   : > { %5948 = vst [vmem:[%s8857_s8 + $0xc0] sm:$0xff] %v7980_v5  ;;  %v5980_v47 = vadd.f32 %v7980_v5, %v5979_v55  ;;  %v6021_v9 = vmul.f32 %v7980_v5, %v7980_v5  ;;  %v6051_v33 = vadd.f32 %v6050_v27, %v6020_v25  ;;  %v7984_v31 = vadd.f32 %v7983_v43, %v5864_v0 }
 0x342   : > { %5951 = vst [vmem:[%s8857_s8 + $0xd8] sm:$0xff] %v7982_v44  ;;  %v6024_v49 = vmul.f32 %v7982_v44, %v7982_v44 }
 0x343   : > { %v6052_v22 = vadd.f32 %v6051_v33, %v6021_v9  ;;  %5949 = vst [vmem:[%s8857_s8 + $0xc8] sm:$0xff] %v7984_v31  ;;  %v5981_v34 = vadd.f32 %v7984_v31, %v5980_v47  ;;  %v6022_v63 = vmul.f32 %v7984_v31, %v7984_v31  ;;  %v7495_v46 = vpop.f32.mrb[28].mxu1 }
 0x344   : > { %v7985_v13 = vadd.f32 %v7495_v46, %v10209_v20  ;;  %v7927_v58 = vpop.f32.mrb[28].mxu0  ;;  %v3312_v3 = vpop.f32.mrb[29].mxu1 }
 0x345   : > { %v5982_v11 = vadd.f32 %v7978_v36, %v5981_v34  ;;  %v6053_v2 = vadd.f32 %v6052_v22, %v6022_v63  ;;  %v7987_v40 = vadd.f32 %v10209_v20, %v3312_v3  ;;  %v5877_v1 = vpop.f32.mrb[29].mxu0  ;;  %v7496_v14 = vpop.f32.mrb[30].mxu1  ;;  %v5996_v36 = vld [vmem:[%s10297_s7] sm:$0x1] }
 0x346   : > { %v7986_v62 = vadd.f32 %v7985_v13, %v7927_v58  ;;  %v7989_v32 = vadd.f32 %v7496_v14, %v10209_v20  ;;  %v7928_v35 = vpop.f32.mrb[30].mxu0  ;;  %v3315_v8 = vpop.f32.mrb[31].mxu1 }
 0x347   : > { %v6054_v50 = vadd.f32 %v6053_v2, %v6023_v18  ;;  %v7988_v10 = vadd.f32 %v7987_v40, %v5877_v1  ;;  %v5983_v45 = vadd.f32 %v7982_v44, %v5982_v11  ;;  %v7991_v24 = vadd.f32 %v10209_v20, %v3315_v8  ;;  %v5880_v41 = vpop.f32.mrb[31].mxu0 }
 0x348   : > { %5954 = vst [vmem:[%s8857_s8 + $0xf0] sm:$0xff] %v7986_v62  ;;  %v7990_v37 = vadd.f32 %v7989_v32, %v7928_v35  ;;  %v6027_v53 = vmul.f32 %v7986_v62, %v7986_v62 }
 0x349   : > { %5952 = vst [vmem:[%s8857_s8 + $0xe0] sm:$0xff] %v7988_v10  ;;  %v5984_v60 = vadd.f32 %v7988_v10, %v5983_v45  ;;  %v6025_v38 = vmul.f32 %v7988_v10, %v7988_v10  ;;  %v6055_v21 = vadd.f32 %v6054_v50, %v6024_v49  ;;  %v7992_v61 = vadd.f32 %v7991_v24, %v5880_v41 }
 0x34a   : > { %5955 = vst [vmem:[%s8857_s8 + $0xf8] sm:$0xff] %v7990_v37  ;;  %v6028_v30 = vmul.f32 %v7990_v37, %v7990_v37 }
 0x34b   : > { %v6056_v54 = vadd.f32 %v6055_v21, %v6025_v38  ;;  %5953 = vst [vmem:[%s8857_s8 + $0xe8] sm:$0xff] %v7992_v61  ;;  %v5985_v4 = vadd.f32 %v7992_v61, %v5984_v60  ;;  %v6026_v23 = vmul.f32 %v7992_v61, %v7992_v61 }
 0x34d   : > { %v5986_v12 = vadd.f32 %v7986_v62, %v5985_v4  ;;  %v6057_v17 = vadd.f32 %v6056_v54, %v6026_v23 }
 0x34f   : > { %v5987_v52 = vadd.f32 %v7990_v37, %v5986_v12  ;;  %v6058_v26 = vadd.f32 %v6057_v17, %v6027_v53 }
 0x351   : > { %v5988_v20 = vrot.slane %v5987_v52, 4  ;;  %v6059_v57 = vadd.f32 %v6058_v26, %v6028_v30 }
 0x353   : > { %v5989_v59 = vadd.f32 %v5988_v20, %v5987_v52  ;;  %v6060_v29 = vrot.slane %v6059_v57, 4 }
 0x355   : > { %v5990_v39 = vrot.slane %v5989_v59, 2  ;;  %v6061_v15 = vadd.f32 %v6060_v29, %v6059_v57 }
 0x357   : > { %v5991_v16 = vadd.f32 %v5990_v39, %v5989_v59  ;;  %v6062_v56 = vrot.slane %v6061_v15, 2 }
 0x359   : > { %v5992_v6 = vrot.slane %v5991_v16, 1  ;;  %v6063_v28 = vadd.f32 %v6062_v56, %v6061_v15 }
 0x35b   : > { %v5993_v42 = vadd.f32 %v5992_v6, %v5991_v16  ;;  %v6064_v25 = vrot.slane %v6063_v28, 1 }
 0x35d   : > { %v5994_v48 = vadd.f32 %v5993_v42, %v5956_v19  ;;  %v6065_v51 = vadd.f32 %v6064_v25, %v6063_v28 }
 0x35f   : > { %5995 = vst [vmem:[%s10296_s6] sm:$0x1] %v5994_v48  ;;  %v6066_v7 = vadd.f32 %v6065_v51, %v5996_v36 }
 0x361   : > { %6067 = vst [vmem:[%s10297_s7] sm:$0x1] %v6066_v7 }
 0x362 PF: > { %s18_s24 = sadd.s32 1, %s8803_s24  }
 0x363   : > { %p15_p5 = scmp.ge.s32.totalorder %s18_s24, 4  }
 0x365   :  { %17 = sbr.rel (!%p15_p5) target bundleno = 1 (0x1), region = 109 }

// kernel: up_block_forward.6
= control target key start
LH: loop header
LB: loop body
LE: loop exit
PB: predicated region body
PF: predicated region fallthrough
CT: control target
= control target key end

     0   :  { %s4958_s24 = smov 0   ;;  %s6137_s0 = inlined_call_operand.vmem [shape: f32[2,18,18,128], index: 0, kind: input, shape index: {}]   ;;  %s6138_s1 = inlined_call_operand.vmem [shape: f32[1,128], index: 1, kind: input, shape index: {}]   ;;  %s6139_s2 = inlined_call_operand.vmem [shape: f32[1,128], index: 2, kind: input, shape index: {}]   ;;  %s6140_s3 = inlined_call_operand.vmem [shape: bf16[9,128,128], index: 3, kind: input, shape index: {}]   ;;  %s6141_s4 = inlined_call_operand.vmem [shape: f32[1,128], index: 4, kind: input, shape index: {}]   ;;  %s6142_s5 = inlined_call_operand.vmem [shape: f32[2,16,16,128], index: 5, kind: output, shape index: {0}]   ;;  %s6143_s6 = inlined_call_operand.vmem [shape: f32[1,128], index: 6, kind: output, shape index: {1}]   ;;  %s6144_s7 = inlined_call_operand.vmem [shape: f32[1,128], index: 7, kind: output, shape index: {2}]  }
   0x1 LB: > { %s3506_s25 = sadd.s32 4294967295, %s4912_s24   ;;  %p3510_p0 = scmp.ge.s32.totalorder %s4912_s24, 1  ;;  %s4912_s24 = sphi %s4958_s24, %s18_s24  }
   0x2   : > { %p232_p1 = scmp.lt.s32.totalorder %s4912_s24, 3 }
   0x4   : > { %p233_p2 = pnand %p3510_p0, %p232_p1 }
   0x6   : > { %236 = sbr.rel (%p233_p2) target bundleno = 586 (0x24a), region = 40 }
   0xd   : > { %p264_p3 = scmp.lt.s32.totalorder %s3506_s25, 1  ;;  %p3514_p4 = scmp.ne.s32.totalorder %s3506_s25, 0 }
   0xe   : > { %v4914_v0 = vmov (!%p3514_p4), 0.0  }
   0xf   : > { %s265_s26 = scalar_select %p264_p3, %s3506_s25, 1 }
  0x10   : > { %278 = sbr.rel (%p3514_p4) target bundleno = 23 (0x17), region = 44  ;;  %279 = vst [vmem:[%s6143_s6] sm:$0x1] (!%p3514_p4), %v4914_v0  ;;  %280 = vst [vmem:[%s6144_s7] sm:$0x1] (!%p3514_p4), %v4914_v0 }
  0x11   : > { %s4811_s27 = smul.u32 432, %s265_s26  ;;  %s3858_s28 = sshll.u32 %s265_s26, 8 }
  0x12   : > { %s4969_s8 = scalar_lea.vmem %s6142_s5, %s3858_s28 }
  0x13   : > { %s4974_s11 = scalar_lea.vmem %s6137_s0, %s4811_s27 }
  0x17 PF: > { %v4824_v1 = vld [vmem:[%s6140_s3] sm:$0xff]   ;;  %v6145_v3 = vmov 0.0|0.0   ;;  %v4826_v4 = vld [vmem:[%s6140_s3 + $0x8] sm:$0xff]   ;;  %v4828_v6 = vld [vmem:[%s6140_s3 + $0x10] sm:$0xff]   ;;  %v511_v10 = vlaneseq  ;;  %vm1403_vm2 = vsmask.f32 7424 }
  0x18   : > { %v4825_v2 = vld [vmem:[%s6140_s3 + $0x100] sm:$0xff]   ;;  %4091 = vmatprep.mubr.bf16.mxu1 %v6145_v3  ;;  %4075 = vmatprep.subr.bf16.mxu1 %v4824_v1  ;;  %v4827_v5 = vld [vmem:[%s6140_s3 + $0x108] sm:$0xff]   ;;  %v4829_v7 = vld [vmem:[%s6140_s3 + $0x110] sm:$0xff]   ;;  %vm4916_vm3 = vmmov 1   ;;  %vm2444_vm5 = vcmask 1046528  }
  0x19   : > { %4267 = vmatprep.subr.bf16.mxu0 %v4825_v2  ;;  %4076 = vmatpush3.bf16.msra.mxu1 %v4824_v1  ;;  %v4830_v8 = vld [vmem:[%s6140_s3 + $0x18] sm:$0xff]   ;;  %v4832_v11 = vld [vmem:[%s6140_s3 + $0x20] sm:$0xff]   ;;  %v5013_v13 = vshrl.u32 %v511_v10, 7  ;;  %v4834_v14 = vld [vmem:[%s6140_s3 + $0x28] sm:$0xff]  }
  0x1a   : > { %4268 = vmatpush3.bf16.msra.mxu0 %v4825_v2  ;;  %4077 = vmatprep.subr.bf16.mxu1 %v4826_v4  ;;  %v4831_v9 = vld [vmem:[%s6140_s3 + $0x118] sm:$0xff]   ;;  %v4833_v12 = vld [vmem:[%s6140_s3 + $0x120] sm:$0xff]   ;;  %v286_v17 = vld [vmem:[%s4974_s11 + $0x28] sm:$0x3] }
  0x1b   : > { %4269 = vmatprep.subr.bf16.mxu0 %v4827_v5  ;;  %v284_v15 = vld [vmem:[%s4974_s11 + $0x18] sm:$0xff]  ;;  %v285_v16 = vld [vmem:[%s4974_s11 + $0x20] sm:$0xff]  ;;  %v4835_v18 = vld [vmem:[%s6140_s3 + $0x128] sm:$0xff]   ;;  %v5035_v21 = vadd.s32 16, %v5013_v13  ;;  %vm515_vm0 = vcmp.gt.s32.totalorder %v5013_v13, 0 }
  0x1c   : > { %v5027_v19 = vld [vmem:[%s6138_s1] ss:$0 sm:$0xff]  ;;  %v287_v25 = vld [vmem:[%s4974_s11 + $0x30] sm:$0xff]  ;;  %v288_v26 = vld [vmem:[%s4974_s11 + $0x38] sm:$0xff] }
  0x1d   : > { %4078 = vmatpush3.bf16.msra.mxu1 %v4826_v4  ;;  %v5032_v20 = vld [vmem:[%s6139_s2] ss:$0 sm:$0xff]  ;;  %v345_v22 = vmul.f32 %v5027_v19, %v284_v15  ;;  %v346_v23 = vmul.f32 %v5027_v19, %v285_v16  ;;  %v347_v24 = vmul.f32 %v5027_v19, %v286_v17  ;;  %v4836_v28 = vld [vmem:[%s6140_s3 + $0x30] sm:$0xff]   ;;  %vm526_vm1 = vcmp.lt.s32.totalorder %v5035_v21, 17  ;;  %v290_v39 = vld [vmem:[%s4974_s11 + $0x48] sm:$0xff] }
  0x1e   : > { %4270 = vmatpush3.bf16.msra.mxu0 %v4827_v5  ;;  %4079 = vmatprep.subr.bf16.mxu1 %v4828_v6  ;;  %v289_v27 = vld [vmem:[%s4974_s11 + $0x40] sm:$0x3]  ;;  %v4837_v32 = vld [vmem:[%s6140_s3 + $0x130] sm:$0xff]   ;;  %v348_v33 = vmul.f32 %v5027_v19, %v287_v25  ;;  %v349_v34 = vmul.f32 %v5027_v19, %v288_v26  ;;  %v292_v44 = vld [vmem:[%s4974_s11 + $0x58] sm:$0x3]  ;;  %v351_v45 = vmul.f32 %v5027_v19, %v290_v39 }
  0x1f   : > { %4271 = vmatprep.subr.bf16.mxu0 %v4829_v7  ;;  %v406_v29 = vadd.f32 %v5032_v20, %v345_v22  ;;  %v407_v30 = vadd.f32 %v5032_v20, %v346_v23  ;;  %v408_v31 = vadd.f32 %v5032_v20, %v347_v24  ;;  %v350_v35 = vmul.f32 %v5027_v19, %v289_v27  ;;  %v291_v40 = vld [vmem:[%s4974_s11 + $0x50] sm:$0xff]  ;;  %v4838_v46 = vld [vmem:[%s6140_s3 + $0x38] sm:$0xff]   ;;  %v293_v63 = vld [vmem:[%s4974_s11 + $0x60] sm:$0xff] }
  0x20   : > { %v409_v41 = vadd.f32 %v5032_v20, %v348_v33  ;;  %v410_v42 = vadd.f32 %v5032_v20, %v349_v34  ;;  %v4839_v47 = vld [vmem:[%s6140_s3 + $0x138] sm:$0xff]   ;;  %v352_v50 = vmul.f32 %v5027_v19, %v291_v40  ;;  %v353_v56 = vmul.f32 %v5027_v19, %v292_v44  ;;  %v4840_v0 = vld [vmem:[%s6140_s3 + $0xc0] sm:$0xff]   ;;  %v4843_v16 = vld [vmem:[%s6140_s3 + $0xc8] sm:$0xff]  }
  0x21   : > { %4080 = vmatpush3.bf16.msra.mxu1 %v4828_v6  ;;  %v460_v36 = vmax.f32 %v406_v29, 0.0  ;;  %v461_v37 = vmax.f32 %v407_v30, 0.0  ;;  %v462_v38 = vmax.f32 %v408_v31, 0.0  ;;  %v411_v43 = vadd.f32 %v5032_v20, %v350_v35  ;;  %v5098_v4 = vld [vmem:[%s6140_s3 + $0x1c0] sm:$0xff]   ;;  %vm5114_vm4 = vmpackc.low %vm4916_vm3, %vm515_vm0  ;;  %v295_v26 = vld [vmem:[%s4974_s11 + $0x70] sm:$0x3] }
  0x22   : > { %4272 = vmatpush3.bf16.msra.mxu0 %v4829_v7  ;;  %4081 = vmatprep.subr.bf16.mxu1 %v4830_v8  ;;  %v463_v53 = vmax.f32 %v409_v41, 0.0  ;;  %v464_v54 = vmax.f32 %v410_v42, 0.0  ;;  %v412_v57 = vadd.f32 %v5032_v20, %v351_v45  ;;  %v413_v58 = vadd.f32 %v5032_v20, %v352_v50  ;;  %v294_v7 = vld [vmem:[%s4974_s11 + $0x68] sm:$0xff]  ;;  %v296_v27 = vld [vmem:[%s4974_s11 + $0x78] sm:$0xff]  ;;  %v297_v39 = vld [vmem:[%s4974_s11 + $0x80] sm:$0xff] }
  0x23   : > { %4273 = vmatprep.subr.bf16.mxu0 %v4831_v9  ;;  %v536_v48 = vsel %vm515_vm0, %v460_v36, 0.0  ;;  %v538_v49 = vsel %vm526_vm1, %v462_v38, 0.0  ;;  %v465_v55 = vmax.f32 %v411_v43, 0.0  ;;  %v5085_v62 = vpack.c.bf16 %v461_v37, %v460_v36  ;;  %v298_v40 = vld [vmem:[%s4974_s11 + $0x88] sm:$0x3]  ;;  %v4846_v50 = vld [vmem:[%s6140_s3 + $0xd0] sm:$0xff]  }
  0x24   : > { %v5075_v51 = vpack.c.bf16 %v461_v37, %v536_v48  ;;  %v5077_v52 = vpack.c.bf16 %v538_v49, %v538_v49  ;;  %v539_v1 = vsel %vm515_vm0, %v463_v53, 0.0  ;;  %v5100_v5 = vpack.c.bf16 %v464_v54, %v463_v53  ;;  %v4842_v45 = vld [vmem:[%s6140_s3 + $0x1c8] sm:$0xff]   ;;  %v324_v3 = vld [vmem:[%s4974_s11 + $0x158] sm:$0xff]  ;;  %v5662_v13 = vld [vmem:[%s6140_s3 + $0x140] sm:$0xff]  }
  0x25   : > { %4082 = vmatpush3.bf16.msra.mxu1 %v4830_v8  ;;  %v541_v2 = vsel %vm526_vm1, %v465_v55, 0.0  ;;  %v414_v6 = vadd.f32 %v5032_v20, %v353_v56  ;;  %v5104_v10 = vpack.c.bf16 %v464_v54, %v539_v1  ;;  %v354_v17 = vmul.f32 %v5027_v19, %v293_v63 }
  0x26   : > { %4274 = vmatpush3.bf16.msra.mxu0 %v4831_v9  ;;  %4083 = vmatprep.subr.bf16.mxu1 %v4832_v11  ;;  %v1417_v59 = vshrl.u32 %v5075_v51, 16  ;;  %v1419_v60 = vshll.u32 %v5075_v51, 16  ;;  %v1424_v61 = vshll.u32 %v5077_v52, 16  ;;  %v355_v31 = vmul.f32 %v5027_v19, %v294_v7 }
  0x27   : > { %4275 = vmatprep.subr.bf16.mxu0 %v4833_v12  ;;  %6184 = vst [vmem:[#allocation2_spill] sm:$0xff] %v5104_v10  ;;  %v468_v15 = vmax.f32 %v414_v6, 0.0  ;;  %v1429_v23 = vshrl.u32 %v5104_v10, 16  ;;  %v1431_v24 = vshll.u32 %v5104_v10, 16  ;;  %v356_v37 = vmul.f32 %v5027_v19, %v295_v26  ;;  %v328_v10 = vld [vmem:[%s4974_s11 + $0x178] sm:$0x3] }
  0x28   : > { %v1421_v8 = vrot.slane %v1419_v60, 1  ;;  %v1426_v9 = vrot.slane %v1424_v61, 1  ;;  %v415_v38 = vadd.f32 %v5032_v20, %v354_v17  ;;  %v416_v44 = vadd.f32 %v5032_v20, %v355_v31  ;;  %v4844_v60 = vld [vmem:[%s6140_s3 + $0x1d0] sm:$0xff]  }
  0x29   : > { %4084 = vmatpush3.bf16.msra.mxu1 %v4832_v11  ;;  %v5106_v11 = vpack.c.bf16 %v541_v2, %v541_v2  ;;  %v544_v29 = vsel %vm526_vm1, %v468_v15, 0.0  ;;  %v1433_v33 = vrot.slane %v1431_v24, 1  ;;  %v357_v49 = vmul.f32 %v5027_v19, %v296_v27  ;;  %v299_v2 = vld [vmem:[%s4974_s11 + $0x90] sm:$0xff] }
  0x2a   : > { %4276 = vmatpush3.bf16.msra.mxu0 %v4833_v12  ;;  %4085 = vmatprep.subr.bf16.mxu1 %v4834_v14  ;;  %v466_v12 = vmax.f32 %v412_v57, 0.0  ;;  %v1422_v22 = vor.u32 %v1421_v8, %v1417_v59  ;;  %v5140_v36 = vpack.c.bf16 %v544_v29, %v544_v29  ;;  %v469_v48 = vmax.f32 %v415_v38, 0.0 }
  0x2b   : > { %4277 = vmatprep.subr.bf16.mxu0 %v4835_v18  ;;  %6185 = vst [vmem:[#allocation3_spill] sm:$0xff] %v5106_v11  ;;  %v1436_v25 = vshll.u32 %v5106_v11, 16  ;;  %v1434_v41 = vor.u32 %v1433_v33, %v1429_v23  ;;  %v470_v55 = vmax.f32 %v416_v44, 0.0  ;;  %v358_v56 = vmul.f32 %v5027_v19, %v297_v39  ;;  %v302_v33 = vld [vmem:[%s4974_s11 + $0xa8] sm:$0xff] }
  0x2c   : > { %6190 = vst [vmem:[#allocation6_spill] sm:$0xff] %v5140_v36  ;;  %v545_v59 = vsel %vm515_vm0, %v469_v48, 0.0  ;;  %v359_v61 = vmul.f32 %v5027_v19, %v298_v40  ;;  %v418_v7 = vadd.f32 %v5032_v20, %v357_v49  ;;  %v360_v26 = vmul.f32 %v5027_v19, %v299_v2  ;;  %v304_v49 = vld [vmem:[%s4974_s11 + $0xb8] sm:$0x3] }
  0x2d   : > { %4086 = vmatpush3.bf16.msra.mxu1 %v4834_v14  ;;  %v467_v14 = vmax.f32 %v413_v58, 0.0  ;;  %v1438_v34 = vrot.slane %v1436_v25, 1  ;;  %v5175_v1 = vpack.c.bf16 %v470_v55, %v469_v48  ;;  %v419_v8 = vadd.f32 %v5032_v20, %v358_v56 }
  0x2e   : > { %4278 = vmatpush3.bf16.msra.mxu0 %v4835_v18  ;;  %4087 = vmatprep.subr.bf16.mxu1 %v4836_v28  ;;  %v472_v23 = vmax.f32 %v418_v7, 0.0  ;;  %v421_v40 = vadd.f32 %v5032_v20, %v360_v26  ;;  %v4893_v18 = vld [vmem:[%s6140_s3 + $0x228] sm:$0xff]  }
  0x2f   : > { %4279 = vmatprep.subr.bf16.mxu0 %v4837_v32  ;;  %v5127_v30 = vpack.c.bf16 %v467_v14, %v466_v12  ;;  %v5162_v53 = vsel %vm1403_vm2, %v1434_v41, %v1438_v34  ;;  %v473_v24 = vmax.f32 %v419_v8, 0.0  ;;  %v4845_v34 = vld [vmem:[%s6140_s3 + $0x1d8] sm:$0xff]  }
  0x30   : > { %6191 = vst [vmem:[#allocation7_spill] sm:$0xff] %v5162_v53  ;;  %v475_v48 = vmax.f32 %v421_v40, 0.0 }
  0x31   : > { %4088 = vmatpush3.bf16.msra.mxu1 %v4836_v28  ;;  %v542_v28 = vsel %vm515_vm0, %v466_v12, 0.0  ;;  %v300_v12 = vld [vmem:[%s4974_s11 + $0x98] sm:$0xff]  ;;  %v5214_v39 = vpack.c.bf16 %v473_v24, %v472_v23 }
  0x32   : > { %4280 = vmatpush3.bf16.msra.mxu0 %v4837_v32  ;;  %4089 = vmatprep.subr.bf16.mxu1 %v4838_v46  ;;  %v5131_v32 = vsel %vm1403_vm2, %v1422_v22, %v1426_v9  ;;  %v5134_v35 = vpack.c.bf16 %v467_v14, %v542_v28  ;;  %v420_v9 = vadd.f32 %v5032_v20, %v359_v61  ;;  %v4849_v22 = vld [vmem:[%s6140_s3 + $0xd8] sm:$0xff]   ;;  %v551_v2 = vsel %vm515_vm0, %v475_v48, 0.0 }
  0x33   : > { %4281 = vmatprep.subr.bf16.mxu0 %v4839_v47  ;;  %6188 = vst [vmem:[#allocation4_spill] sm:$0xff] %v5131_v32  ;;  %4283 = vmatprep.mubr.bf16.mxu0 %v5131_v32  ;;  %v361_v29 = vmul.f32 %v5027_v19, %v300_v12 }
  0x34   : > { %6189 = vst [vmem:[#allocation5_spill] sm:$0xff] %v5134_v35  ;;  %v1441_v42 = vshrl.u32 %v5134_v35, 16  ;;  %v1443_v43 = vshll.u32 %v5134_v35, 16  ;;  %v474_v25 = vmax.f32 %v420_v9, 0.0  ;;  %v365_v9 = vmul.f32 %v5027_v19, %v304_v49 }
  0x35   : > { %4090 = vmatpush3.bf16.msra.mxu1 %v4838_v46  ;;  %v1448_v46 = vshll.u32 %v5140_v36, 16  ;;  %v316_v36 = vld [vmem:[%s4974_s11 + $0x118] sm:$0x3] }
  0x36   : > { %4282 = vmatpush3.bf16.msra.mxu0 %v4839_v47  ;;  %4123 = vmatprep.subr.bf16.mxu1 %v4840_v0  ;;  %v417_v47 = vadd.f32 %v5032_v20, %v356_v37  ;;  %v1445_v54 = vrot.slane %v1443_v43, 1  ;;  %v548_v37 = vsel %vm515_vm0, %v472_v23, 0.0  ;;  %v550_v38 = vsel %vm526_vm1, %v474_v25, 0.0 }
  0x37   : > { %4315 = vmatprep.subr.bf16.mxu0 %v5098_v4  ;;  %v1450_v57 = vrot.slane %v1448_v46, 1  ;;  %v5217_v43 = vpack.c.bf16 %v473_v24, %v548_v37  ;;  %v5219_v44 = vpack.c.bf16 %v550_v38, %v550_v38  ;;  %v422_v46 = vadd.f32 %v5032_v20, %v361_v29  ;;  %v4854_v24 = vld [vmem:[%s6140_s3 + $0xe8] sm:$0xff]   ;;  %v307_v29 = vld [vmem:[%s4974_s11 + $0xd0] sm:$0x3] }
  0x38   : > { %4092 = vmatmul.mubr.msk.bf16.vlgmr.msra.gmra.mrb[0].mxu1 %vm5114_vm4, %v5085_v62  ;;  %v471_v58 = vmax.f32 %v417_v47, 0.0  ;;  %v1446_v63 = vor.u32 %v1445_v54, %v1441_v42  ;;  %v363_v54 = vmul.f32 %v5027_v19, %v302_v33  ;;  %v426_v26 = vadd.f32 %v5032_v20, %v365_v9  ;;  %v4848_v37 = vld [vmem:[%s6140_s3 + $0x1e8] sm:$0xff]  }
  0x39   : > { %4124 = vmatpush3.bf16.msra.mxu1 %v4840_v0  ;;  %4095 = vmatprep.mubr.msk.bf16.mxu1 %vm5114_vm4, %v5100_v5  ;;  %v5173_v0 = vpack.c.bf16 %v470_v55, %v545_v59  ;;  %v1465_v56 = vshrl.u32 %v5217_v43, 16  ;;  %v4847_v59 = vld [vmem:[%s6140_s3 + $0x1e0] sm:$0xff]   ;;  %v476_v61 = vmax.f32 %v422_v46, 0.0  ;;  %v308_v46 = vld [vmem:[%s4974_s11 + $0xd8] sm:$0xff] }
  0x3a   : > { %4125 = vmatprep.subr.bf16.mxu1 %v4843_v16  ;;  %4284 = vmatmul.mubr.bf16.vlgmr.msra.gmra.mrb[0].mxu0 %v5162_v53  ;;  %v547_v6 = vsel %vm526_vm1, %v471_v58, 0.0  ;;  %v5186_v14 = vsel %vm1403_vm2, %v1446_v63, %v1450_v57  ;;  %v1467_v57 = vshll.u32 %v5217_v43, 16  ;;  %v1472_v58 = vshll.u32 %v5219_v44, 16 }
  0x3b   : > { %4316 = vmatpush3.bf16.msra.mxu0 %v5098_v4  ;;  %v301_v4 = vld [vmem:[%s4974_s11 + $0xa0] sm:$0x3]  ;;  %6192 = vst [vmem:[#allocation8_spill] sm:$0xff] %v5186_v14  ;;  %v5188_v15 = vpack.c.bf16 %v547_v6, %v547_v6  ;;  %v1455_v17 = vshll.u32 %v5173_v0, 16  ;;  %4287 = vmatprep.mubr.bf16.mxu0 %v5186_v14  ;;  %v424_v12 = vadd.f32 %v5032_v20, %v363_v54 }
  0x3c   : > { %4317 = vmatprep.subr.bf16.mxu0 %v4842_v45  ;;  %v362_v31 = vmul.f32 %v5027_v19, %v301_v4  ;;  %v305_v6 = vld [vmem:[%s4974_s11 + $0xc0] sm:$0xff]  ;;  %v1469_v7 = vrot.slane %v1467_v57, 1  ;;  %v1474_v8 = vrot.slane %v1472_v58, 1  ;;  %v368_v58 = vmul.f32 %v5027_v19, %v307_v29  ;;  %v4858_v29 = vld [vmem:[%s6140_s3 + $0xf8] sm:$0xff]  }
  0x3d   : > { %4126 = vmatpush3.bf16.msra.mxu1 %v4843_v16  ;;  %v1453_v16 = vshrl.u32 %v5173_v0, 16  ;;  %v1457_v27 = vrot.slane %v1455_v17, 1  ;;  %v1460_v28 = vshll.u32 %v5188_v15, 16  ;;  %v5252_v17 = vpack.c.bf16 %v476_v61, %v475_v48 }
  0x3e   : > { %4127 = vmatprep.subr.bf16.mxu1 %v4846_v50  ;;  %v423_v47 = vadd.f32 %v5032_v20, %v362_v31  ;;  %v366_v38 = vmul.f32 %v5027_v19, %v305_v6  ;;  %v429_v9 = vadd.f32 %v5032_v20, %v368_v58  ;;  %v314_v58 = vld [vmem:[%s4974_s11 + $0x108] sm:$0xff] }
  0x3f   : > { %4318 = vmatpush3.bf16.msra.mxu0 %v4842_v45  ;;  %v1458_v41 = vor.u32 %v1457_v27, %v1453_v16  ;;  %v1462_v42 = vrot.slane %v1460_v28, 1  ;;  %v303_v45 = vld [vmem:[%s4974_s11 + $0xb0] sm:$0xff]  ;;  %v5250_v16 = vpack.c.bf16 %v476_v61, %v551_v2  ;;  %6194 = vst [vmem:[#allocation10_spill] sm:$0xff] %v5252_v17  ;;  %v478_v27 = vmax.f32 %v424_v12, 0.0  ;;  %v306_v28 = vld [vmem:[%s4974_s11 + $0xc8] sm:$0xff] }
  0x40   : > { %4096 = vmatmul.mubr.msk.bf16.gmra.mrb[4].mxu1 %vm5114_vm4, %v5127_v30  ;;  %4319 = vmatprep.subr.bf16.mxu0 %v4844_v60  ;;  %v477_v63 = vmax.f32 %v423_v47, 0.0  ;;  %v367_v54 = vmul.f32 %v5027_v19, %v306_v28  ;;  %v427_v61 = vadd.f32 %v5032_v20, %v366_v38  ;;  %v312_v38 = vld [vmem:[%s4974_s11 + $0xf8] sm:$0xff] }
  0x41   : > { %4099 = vmatprep.mubr.msk.bf16.mxu1 %vm5114_vm4, %v5175_v1  ;;  %4128 = vmatpush3.bf16.msra.mxu1 %v4846_v50  ;;  %v4852_v50 = vld [vmem:[%s6140_s3 + $0xe0] sm:$0xff]   ;;  %v5230_v55 = vsel %vm1403_vm2, %v1458_v41, %v1462_v42  ;;  %v1477_v31 = vshrl.u32 %v5250_v16, 16  ;;  %v1479_v33 = vshll.u32 %v5250_v16, 16  ;;  %v480_v42 = vmax.f32 %v426_v26, 0.0 }
  0x42   : > { %4129 = vmatprep.subr.bf16.mxu1 %v4849_v22  ;;  %6193 = vst [vmem:[#allocation9_spill] sm:$0xff] %v5230_v55  ;;  %4288 = vmatmul.mubr.bf16.gmra.mrb[4].mxu0 %v5230_v55  ;;  %v553_v4 = vsel %vm526_vm1, %v477_v63, 0.0  ;;  %v309_v63 = vld [vmem:[%s4974_s11 + $0xe0] sm:$0xff]  ;;  %v481_v12 = vmax.f32 %v427_v61, 0.0  ;;  %v315_v61 = vld [vmem:[%s4974_s11 + $0x110] sm:$0xff] }
  0x43   : > { %4320 = vmatpush3.bf16.msra.mxu0 %v4844_v60  ;;  %v364_v60 = vmul.f32 %v5027_v19, %v303_v45  ;;  %v5258_v25 = vpack.c.bf16 %v553_v4, %v553_v4  ;;  %v554_v45 = vsel %vm515_vm0, %v478_v27, 0.0  ;;  %v1481_v47 = vrot.slane %v1479_v33, 1 }
  0x44   : > { %4321 = vmatprep.subr.bf16.mxu0 %v4845_v34  ;;  %v369_v4 = vmul.f32 %v5027_v19, %v308_v46  ;;  %v370_v28 = vmul.f32 %v5027_v19, %v309_v63  ;;  %v557_v33 = vsel %vm515_vm0, %v481_v12, 0.0 }
  0x45   : > { %4130 = vmatpush3.bf16.msra.mxu1 %v4849_v22  ;;  %v425_v23 = vadd.f32 %v5032_v20, %v364_v60  ;;  %v1470_v22 = vor.u32 %v1469_v7, %v1465_v56  ;;  %v1484_v41 = vshll.u32 %v5258_v25, 16  ;;  %v4856_v56 = vld [vmem:[%s6140_s3 + $0xf0] sm:$0xff]   ;;  %v1482_v2 = vor.u32 %v1481_v47, %v1477_v31 }
  0x46   : > { %4131 = vmatprep.subr.bf16.mxu1 %v4852_v50  ;;  %v483_v31 = vmax.f32 %v429_v9, 0.0  ;;  %v5326_v46 = vadd.f32 %v5032_v20, %v370_v28 }
  0x47   : > { %4322 = vmatpush3.bf16.msra.mxu0 %v4845_v34  ;;  %v479_v34 = vmax.f32 %v425_v23, 0.0  ;;  %v5273_v40 = vsel %vm1403_vm2, %v1470_v22, %v1474_v8  ;;  %v1486_v57 = vrot.slane %v1484_v41, 1  ;;  %v428_v8 = vadd.f32 %v5032_v20, %v367_v54  ;;  %v311_v23 = vld [vmem:[%s4974_s11 + $0xf0] sm:$0xff] }
  0x48   : > { %4100 = vmatmul.mubr.msk.bf16.gmra.mrb[8].mxu1 %vm5114_vm4, %v5214_v39  ;;  %4323 = vmatprep.subr.bf16.mxu0 %v4847_v59  ;;  %6195 = vst [vmem:[#allocation11_spill] sm:$0xff] %v5273_v40  ;;  %v372_v47 = vmul.f32 %v5027_v19, %v311_v23  ;;  %v559_v54 = vsel %vm526_vm1, %v483_v31, 0.0  ;;  %v318_v23 = vld [vmem:[%s4974_s11 + $0x128] sm:$0xff]  ;;  %v5374_v31 = vld [vmem:[%s6140_s3 + $0x80] sm:$0xff]  }
  0x49   : > { %4103 = vmatprep.mubr.msk.bf16.mxu1 %vm5114_vm4, %v5252_v17  ;;  %4132 = vmatpush3.bf16.msra.mxu1 %v4852_v50  ;;  %v5280_v48 = vpack.c.bf16 %v479_v34, %v554_v45  ;;  %v5282_v49 = vpack.c.bf16 %v479_v34, %v478_v27  ;;  %v556_v50 = vsel %vm526_vm1, %v480_v42, 0.0  ;;  %v5305_v22 = vsel %vm1403_vm2, %v1482_v2, %v1486_v57  ;;  %v4851_v45 = vld [vmem:[%s6140_s3 + $0x1f8] sm:$0xff]  }
  0x4a   : > { %4291 = vmatprep.mubr.bf16.mxu0 %v5273_v40  ;;  %4133 = vmatprep.subr.bf16.mxu1 %v4854_v24  ;;  %v5293_v60 = vpack.c.bf16 %v556_v50, %v556_v50  ;;  %6197 = vst [vmem:[#allocation13_spill] sm:$0xff] %v5305_v22  ;;  %v5319_v34 = vadd.f32 %v5032_v20, %v369_v4  ;;  %v317_v4 = vld [vmem:[%s4974_s11 + $0x120] sm:$0xff] }
  0x4b   : > { %6196 = vst [vmem:[#allocation12_spill] sm:$0xff] %v5282_v49  ;;  %4324 = vmatpush3.bf16.msra.mxu0 %v4847_v59  ;;  %v1489_v6 = vshrl.u32 %v5280_v48, 16  ;;  %v1491_v7 = vshll.u32 %v5280_v48, 16  ;;  %v4850_v59 = vld [vmem:[%s6140_s3 + $0x1f0] sm:$0xff]   ;;  %v5341_v2 = vpack.c.bf16 %v559_v54, %v559_v54  ;;  %v2466_v21 = vrot.slane %v5280_v48, 1 }
  0x4c   : > { %4325 = vmatprep.subr.bf16.mxu0 %v4848_v37  ;;  %v1496_v27 = vshll.u32 %v5293_v60, 16  ;;  %4292 = vmatmul.mubr.bf16.gmra.mrb[8].mxu0 %v5305_v22 }
  0x4d   : > { %4134 = vmatpush3.bf16.msra.mxu1 %v4854_v24  ;;  %v1493_v26 = vrot.slane %v1491_v7, 1  ;;  %v482_v24 = vmax.f32 %v428_v8, 0.0  ;;  %v373_v7 = vmul.f32 %v5027_v19, %v312_v38  ;;  %v5348_v8 = vld [vmem:[%s6140_s3 + $0x180] sm:$0xff]   ;;  %v376_v38 = vmul.f32 %v5027_v19, %v315_v61 }
  0x4e   : > { %4135 = vmatprep.subr.bf16.mxu1 %v4856_v56  ;;  %v1498_v42 = vrot.slane %v1496_v27, 1 }
  0x4f   : > { %4326 = vmatpush3.bf16.msra.mxu0 %v4848_v37  ;;  %v1494_v41 = vor.u32 %v1493_v26, %v1489_v6  ;;  %v5331_v57 = vpack.c.bf16 %v482_v24, %v557_v33  ;;  %v5333_v50 = vpack.c.bf16 %v482_v24, %v481_v12  ;;  %v6149_v37 = vmax.f32 %v5319_v34, 0.0 }
  0x50   : > { %4104 = vmatmul.mubr.msk.bf16.gmra.mrb[12].mxu1 %vm5114_vm4, %v5282_v49  ;;  %4327 = vmatprep.subr.bf16.mxu0 %v4850_v59  ;;  %v6148_v6 = vmax.f32 %v5326_v46, 0.0  ;;  %v5357_v12 = vadd.f32 %v5032_v20, %v372_v47  ;;  %v1508_v26 = vshll.u32 %v5341_v2, 16  ;;  %v5369_v28 = vadd.f32 %v5032_v20, %v373_v7 }
  0x51   : > { %6198 = vst [vmem:[#allocation14_spill] sm:$0xff] %v5333_v50  ;;  %4136 = vmatpush3.bf16.msra.mxu1 %v4856_v56  ;;  %v5339_v63 = vsel %vm1403_vm2, %v1494_v41, %v1498_v42  ;;  %v1501_v9 = vshrl.u32 %v5331_v57, 16  ;;  %v1503_v56 = vshll.u32 %v5331_v57, 16  ;;  %4107 = vmatprep.mubr.msk.bf16.mxu1 %vm5114_vm4, %v5333_v50  ;;  %v320_v41 = vld [vmem:[%s4974_s11 + $0x138] sm:$0xff]  ;;  %v321_v42 = vld [vmem:[%s4974_s11 + $0x140] sm:$0xff]  ;;  %v378_v7 = vmul.f32 %v5027_v19, %v317_v4 }
  0x52   : > { %6199 = vst [vmem:[#allocation15_spill] sm:$0xff] %v5339_v63  ;;  %4137 = vmatprep.subr.bf16.mxu1 %v4858_v29  ;;  %4295 = vmatprep.mubr.bf16.mxu0 %v5339_v63  ;;  %v5366_v27 = vpack.c.bf16 %v6148_v6, %v6149_v37  ;;  %v487_v33 = vmax.f32 %v5357_v12, 0.0  ;;  %v1510_v47 = vrot.slane %v1508_v26, 1  ;;  %v6147_v54 = vmax.f32 %v5369_v28, 0.0  ;;  %v310_v6 = vld [vmem:[%s4974_s11 + $0xe8] sm:$0x3] }
  0x53   : > { %4328 = vmatpush3.bf16.msra.mxu0 %v4850_v59  ;;  %v1505_v24 = vrot.slane %v1503_v56, 1  ;;  %v375_v59 = vmul.f32 %v5027_v19, %v314_v58  ;;  %v379_v56 = vmul.f32 %v5027_v19, %v318_v23  ;;  %v5390_v12 = vadd.f32 %v5032_v20, %v376_v38 }
  0x54   : > { %6200 = vst [vmem:[#allocation16_spill] sm:$0xff] %v5366_v27  ;;  %4329 = vmatprep.subr.bf16.mxu0 %v4851_v45  ;;  %v5395_v26 = vpack.c.bf16 %v6147_v54, %v487_v33  ;;  %v439_v4 = vadd.f32 %v5032_v20, %v378_v7  ;;  %v327_v54 = vld [vmem:[%s4974_s11 + $0x170] sm:$0xff]  ;;  %v371_v32 = vmul.f32 %v5027_v19, %v310_v6 }
  0x55   : > { %4138 = vmatpush3.bf16.msra.mxu1 %v4858_v29  ;;  %v1506_v58 = vor.u32 %v1505_v24, %v1501_v9  ;;  %v436_v61 = vadd.f32 %v5032_v20, %v375_v59  ;;  %v323_v29 = vld [vmem:[%s4974_s11 + $0x150] sm:$0xff]  ;;  %v5399_v23 = vadd.f32 %v5032_v20, %v379_v56  ;;  %v381_v59 = vmul.f32 %v5027_v19, %v320_v41 }
  0x56   : > { %4171 = vmatprep.subr.bf16.mxu1 %v5348_v8  ;;  %6201 = vst [vmem:[#allocation17_spill] sm:$0xff] %v5395_v26  ;;  %v493_v38 = vmax.f32 %v439_v4, 0.0  ;;  %v384_v56 = vmul.f32 %v5027_v19, %v323_v29  ;;  %v432_v6 = vadd.f32 %v5032_v20, %v371_v32  ;;  %v4857_v32 = vld [vmem:[%s6140_s3 + $0x90] sm:$0xff]  }
  0x57   : > { %4330 = vmatpush3.bf16.msra.mxu0 %v4851_v45  ;;  %v5403_v9 = vsel %vm1403_vm2, %v1506_v58, %v1510_v47  ;;  %v490_v24 = vmax.f32 %v436_v61, 0.0  ;;  %v491_v45 = vmax.f32 %v5390_v12, 0.0  ;;  %v494_v7 = vmax.f32 %v5399_v23, 0.0  ;;  %v326_v58 = vld [vmem:[%s4974_s11 + $0x168] sm:$0xff] }
  0x58   : > { %4108 = vmatmul.mubr.msk.bf16.gmra.mrb[16].mxu1 %vm5114_vm4, %v5366_v27  ;;  %6202 = vst [vmem:[#allocation18_spill] sm:$0xff] %v5403_v9  ;;  %4363 = vmatprep.subr.bf16.mxu0 %v5374_v31  ;;  %v382_v47 = vmul.f32 %v5027_v19, %v321_v42  ;;  %v442_v41 = vadd.f32 %v5032_v20, %v381_v59  ;;  %v6205_v42 = vmax.f32 %v5319_v34, 0.0  ;;  %v330_v27 = vld [vmem:[%s4974_s11 + $0x188] sm:$0xff] }
  0x59   : > { %4296 = vmatmul.mubr.bf16.gmra.mrb[12].mxu0 %v5403_v9  ;;  %4111 = vmatprep.mubr.msk.bf16.mxu1 %vm5114_vm4, %v5395_v26  ;;  %v5418_v61 = vpack.c.bf16 %v491_v45, %v490_v24  ;;  %v385_v12 = vmul.f32 %v5027_v19, %v324_v3  ;;  %v5423_v37 = vpack.c.bf16 %v494_v7, %v493_v38 }
  0x5a   : > { %4331 = vmatprep.mubr.bf16.mxu0 %v5162_v53  ;;  %v5426_v4 = vadd.f32 %v5032_v20, %v382_v47  ;;  %v560_v29 = vsel %vm515_vm0, %v6205_v42, 0.0  ;;  %v496_v23 = vmax.f32 %v442_v41, 0.0  ;;  %v445_v53 = vadd.f32 %v5032_v20, %v384_v56  ;;  %v4855_v42 = vld [vmem:[%s6140_s3 + $0x88] sm:$0xff]  }
  0x5b   : > { %6203 = vst [vmem:[#allocation19_spill] sm:$0xff] %v5418_v61  ;;  %6204 = vst [vmem:[#allocation20_spill] sm:$0xff] %v5423_v37  ;;  %v5434_v59 = vadd.f32 %v5032_v20, %v385_v12  ;;  %v387_v47 = vmul.f32 %v5027_v19, %v326_v58  ;;  %v388_v34 = vmul.f32 %v5027_v19, %v327_v54  ;;  %v313_v12 = vld [vmem:[%s4974_s11 + $0x100] sm:$0x3] }
  0x5c   : > { %v497_v3 = vmax.f32 %v5426_v4, 0.0  ;;  %v499_v56 = vmax.f32 %v445_v53, 0.0  ;;  %v6206_v4 = vmax.f32 %v5326_v46, 0.0  ;;  %v563_v53 = vsel %vm515_vm0, %v487_v33, 0.0 }
  0x5d   : > { %v448_v54 = vadd.f32 %v5032_v20, %v387_v47  ;;  %v5464_v35 = vadd.f32 %v5032_v20, %v388_v34  ;;  %v374_v46 = vmul.f32 %v5027_v19, %v313_v12  ;;  %v486_v33 = vmax.f32 %v432_v6, 0.0 }
  0x5e   : > { %v5453_v58 = vpack.c.bf16 %v6206_v4, %v560_v29  ;;  %v5461_v41 = vpack.c.bf16 %v497_v3, %v496_v23  ;;  %v6208_v29 = vmax.f32 %v5434_v59, 0.0  ;;  %v319_v4 = vld [vmem:[%s4974_s11 + $0x130] sm:$0x3]  ;;  %v566_v34 = vsel %vm515_vm0, %v490_v24, 0.0 }
  0x5f   : > { %v569_v12 = vsel %vm515_vm0, %v493_v38, 0.0  ;;  %v503_v24 = vmax.f32 %v5464_v35, 0.0  ;;  %v562_v38 = vsel %vm526_vm1, %v486_v33, 0.0  ;;  %v575_v33 = vsel %vm515_vm0, %v499_v56, 0.0 }
  0x60   : > { %4112 = vmatmul.mubr.msk.bf16.gmra.mrb[20].mxu1 %vm5114_vm4, %v5418_v61  ;;  %6207 = vst [vmem:[#allocation21_spill] sm:$0xff] %v5461_v41  ;;  %v5474_v47 = vpack.c.bf16 %v6208_v29, %v499_v56  ;;  %v502_v29 = vmax.f32 %v448_v54, 0.0  ;;  %v1515_v6 = vshll.u32 %v5453_v58, 16  ;;  %v5504_v35 = vpack.c.bf16 %v494_v7, %v569_v12  ;;  %v4861_v56 = vld [vmem:[%s6140_s3 + $0xa0] sm:$0xff]  }
  0x61   : > { %4115 = vmatprep.mubr.msk.bf16.mxu1 %vm5114_vm4, %v5423_v37  ;;  %4332 = vmatmul.mubr.bf16.vlgmr.msra.gmra.mrb[0].mxu0 %v5186_v14  ;;  %v322_v14 = vld [vmem:[%s4974_s11 + $0x148] sm:$0x3]  ;;  %v6210_v37 = vmax.f32 %v5369_v28, 0.0  ;;  %v5497_v28 = vpack.c.bf16 %v491_v45, %v566_v34  ;;  %v1513_v12 = vshrl.u32 %v5453_v58, 16 }
  0x62   : > { %4364 = vmatpush3.bf16.msra.mxu0 %v5374_v31  ;;  %4335 = vmatprep.mubr.bf16.mxu0 %v5230_v55  ;;  %6209 = vst [vmem:[#allocation22_spill] sm:$0xff] %v5474_v47  ;;  %v435_v31 = vadd.f32 %v5032_v20, %v374_v46  ;;  %v377_v55 = vmul.f32 %v5027_v19, %v316_v36  ;;  %6211 = vst [vmem:[#allocation23_spill] sm:$0xff] %v5504_v35  ;;  %v1549_v61 = vshrl.u32 %v5504_v35, 16 }
  0x63   : > { %4365 = vmatprep.subr.bf16.mxu0 %v4855_v42  ;;  %v5486_v11 = vpack.c.bf16 %v6210_v37, %v563_v53  ;;  %v380_v37 = vmul.f32 %v5027_v19, %v319_v4  ;;  %v572_v53 = vsel %vm515_vm0, %v496_v23, 0.0  ;;  %v5515_v4 = vpack.c.bf16 %v562_v38, %v562_v38  ;;  %v325_v38 = vld [vmem:[%s4974_s11 + $0x160] sm:$0x3] }
  0x64   : > { %v489_v46 = vmax.f32 %v435_v31, 0.0  ;;  %v438_v36 = vadd.f32 %v5032_v20, %v377_v55  ;;  %v4859_v55 = vld [vmem:[%s6140_s3 + $0x98] sm:$0xff]   ;;  %v383_v34 = vmul.f32 %v5027_v19, %v322_v14  ;;  %v5520_v23 = vpack.c.bf16 %v503_v24, %v502_v29 }
  0x65   : > { %v441_v7 = vadd.f32 %v5032_v20, %v380_v37  ;;  %v1517_v31 = vrot.slane %v1515_v6, 1  ;;  %v6213_v6 = vmax.f32 %v5434_v59, 0.0  ;;  %v386_v59 = vmul.f32 %v5027_v19, %v325_v38  ;;  %v4896_v38 = vld [vmem:[%s6139_s2] ss:$0 sm:$0xff] }
  0x66   : > { %4366 = vmatpush3.bf16.msra.mxu0 %v4855_v42  ;;  %v565_v45 = vsel %vm526_vm1, %v489_v46, 0.0  ;;  %v492_v42 = vmax.f32 %v438_v36, 0.0  ;;  %6212 = vst [vmem:[#allocation24_spill] sm:$0xff] %v5520_v23  ;;  %v1527_v46 = vshll.u32 %v5486_v11, 16  ;;  %v5529_v36 = vpack.c.bf16 %v497_v3, %v572_v53 }
  0x67   : > { %4367 = vmatprep.subr.bf16.mxu0 %v4857_v32  ;;  %v5531_v14 = vpack.c.bf16 %v565_v45, %v565_v45  ;;  %v495_v54 = vmax.f32 %v441_v7, 0.0  ;;  %v1539_v3 = vshll.u32 %v5497_v28, 16  ;;  %v1520_v53 = vshll.u32 %v5515_v4, 16 }
  0x68   : > { %4116 = vmatmul.mubr.msk.bf16.gmra.mrb[24].mxu1 %vm5114_vm4, %v5461_v41  ;;  %v568_v37 = vsel %vm526_vm1, %v492_v42, 0.0  ;;  %v1551_v42 = vshll.u32 %v5504_v35, 16 }
  0x69   : > { %4119 = vmatprep.mubr.msk.bf16.mxu1 %vm5114_vm4, %v5474_v47  ;;  %4336 = vmatmul.mubr.bf16.gmra.mrb[4].mxu0 %v5273_v40  ;;  %v5538_v40 = vpack.c.bf16 %v6213_v6, %v575_v33  ;;  %v578_v47 = vsel %vm515_vm0, %v502_v29, 0.0  ;;  %v571_v45 = vsel %vm526_vm1, %v495_v54, 0.0  ;;  %v1525_v29 = vshrl.u32 %v5486_v11, 16  ;;  %v329_v54 = vld [vmem:[%s4974_s11 + $0x180] sm:$0xff] }
  0x6a   : > { %4339 = vmatprep.mubr.bf16.mxu0 %v5305_v22  ;;  %4368 = vmatpush3.bf16.msra.mxu0 %v4857_v32  ;;  %v444_v32 = vadd.f32 %v5032_v20, %v383_v34  ;;  %v1529_v33 = vrot.slane %v1527_v46, 1  ;;  %v5553_v7 = vpack.c.bf16 %v568_v37, %v568_v37  ;;  %v4863_v20 = vld [vmem:[%s6140_s3 + $0xa8] sm:$0xff]   ;;  %v5559_v34 = vpack.c.bf16 %v503_v24, %v578_v47 }
  0x6b   : > { %4369 = vmatprep.subr.bf16.mxu0 %v4859_v55  ;;  %v1532_v19 = vshll.u32 %v5531_v14, 16  ;;  %v1563_v46 = vshll.u32 %v5529_v36, 16  ;;  %v447_v37 = vadd.f32 %v4896_v38, %v386_v59  ;;  %v1541_v22 = vrot.slane %v1539_v3, 1  ;;  %v4862_v3 = vld [vmem:[%s6140_s3 + $0x188] sm:$0xff]  }
  0x6c   : > { %6214 = vst [vmem:[#allocation25_spill] sm:$0xff] %v5553_v7  ;;  %v498_v6 = vmax.f32 %v444_v32, 0.0  ;;  %v1537_v32 = vshrl.u32 %v5497_v28, 16  ;;  %v5570_v47 = vpack.c.bf16 %v571_v45, %v571_v45  ;;  %v1522_v41 = vrot.slane %v1520_v53, 1 }
  0x6d   : > { %v1553_v26 = vrot.slane %v1551_v42, 1  ;;  %v1544_v59 = vshll.u32 %v5553_v7, 16  ;;  %v501_v50 = vmax.f32 %v447_v37, 0.0  ;;  %v1575_v35 = vshll.u32 %v5538_v40, 16 }
  0x6e   : > { %4370 = vmatpush3.bf16.msra.mxu0 %v4859_v55  ;;  %v331_v55 = vld [vmem:[%s4974_s11 + $0x190] sm:$0x3]  ;;  %v574_v45 = vsel %vm526_vm1, %v498_v6, 0.0  ;;  %v1542_v49 = vor.u32 %v1541_v22, %v1537_v32  ;;  %v1556_v17 = vshll.u32 %v5570_v47, 16 }
  0x6f   : > { %4371 = vmatprep.subr.bf16.mxu0 %v4861_v56  ;;  %v5589_v7 = vpack.c.bf16 %v574_v45, %v574_v45  ;;  %v4865_v6 = vld [vmem:[%s6140_s3 + $0xb0] sm:$0xff]   ;;  %v1546_v22 = vrot.slane %v1544_v59, 1  ;;  %v1587_v59 = vshll.u32 %v5559_v34, 16 }
  0x70   : > { %4120 = vmatmul.mubr.msk.bf16.gmra.mrb[28].mxu1 %vm5114_vm4, %v5520_v23  ;;  %v1518_v23 = vor.u32 %v1517_v31, %v1513_v12  ;;  %v1534_v12 = vrot.slane %v1532_v19, 1  ;;  %v1565_v31 = vrot.slane %v1563_v46, 1 }
  0x71   : > { %4139 = vmatprep.mubr.msk.bf16.mxu1 %vm5114_vm4, %v5085_v62  ;;  %v4897_v62 = vld [vmem:[%s6138_s1] ss:$0 sm:$0xff]  ;;  %4340 = vmatmul.mubr.bf16.gmra.mrb[8].mxu0 %v5339_v63  ;;  %v1530_v63 = vor.u32 %v1529_v33, %v1525_v29  ;;  %v577_v29 = vsel %vm526_vm1, %v501_v50, 0.0  ;;  %v6215_v33 = vrot.slane %v5077_v52, 1  ;;  %v4864_v52 = vld [vmem:[%s6140_s3 + $0x190] sm:$0xff]  }
  0x72   : > { %v389_v24 = vmul.f32 %v4897_v62, %v328_v10  ;;  %v1561_v10 = vshrl.u32 %v5529_v36, 16  ;;  %4343 = vmatprep.mubr.bf16.mxu0 %v5403_v9  ;;  %4372 = vmatpush3.bf16.msra.mxu0 %v4861_v56  ;;  %v390_v42 = vmul.f32 %v4897_v62, %v329_v54  ;;  %v391_v37 = vmul.f32 %v4897_v62, %v330_v27 }
  0x73   : > { %4373 = vmatprep.subr.bf16.mxu0 %v4863_v20  ;;  %v392_v9 = vmul.f32 %v4897_v62, %v331_v55  ;;  %v5597_v56 = vsel %vm1403_vm2, %v1518_v23, %v1522_v41  ;;  %v6216_v54 = vrot.slane %v5075_v51, 1  ;;  %v1554_v41 = vor.u32 %v1553_v26, %v1549_v61 }
  0x74   : > { %v450_v53 = vadd.f32 %v4896_v38, %v389_v24  ;;  %v5594_v19 = vadd.f32 %v4896_v38, %v390_v42  ;;  %v1573_v23 = vshrl.u32 %v5538_v40, 16  ;;  %v5616_v32 = vadd.f32 %v4896_v38, %v391_v37 }
  0x75   : > { %v5609_v27 = vsel %vm2444_vm5, %v6216_v54, %v6215_v33  ;;  %v5619_v50 = vsel %vm1403_vm2, %v1530_v63, %v1534_v12  ;;  %v5621_v51 = vor.u32 %v1565_v31, %v1561_v10  ;;  %v1558_v26 = vrot.slane %v1556_v17, 1  ;;  %v4867_v63 = vld [vmem:[%s6140_s3 + $0xb8] sm:$0xff]  }
  0x76   : > { %v504_v46 = vmax.f32 %v450_v53, 0.0  ;;  %4374 = vmatpush3.bf16.msra.mxu0 %v4863_v20  ;;  %v505_v62 = vmax.f32 %v5594_v19, 0.0  ;;  %v1568_v61 = vshll.u32 %v5589_v7, 16  ;;  %v5628_v24 = vpack.c.bf16 %v577_v29, %v577_v29  ;;  %v4879_v19 = vld [vmem:[%s6140_s3 + $0x168] sm:$0xff]  }
  0x77   : > { %v1577_v55 = vrot.slane %v1575_v35, 1  ;;  %4375 = vmatprep.subr.bf16.mxu0 %v4865_v6  ;;  %v5635_v20 = vsel %vm1403_vm2, %v1542_v49, %v1546_v22  ;;  %v2457_v17 = vrot.slane %v5173_v0, 1  ;;  %v506_v45 = vmax.f32 %v5616_v32, 0.0  ;;  %v4866_v0 = vld [vmem:[%s6140_s3 + $0x198] sm:$0xff]   ;;  %v4878_v32 = vld [vmem:[%s6140_s3 + $0x48] sm:$0xff]  }
  0x78   : > { %4140 = vmatmul.mubr.msk.bf16.vlgmr.msra.gmra.mrb[0].mxu1 %vm5114_vm4, %v5100_v5  ;;  %v580_v35 = vsel %vm526_vm1, %v504_v46, 0.0  ;;  %v2458_v10 = vrot.slane %v5188_v15, 1  ;;  %v581_v49 = vsel %vm515_vm0, %v505_v62, 0.0  ;;  %v2461_v12 = vrot.slane %v5219_v44, 1 }
  0x79   : > { %4172 = vmatpush3.bf16.msra.mxu1 %v5348_v8  ;;  %4143 = vmatprep.mubr.msk.bf16.mxu1 %vm5114_vm4, %v5127_v30  ;;  %v453_v8 = vadd.f32 %v4896_v38, %v392_v9  ;;  %v1585_v9 = vshrl.u32 %v5559_v34, 16  ;;  %v2463_v31 = vrot.slane %v5250_v16, 1  ;;  %v5656_v53 = vsel %vm1403_vm2, %v1554_v41, %v1558_v26 }
  0x7a   : > { %4173 = vmatprep.subr.bf16.mxu1 %v4862_v3  ;;  %4344 = vmatmul.mubr.bf16.gmra.mrb[12].mxu0 %v5597_v56  ;;  %v1570_v15 = vrot.slane %v1568_v61, 1  ;;  %v1578_v42 = vor.u32 %v1577_v55, %v1573_v23  ;;  %v5670_v44 = vsel %vm2444_vm5, %v2457_v17, %v2458_v10  ;;  %v2464_v37 = vrot.slane %v5258_v25, 1  ;;  %v4868_v25 = vld [vmem:[%s6140_s3 + $0x1a0] sm:$0xff]  }
  0x7b   : > { %v507_v38 = vmax.f32 %v453_v8, 0.0  ;;  %4347 = vmatprep.mubr.bf16.mxu0 %v5619_v50  ;;  %4376 = vmatpush3.bf16.msra.mxu0 %v4865_v6  ;;  %v1580_v6 = vshll.u32 %v5628_v24, 16  ;;  %v1400_v22 = vpack.c.bf16 %v580_v35, %v580_v35  ;;  %v5681_v29 = vpack.c.bf16 %v506_v45, %v581_v49 }
  0x7c   : > { %4377 = vmatprep.subr.bf16.mxu0 %v4867_v63  ;;  %v2467_v33 = vrot.slane %v5293_v60, 1  ;;  %v5689_v54 = vsel %vm2444_vm5, %v2463_v31, %v2464_v37  ;;  %v2469_v41 = vrot.slane %v5331_v57, 1  ;;  %v2470_v23 = vrot.slane %v5341_v2, 1  ;;  %v6219_v31 = vld [vmem:[#allocation10_spill] sm:$0xff]  ;;  %v6220_v37 = vld [vmem:[#allocation12_spill] sm:$0xff] }
  0x7d   : > { %4174 = vmatpush3.bf16.msra.mxu1 %v4862_v3  ;;  %v2460_v3 = vrot.slane %v5217_v43, 1  ;;  %v583_v43 = vsel %vm526_vm1, %v507_v38, 0.0  ;;  %v2472_v46 = vrot.slane %v5453_v58, 1  ;;  %v2473_v60 = vrot.slane %v5515_v4, 1  ;;  %v6217_v4 = vld [vmem:[#allocation25_spill] sm:$0xff]  ;;  %v6218_v38 = vld [vmem:[#allocation23_spill] sm:$0xff] }
  0x7e   : > { %4175 = vmatprep.subr.bf16.mxu1 %v4864_v52  ;;  %v5694_v8 = vpack.c.bf16 %v583_v43, %v583_v43  ;;  %v5698_v48 = vsel %vm2444_vm5, %v2466_v21, %v2467_v33  ;;  %v5703_v26 = vsel %vm2444_vm5, %v2469_v41, %v2470_v23  ;;  %v2475_v57 = vrot.slane %v5486_v11, 1  ;;  %v4870_v11 = vld [vmem:[%s6140_s3 + $0x1a8] sm:$0xff]  }
  0x7f   : > { %v5673_v16 = vsel %vm2444_vm5, %v2460_v3, %v2461_v12  ;;  %4378 = vmatpush3.bf16.msra.mxu0 %v4867_v63  ;;  %v2476_v2 = vrot.slane %v5531_v14, 1  ;;  %v2478_v58 = vrot.slane %v5497_v28, 1  ;;  %v1873_v61 = vshll.u32 %v5681_v29, 16 }
  0x80   : > { %4144 = vmatmul.mubr.msk.bf16.gmra.mrb[4].mxu1 %vm5114_vm4, %v5175_v1  ;;  %4411 = vmatprep.subr.bf16.mxu0 %v5662_v13  ;;  %v5711_v55 = vsel %vm2444_vm5, %v2472_v46, %v2473_v60  ;;  %v2479_v63 = vrot.slane %v6217_v4, 1  ;;  %v2481_v17 = vrot.slane %v6218_v38, 1  ;;  %v2482_v28 = vrot.slane %v5570_v47, 1  ;;  %v4874_v46 = vld [vmem:[%s6140_s3 + $0x1b8] sm:$0xff]  }
  0x81   : > { %4147 = vmatprep.mubr.msk.bf16.mxu1 %vm5114_vm4, %v5214_v39  ;;  %4176 = vmatpush3.bf16.msra.mxu1 %v4864_v52  ;;  %v1582_v52 = vrot.slane %v1580_v6, 1  ;;  %v5719_v14 = vsel %vm2444_vm5, %v2475_v57, %v2476_v2  ;;  %v2484_v35 = vrot.slane %v5529_v36, 1  ;;  %v2485_v10 = vrot.slane %v5589_v7, 1  ;;  %v6222_v57 = vld [vmem:[#allocation16_spill] sm:$0xff]  ;;  %v6223_v38 = vld [vmem:[#allocation17_spill] sm:$0xff] }
  0x82   : > { %4177 = vmatprep.subr.bf16.mxu1 %v4866_v0  ;;  %4348 = vmatmul.mubr.bf16.gmra.mrb[16].mxu0 %v5635_v20  ;;  %v5725_v49 = vsel %vm2444_vm5, %v2478_v58, %v2479_v63  ;;  %v2488_v3 = vrot.slane %v5628_v24, 1  ;;  %v2490_v12 = vrot.slane %v5559_v34, 1  ;;  %v1589_v6 = vrot.slane %v1587_v59, 1 }
  0x83   : > { %4351 = vmatprep.mubr.bf16.mxu0 %v5656_v53  ;;  %v5734_v47 = vsel %vm2444_vm5, %v2481_v17, %v2482_v28  ;;  %v5737_v36 = vsel %vm2444_vm5, %v2484_v35, %v2485_v10  ;;  %v2491_v7 = vrot.slane %v1400_v22, 1  ;;  %v5741_v43 = vsel %vm1403_vm2, %v5621_v51, %v1570_v15  ;;  %v4872_v51 = vld [vmem:[%s6140_s3 + $0x1b0] sm:$0xff]   ;;  %v6225_v28 = vld [vmem:[#allocation19_spill] sm:$0xff] }
  0x84   : > { %v1592_v24 = vshll.u32 %v1400_v22, 16  ;;  %v1871_v21 = vshrl.u32 %v5681_v29, 16  ;;  %v1875_v33 = vrot.slane %v1873_v61, 1  ;;  %v1878_v41 = vshll.u32 %v5694_v8, 16  ;;  %v6227_v35 = vld [vmem:[#allocation3_spill] sm:$0xff] }
  0x85   : > { %4178 = vmatpush3.bf16.msra.mxu1 %v4866_v0  ;;  %v2487_v0 = vrot.slane %v5538_v40, 1  ;;  %v5744_v40 = vsel %vm1403_vm2, %v1578_v42, %v1582_v52  ;;  %v5758_v15 = vsel %vm2444_vm5, %v2490_v12, %v2491_v7  ;;  %v1590_v42 = vor.u32 %v1589_v6, %v1585_v9  ;;  %v6221_v52 = vld [vmem:[#allocation14_spill] sm:$0xff]  ;;  %v4871_v6 = vld [vmem:[%s6140_s3 + $0x148] sm:$0xff]   ;;  %v6230_v7 = vld [vmem:[#allocation5_spill] sm:$0xff] }
  0x86   : > { %4179 = vmatprep.subr.bf16.mxu1 %v4868_v25  ;;  %v1594_v22 = vrot.slane %v1592_v24, 1  ;;  %v1880_v23 = vrot.slane %v1878_v41, 1  ;;  %v4876_v9 = vld [vmem:[%s6140_s3 + $0x40] sm:$0xff]   ;;  %v2769_v2 = vrot.slane %v5681_v29, 1  ;;  %v2770_v58 = vrot.slane %v5694_v8, 1  ;;  %v4873_v41 = vld [vmem:[%s6140_s3 + $0x150] sm:$0xff]  }
  0x87   : > { %v5750_v59 = vsel %vm2444_vm5, %v2487_v0, %v2488_v3  ;;  %v4917_v4 = vmov 0   ;;  %v6224_v17 = vmov 0.0|0.0   ;;  %v6226_v29 = vld [vmem:[#allocation2_spill] sm:$0xff]  ;;  %v2452_v10 = vrot.slane %v6227_v35, 1  ;;  %v6228_v0 = vld [vmem:[#allocation20_spill] sm:$0xff]  ;;  %v6229_v3 = vld [vmem:[#allocation21_spill] sm:$0xff] }
  0x88   : > { %4148 = vmatmul.mubr.msk.bf16.gmra.mrb[8].mxu1 %vm5114_vm4, %v6219_v31  ;;  %v5771_v60 = vsel %vm1403_vm2, %v1590_v42, %v1594_v22  ;;  %v5787_v61 = vsel %vm2444_vm5, %v2769_v2, %v2770_v58  ;;  %v5789_v63 = vrot.slane %v4917_v4, 1  ;;  %v2451_v8 = vrot.slane %v6226_v29, 1  ;;  %v4875_v22 = vld [vmem:[%s6140_s3 + $0x158] sm:$0xff]   ;;  %v4892_v2 = vld [vmem:[%s6140_s3 + $0x220] sm:$0xff]   ;;  %v4894_v58 = vld [vmem:[%s6140_s3 + $0x230] sm:$0xff]  }
  0x89   : > { %4151 = vmatprep.mubr.msk.bf16.mxu1 %vm5114_vm4, %v6220_v37  ;;  %4180 = vmatpush3.bf16.msra.mxu1 %v4868_v25  ;;  %v1876_v25 = vor.u32 %v1875_v33, %v1871_v21  ;;  %v2454_v24 = vrot.slane %v6230_v7, 1  ;;  %v6231_v21 = vld [vmem:[#allocation6_spill] sm:$0xff]  ;;  %v6234_v4 = vld [vmem:[#allocation4_spill] sm:$0xff]  ;;  %v4901_v35 = vld [vmem:[%s6140_s3 + $0x118] sm:$0xff]  }
  0x8a   : > { %4181 = vmatprep.subr.bf16.mxu1 %v4870_v11  ;;  %4352 = vmatmul.mubr.bf16.gmra.mrb[20].mxu0 %v5741_v43  ;;  %v5811_v12 = vsel %vm2444_vm5, %v2451_v8, %v2452_v10  ;;  %v2455_v33 = vrot.slane %v6231_v21, 1  ;;  %v6236_v29 = vld [vmem:[#allocation8_spill] sm:$0xff]  ;;  %v6237_v8 = vld [vmem:[#allocation9_spill] sm:$0xff]  ;;  %v4902_v10 = vld [vmem:[%s6140_s3 + $0x120] sm:$0xff]  }
  0x8b   : > { %4355 = vmatprep.mubr.bf16.mxu0 %v5744_v40  ;;  %v5777_v34 = vsel %vm1403_vm2, %v1876_v25, %v1880_v23  ;;  %v5841_v25 = vpack.c.bf16 %v506_v45, %v505_v62  ;;  %v4877_v23 = vld [vmem:[%s6140_s3 + $0x160] sm:$0xff]   ;;  %v4881_v62 = vld [vmem:[%s6140_s3 + $0x170] sm:$0xff]   ;;  %v4883_v45 = vld [vmem:[%s6140_s3 + $0x178] sm:$0xff]  }
  0x8c   : > { %v5828_v42 = vsel %vm2444_vm5, %v2454_v24, %v2455_v33  ;;  %v4904_v7 = vld [vmem:[%s6140_s3 + $0x130] sm:$0xff]   ;;  %v6240_v24 = vld [vmem:[#allocation15_spill] sm:$0xff]  ;;  %v6241_v21 = vld [vmem:[#allocation18_spill] sm:$0xff] }
  0x8d   : > { %4182 = vmatpush3.bf16.msra.mxu1 %v4870_v11  ;;  %v5795_v11 = vrot.slane %v6224_v17, 1  ;;  %v4905_v33 = vld [vmem:[%s6140_s3 + $0x138] sm:$0xff]  }
  0x8e   : > { %4183 = vmatprep.subr.bf16.mxu1 %v4872_v51 }
  0x90   : > { %4152 = vmatmul.mubr.msk.bf16.gmra.mrb[12].mxu1 %vm5114_vm4, %v6221_v52 }
  0x91   : > { %4155 = vmatprep.mubr.msk.bf16.mxu1 %vm5114_vm4, %v6222_v57  ;;  %4184 = vmatpush3.bf16.msra.mxu1 %v4872_v51  ;;  %v6232_v51 = vld [vmem:[#allocation22_spill] sm:$0xff] }
  0x92   : > { %4185 = vmatprep.subr.bf16.mxu1 %v4874_v46  ;;  %4356 = vmatmul.mubr.bf16.gmra.mrb[24].mxu0 %v5771_v60 }
  0x93   : > { %4359 = vmatprep.mubr.bf16.mxu0 %v5777_v34 }
  0x95   : > { %4186 = vmatpush3.bf16.msra.mxu1 %v4874_v46  ;;  %v4884_v46 = vld [vmem:[%s6140_s3 + $0x60] sm:$0xff]  }
  0x96   : > { %4219 = vmatprep.subr.bf16.mxu1 %v4876_v9 }
  0x98   : > { %4156 = vmatmul.mubr.msk.bf16.gmra.mrb[16].mxu1 %vm5114_vm4, %v6223_v38 }
  0x99   : > { %4159 = vmatprep.mubr.msk.bf16.mxu1 %vm5114_vm4, %v6225_v28 }
  0x9a   : > { %4360 = vmatmul.mubr.bf16.gmra.mrb[28].mxu0 %v5789_v63 }
  0x9b   : > { %4379 = vmatprep.mubr.bf16.mxu0 %v5795_v11 }
  0xa0   : > { %4160 = vmatmul.mubr.msk.bf16.gmra.mrb[20].mxu1 %vm5114_vm4, %v6228_v0 }
  0xa1   : > { %4163 = vmatprep.mubr.msk.bf16.mxu1 %vm5114_vm4, %v6229_v3 }
  0xa2   : > { %4380 = vmatmul.mubr.bf16.vlgmr.msra.gmra.mrb[0].mxu0 %v5609_v27 }
  0xa3   : > { %4412 = vmatpush3.bf16.msra.mxu0 %v5662_v13  ;;  %4383 = vmatprep.mubr.bf16.mxu0 %v5811_v12  ;;  %v6233_v13 = vld [vmem:[#allocation24_spill] sm:$0xff] }
  0xa4   : > { %4413 = vmatprep.subr.bf16.mxu0 %v4871_v6 }
  0xa7   : > { %4414 = vmatpush3.bf16.msra.mxu0 %v4871_v6  ;;  %v4903_v6 = vld [vmem:[%s6140_s3 + $0x128] sm:$0xff]  }
  0xa8   : > { %4164 = vmatmul.mubr.msk.bf16.gmra.mrb[24].mxu1 %vm5114_vm4, %v6232_v51  ;;  %4415 = vmatprep.subr.bf16.mxu0 %v4873_v41 }
  0xa9   : > { %4167 = vmatprep.mubr.msk.bf16.mxu1 %vm5114_vm4, %v6233_v13 }
  0xaa   : > { %4384 = vmatmul.mubr.bf16.gmra.mrb[4].mxu0 %v5828_v42 }
  0xab   : > { %4387 = vmatprep.mubr.bf16.mxu0 %v5670_v44  ;;  %4416 = vmatpush3.bf16.msra.mxu0 %v4873_v41 }
  0xac   : > { %4417 = vmatprep.subr.bf16.mxu0 %v4875_v22 }
  0xaf   : > { %4418 = vmatpush3.bf16.msra.mxu0 %v4875_v22 }
  0xb0   : > { %4168 = vmatmul.mubr.msk.bf16.gmra.mrb[28].mxu1 %vm5114_vm4, %v5841_v25  ;;  %4419 = vmatprep.subr.bf16.mxu0 %v4877_v23 }
  0xb1   : > { %4187 = vmatprep.mubr.msk.bf16.mxu1 %vm5114_vm4, %v5100_v5  ;;  %v4880_v5 = vld [vmem:[%s6140_s3 + $0x50] sm:$0xff]  }
  0xb2   : > { %4388 = vmatmul.mubr.bf16.gmra.mrb[8].mxu0 %v5673_v16 }
  0xb3   : > { %4391 = vmatprep.mubr.bf16.mxu0 %v5689_v54  ;;  %4420 = vmatpush3.bf16.msra.mxu0 %v4877_v23 }
  0xb4   : > { %4421 = vmatprep.subr.bf16.mxu0 %v4879_v19 }
  0xb7   : > { %4422 = vmatpush3.bf16.msra.mxu0 %v4879_v19 }
  0xb8   : > { %4188 = vmatmul.mubr.msk.bf16.vlgmr.msra.gmra.mrb[0].mxu1 %vm5114_vm4, %v5127_v30  ;;  %4423 = vmatprep.subr.bf16.mxu0 %v4881_v62  ;;  %v4882_v30 = vld [vmem:[%s6140_s3 + $0x58] sm:$0xff]  }
  0xb9   : > { %4220 = vmatpush3.bf16.msra.mxu1 %v4876_v9  ;;  %4191 = vmatprep.mubr.msk.bf16.mxu1 %vm5114_vm4, %v5175_v1  ;;  %v4885_v1 = vld [vmem:[%s6140_s3 + $0x200] sm:$0xff]   ;;  %v4891_v9 = vld [vmem:[%s6140_s3 + $0x218] sm:$0xff]  }
  0xba   : > { %4221 = vmatprep.subr.bf16.mxu1 %v4878_v32  ;;  %4392 = vmatmul.mubr.bf16.gmra.mrb[12].mxu0 %v5698_v48 }
  0xbb   : > { %4395 = vmatprep.mubr.bf16.mxu0 %v5703_v26  ;;  %4424 = vmatpush3.bf16.msra.mxu0 %v4881_v62 }
  0xbc   : > { %4425 = vmatprep.subr.bf16.mxu0 %v4883_v45 }
  0xbd   : > { %4222 = vmatpush3.bf16.msra.mxu1 %v4878_v32 }
  0xbe   : > { %4223 = vmatprep.subr.bf16.mxu1 %v4880_v5 }
  0xbf   : > { %4426 = vmatpush3.bf16.msra.mxu0 %v4883_v45 }
  0xc0   : > { %4192 = vmatmul.mubr.msk.bf16.gmra.mrb[4].mxu1 %vm5114_vm4, %v5214_v39  ;;  %4459 = vmatprep.subr.bf16.mxu0 %v4885_v1  ;;  %v4886_v39 = vld [vmem:[%s6140_s3 + $0x68] sm:$0xff]  }
  0xc1   : > { %4195 = vmatprep.mubr.msk.bf16.mxu1 %vm5114_vm4, %v6219_v31  ;;  %4224 = vmatpush3.bf16.msra.mxu1 %v4880_v5  ;;  %v4888_v31 = vld [vmem:[%s6140_s3 + $0x70] sm:$0xff]  }
  0xc2   : > { %4225 = vmatprep.subr.bf16.mxu1 %v4882_v30  ;;  %4396 = vmatmul.mubr.bf16.gmra.mrb[16].mxu0 %v5711_v55 }
  0xc3   : > { %4399 = vmatprep.mubr.bf16.mxu0 %v5719_v14 }
  0xc5   : > { %4226 = vmatpush3.bf16.msra.mxu1 %v4882_v30 }
  0xc6   : > { %4227 = vmatprep.subr.bf16.mxu1 %v4884_v46 }
  0xc8   : > { %4196 = vmatmul.mubr.msk.bf16.gmra.mrb[8].mxu1 %vm5114_vm4, %v6220_v37  ;;  %v4890_v37 = vld [vmem:[%s6140_s3 + $0x78] sm:$0xff]  }
  0xc9   : > { %4199 = vmatprep.mubr.msk.bf16.mxu1 %vm5114_vm4, %v6221_v52  ;;  %4228 = vmatpush3.bf16.msra.mxu1 %v4884_v46  ;;  %v4898_v52 = vld [vmem:[%s6140_s3 + $0x100] sm:$0xff]  }
  0xca   : > { %4229 = vmatprep.subr.bf16.mxu1 %v4886_v39  ;;  %4400 = vmatmul.mubr.bf16.gmra.mrb[20].mxu0 %v5725_v49 }
  0xcb   : > { %4403 = vmatprep.mubr.bf16.mxu0 %v5734_v47 }
  0xcd   : > { %4230 = vmatpush3.bf16.msra.mxu1 %v4886_v39 }
  0xce   : > { %4231 = vmatprep.subr.bf16.mxu1 %v4888_v31 }
  0xd0   : > { %4200 = vmatmul.mubr.msk.bf16.gmra.mrb[12].mxu1 %vm5114_vm4, %v6222_v57  ;;  %v4887_v57 = vld [vmem:[%s6140_s3 + $0x208] sm:$0xff]  }
  0xd1   : > { %4203 = vmatprep.mubr.msk.bf16.mxu1 %vm5114_vm4, %v6223_v38  ;;  %4232 = vmatpush3.bf16.msra.mxu1 %v4888_v31  ;;  %v6235_v38 = vld [vmem:[#allocation7_spill] sm:$0xff] }
  0xd2   : > { %4233 = vmatprep.subr.bf16.mxu1 %v4890_v37  ;;  %4404 = vmatmul.mubr.bf16.gmra.mrb[24].mxu0 %v5737_v36 }
  0xd3   : > { %4407 = vmatprep.mubr.bf16.mxu0 %v5750_v59 }
  0xd5   : > { %4234 = vmatpush3.bf16.msra.mxu1 %v4890_v37 }
  0xd6   : > { %4507 = vmatprep.subr.bf16.mxu1 %v4898_v52 }
  0xd8   : > { %4204 = vmatmul.mubr.msk.bf16.gmra.mrb[16].mxu1 %vm5114_vm4, %v6225_v28  ;;  %v4900_v28 = vld [vmem:[%s6140_s3 + $0x110] sm:$0xff]  }
  0xd9   : > { %4207 = vmatprep.mubr.msk.bf16.mxu1 %vm5114_vm4, %v6228_v0  ;;  %v6238_v0 = vld [vmem:[#allocation11_spill] sm:$0xff] }
  0xda   : > { %4408 = vmatmul.mubr.bf16.gmra.mrb[28].mxu0 %v5758_v15 }
  0xdb   : > { %4427 = vmatprep.mubr.bf16.mxu0 %v5609_v27  ;;  %v4889_v27 = vld [vmem:[%s6140_s3 + $0x210] sm:$0xff]  }
  0xe0   : > { %4208 = vmatmul.mubr.msk.bf16.gmra.mrb[20].mxu1 %vm5114_vm4, %v6229_v3  ;;  %v6239_v3 = vld [vmem:[#allocation13_spill] sm:$0xff] }
  0xe1   : > { %4211 = vmatprep.mubr.msk.bf16.mxu1 %vm5114_vm4, %v6232_v51 }
  0xe2   : > { %4428 = vmatmul.mubr.bf16.vlgmr.msra.gmra.mrb[0].mxu0 %v5811_v12 }
  0xe3   : > { %4460 = vmatpush3.bf16.msra.mxu0 %v4885_v1  ;;  %4431 = vmatprep.mubr.bf16.mxu0 %v5828_v42 }
  0xe4   : > { %4461 = vmatprep.subr.bf16.mxu0 %v4887_v57 }
  0xe7   : > { %4462 = vmatpush3.bf16.msra.mxu0 %v4887_v57 }
  0xe8   : > { %4212 = vmatmul.mubr.msk.bf16.gmra.mrb[24].mxu1 %vm5114_vm4, %v6233_v13  ;;  %4463 = vmatprep.subr.bf16.mxu0 %v4889_v27 }
  0xe9   : > { %4215 = vmatprep.mubr.msk.bf16.mxu1 %vm5114_vm4, %v5841_v25 }
  0xea   : > { %4432 = vmatmul.mubr.bf16.gmra.mrb[4].mxu0 %v5670_v44 }
  0xeb   : > { %4435 = vmatprep.mubr.bf16.mxu0 %v5673_v16  ;;  %4464 = vmatpush3.bf16.msra.mxu0 %v4889_v27 }
  0xec   : > { %4465 = vmatprep.subr.bf16.mxu0 %v4891_v9 }
  0xef   : > { %4466 = vmatpush3.bf16.msra.mxu0 %v4891_v9 }
  0xf0   : > { %4216 = vmatmul.mubr.bf16.gmra.mrb[28].mxu1 %v6224_v17  ;;  %4467 = vmatprep.subr.bf16.mxu0 %v4892_v2  ;;  %v4895_v17 = vld [vmem:[%s6140_s3 + $0x238] sm:$0xff]  }
  0xf1   : > { %4235 = vmatprep.mubr.bf16.mxu1 %v5789_v63  ;;  %v4899_v63 = vld [vmem:[%s6140_s3 + $0x108] sm:$0xff]  }
  0xf2   : > { %4436 = vmatmul.mubr.bf16.gmra.mrb[8].mxu0 %v5689_v54 }
  0xf3   : > { %4439 = vmatprep.mubr.bf16.mxu0 %v5698_v48  ;;  %4468 = vmatpush3.bf16.msra.mxu0 %v4892_v2 }
  0xf4   : > { %4469 = vmatprep.subr.bf16.mxu0 %v4893_v18 }
  0xf7   : > { %4470 = vmatpush3.bf16.msra.mxu0 %v4893_v18 }
  0xf8   : > { %4236 = vmatmul.mubr.bf16.vlgmr.msra.gmra.mrb[0].mxu1 %v6234_v4  ;;  %4471 = vmatprep.subr.bf16.mxu0 %v4894_v58 }
  0xf9   : > { %4515 = vmatpush3.bf16.msra.mxu1 %v4898_v52  ;;  %4239 = vmatprep.mubr.bf16.mxu1 %v6235_v38 }
  0xfa   : > { %4508 = vmatprep.subr.bf16.mxu1 %v4899_v63  ;;  %4440 = vmatmul.mubr.bf16.gmra.mrb[12].mxu0 %v5703_v26 }
  0xfb   : > { %4443 = vmatprep.mubr.bf16.mxu0 %v5711_v55  ;;  %4472 = vmatpush3.bf16.msra.mxu0 %v4894_v58 }
  0xfc   : > { %4473 = vmatprep.subr.bf16.mxu0 %v4895_v17 }
  0xfd   : > { %4516 = vmatpush3.bf16.msra.mxu1 %v4899_v63 }
  0xfe   : > { %4509 = vmatprep.subr.bf16.mxu1 %v4900_v28 }
  0xff   : > { %4474 = vmatpush3.bf16.msra.mxu0 %v4895_v17 }
 0x100   : > { %4240 = vmatmul.mubr.bf16.gmra.mrb[4].mxu1 %v6236_v29 }
 0x101   : > { %4243 = vmatprep.mubr.bf16.mxu1 %v6237_v8  ;;  %4517 = vmatpush3.bf16.msra.mxu1 %v4900_v28 }
 0x102   : > { %4510 = vmatprep.subr.bf16.mxu1 %v4901_v35  ;;  %4444 = vmatmul.mubr.bf16.gmra.mrb[16].mxu0 %v5719_v14 }
 0x103   : > { %4447 = vmatprep.mubr.bf16.mxu0 %v5725_v49 }
 0x105   : > { %4518 = vmatpush3.bf16.msra.mxu1 %v4901_v35 }
 0x106   : > { %4511 = vmatprep.subr.bf16.mxu1 %v4902_v10 }
 0x108   : > { %4244 = vmatmul.mubr.bf16.gmra.mrb[8].mxu1 %v6238_v0 }
 0x109   : > { %4247 = vmatprep.mubr.bf16.mxu1 %v6239_v3  ;;  %4519 = vmatpush3.bf16.msra.mxu1 %v4902_v10 }
 0x10a   : > { %4512 = vmatprep.subr.bf16.mxu1 %v4903_v6  ;;  %4448 = vmatmul.mubr.bf16.gmra.mrb[20].mxu0 %v5734_v47 }
 0x10b   : > { %4451 = vmatprep.mubr.bf16.mxu0 %v5737_v36 }
 0x10d   : > { %4520 = vmatpush3.bf16.msra.mxu1 %v4903_v6 }
 0x10e   : > { %4513 = vmatprep.subr.bf16.mxu1 %v4904_v7 }
 0x110   : > { %4248 = vmatmul.mubr.bf16.gmra.mrb[12].mxu1 %v6240_v24 }
 0x111   : > { %4251 = vmatprep.mubr.bf16.mxu1 %v6241_v21  ;;  %4521 = vmatpush3.bf16.msra.mxu1 %v4904_v7 }
 0x112   : > { %4514 = vmatprep.subr.bf16.mxu1 %v4905_v33  ;;  %4452 = vmatmul.mubr.bf16.gmra.mrb[24].mxu0 %v5750_v59 }
 0x113   : > { %4455 = vmatprep.mubr.bf16.mxu0 %v5758_v15 }
 0x115   : > { %4522 = vmatpush3.bf16.msra.mxu1 %v4905_v33 }
 0x118   : > { %4252 = vmatmul.mubr.bf16.gmra.mrb[16].mxu1 %v5597_v56 }
 0x119   : > { %4255 = vmatprep.mubr.bf16.mxu1 %v5619_v50 }
 0x11a   : > { %4456 = vmatmul.mubr.bf16.gmra.mrb[28].mxu0 %v5787_v61 }
 0x11b   : > { %4475 = vmatprep.mubr.bf16.mxu0 %v5811_v12 }
 0x120   : > { %4256 = vmatmul.mubr.bf16.gmra.mrb[20].mxu1 %v5635_v20 }
 0x121   : > { %4259 = vmatprep.mubr.bf16.mxu1 %v5656_v53 }
 0x122   : > { %4476 = vmatmul.mubr.bf16.vlgmr.msra.gmra.mrb[0].mxu0 %v5828_v42 }
 0x123   : > { %4479 = vmatprep.mubr.bf16.mxu0 %v5670_v44 }
 0x128   : > { %4260 = vmatmul.mubr.bf16.gmra.mrb[24].mxu1 %v5741_v43 }
 0x129   : > { %4263 = vmatprep.mubr.bf16.mxu1 %v5744_v40 }
 0x12a   : > { %4480 = vmatmul.mubr.bf16.gmra.mrb[4].mxu0 %v5673_v16 }
 0x12b   : > { %4483 = vmatprep.mubr.bf16.mxu0 %v5689_v54 }
 0x130   : > { %4264 = vmatmul.mubr.bf16.gmra.mrb[28].mxu1 %v5771_v60 }
 0x131   : > { %4299 = vmatprep.mubr.bf16.mxu1 %v5597_v56 }
 0x132   : > { %4484 = vmatmul.mubr.bf16.gmra.mrb[8].mxu0 %v5698_v48 }
 0x133   : > { %4487 = vmatprep.mubr.bf16.mxu0 %v5703_v26 }
 0x138   : > { %4300 = vmatmul.mubr.bf16.vlgmr.msra.gmra.mrb[16].mxu1 %v5619_v50 }
 0x139   : > { %4303 = vmatprep.mubr.bf16.mxu1 %v5635_v20 }
 0x13a   : > { %4488 = vmatmul.mubr.bf16.gmra.mrb[12].mxu0 %v5711_v55 }
 0x13b   : > { %4491 = vmatprep.mubr.bf16.mxu0 %v5719_v14 }
 0x140   : > { %4304 = vmatmul.mubr.bf16.gmra.mrb[20].mxu1 %v5656_v53 }
 0x141   : > { %4307 = vmatprep.mubr.bf16.mxu1 %v5741_v43 }
 0x142   : > { %4492 = vmatmul.mubr.bf16.gmra.mrb[16].mxu0 %v5725_v49 }
 0x143   : > { %4495 = vmatprep.mubr.bf16.mxu0 %v5734_v47 }
 0x148   : > { %4308 = vmatmul.mubr.bf16.gmra.mrb[24].mxu1 %v5744_v40 }
 0x149   : > { %4311 = vmatprep.mubr.bf16.mxu1 %v5771_v60 }
 0x14a   : > { %4496 = vmatmul.mubr.bf16.gmra.mrb[20].mxu0 %v5737_v36 }
 0x14b   : > { %4499 = vmatprep.mubr.bf16.mxu0 %v5750_v59  ;;  %v6052_v59 = vld [vmem:[%s6141_s4] ss:$0 sm:$0xff] }
 0x150   : > { %4312 = vmatmul.mubr.bf16.gmra.mrb[28].mxu1 %v5777_v34 }
 0x152   : > { %4500 = vmatmul.mubr.bf16.gmra.mrb[24].mxu0 %v5758_v15 }
 0x153   : > { %4503 = vmatprep.mubr.bf16.mxu0 %v5787_v61 }
 0x15a   : > { %4504 = vmatmul.mubr.bf16.gmra.mrb[28].mxu0 %v5795_v11 }
 0x1cb   : > { %v4237_v56 = vpop.f32.mrb[0].mxu1 }
 0x1cc   : > { %v1711_v50 = vpop.f32.mrb[1].mxu1  ;;  %v4523_v15 = vadd.f32 %v4237_v56, %v6052_v59 }
 0x1cd   : > { %v4238_v20 = vpop.f32.mrb[2].mxu1  ;;  %v4525_v60 = vadd.f32 %v6052_v59, %v1711_v50 }
 0x1ce   : > { %v1714_v53 = vpop.f32.mrb[3].mxu1  ;;  %v4527_v61 = vadd.f32 %v4238_v20, %v6052_v59 }
 0x1cf   : > { %v4529_v41 = vadd.f32 %v6052_v59, %v1714_v53 }
 0x1d3   : > { %v4241_v44 = vpop.f32.mrb[4].mxu1 }
 0x1d4   : > { %v1727_v16 = vpop.f32.mrb[5].mxu1  ;;  %v4531_v62 = vadd.f32 %v4241_v44, %v6052_v59 }
 0x1d5   : > { %v4242_v54 = vpop.f32.mrb[6].mxu1  ;;  %v4533_v5 = vadd.f32 %v6052_v59, %v1727_v16 }
 0x1d6   : > { %v1730_v48 = vpop.f32.mrb[7].mxu1  ;;  %v4535_v39 = vadd.f32 %v4242_v54, %v6052_v59 }
 0x1d7   : > { %v4537_v31 = vadd.f32 %v6052_v59, %v1730_v48 }
 0x1db   : > { %v4245_v26 = vpop.f32.mrb[8].mxu1 }
 0x1dc   : > { %v1743_v55 = vpop.f32.mrb[9].mxu1  ;;  %v4539_v10 = vadd.f32 %v4245_v26, %v6052_v59 }
 0x1dd   : > { %v4246_v14 = vpop.f32.mrb[10].mxu1  ;;  %v4541_v0 = vadd.f32 %v6052_v59, %v1743_v55 }
 0x1de   : > { %v1746_v49 = vpop.f32.mrb[11].mxu1  ;;  %v4543_v21 = vadd.f32 %v4246_v14, %v6052_v59 }
 0x1df   : > { %v4545_v33 = vadd.f32 %v6052_v59, %v1746_v49 }
 0x1e3   : > { %v6041_v47 = vpop.f32.mrb[12].mxu1 }
 0x1e4   : > { %v6043_v36 = vpop.f32.mrb[13].mxu1 }
 0x1e5   : > { %v6045_v43 = vpop.f32.mrb[14].mxu1 }
 0x1e6   : > { %v6047_v40 = vpop.f32.mrb[15].mxu1 }
 0x1f5   : > { %v4477_v34 = vpop.f32.mrb[0].mxu0 }
 0x1f6   : > { %v4524_v11 = vadd.f32 %v4523_v15, %v4477_v34  ;;  %v3136_v12 = vpop.f32.mrb[1].mxu0 }
 0x1f7   : > { %v4526_v51 = vadd.f32 %v4525_v60, %v3136_v12  ;;  %v4478_v42 = vpop.f32.mrb[2].mxu0 }
 0x1f8   : > { %3297 = vst [vmem:[%s4969_s8 + $0x10] sm:$0xff] %v4524_v11  ;;  %v4528_v13 = vadd.f32 %v4527_v61, %v4478_v42  ;;  %v3139_v22 = vpop.f32.mrb[3].mxu0  ;;  %v3370_v45 = vmul.f32 %v4524_v11, %v4524_v11 }
 0x1f9   : > { %3295 = vst [vmem:[%s4969_s8] sm:$0xff] %v4526_v51  ;;  %v4530_v25 = vadd.f32 %v4529_v41, %v3139_v22  ;;  %v3368_v23 = vmul.f32 %v4526_v51, %v4526_v51 }
 0x1fa   : > { %3298 = vst [vmem:[%s4969_s8 + $0x18] sm:$0xff] %v4528_v13  ;;  %v3371_v57 = vmul.f32 %v4528_v13, %v4528_v13 }
 0x1fb   : > { %3296 = vst [vmem:[%s4969_s8 + $0x8] sm:$0xff] %v4530_v25  ;;  %v3328_v19 = vadd.f32 %v4530_v25, %v4526_v51  ;;  %v3369_v32 = vmul.f32 %v4530_v25, %v4530_v25  ;;  %v4547_v51 = vadd.f32 %v6041_v47, %v6052_v59 }
 0x1fd   : > { %v3329_v30 = vadd.f32 %v4524_v11, %v3328_v19  ;;  %v3400_v1 = vadd.f32 %v3369_v32, %v3368_v23  ;;  %v4481_v46 = vpop.f32.mrb[4].mxu0  ;;  %v4551_v32 = vadd.f32 %v6045_v43, %v6052_v59 }
 0x1fe   : > { %v4532_v37 = vadd.f32 %v4531_v62, %v4481_v46  ;;  %v3152_v52 = vpop.f32.mrb[5].mxu0  ;;  %v4553_v62 = vadd.f32 %v6052_v59, %v6047_v40 }
 0x1ff   : > { %v3401_v27 = vadd.f32 %v3400_v1, %v3370_v45  ;;  %v4534_v9 = vadd.f32 %v4533_v5, %v3152_v52  ;;  %v3330_v2 = vadd.f32 %v4528_v13, %v3329_v30  ;;  %v4482_v18 = vpop.f32.mrb[6].mxu0  ;;  %v4549_v13 = vadd.f32 %v6052_v59, %v6043_v36 }
 0x200   : > { %3301 = vst [vmem:[%s4969_s8 + $0x30] sm:$0xff] %v4532_v37  ;;  %v4536_v58 = vadd.f32 %v4535_v39, %v4482_v18  ;;  %v3155_v4 = vpop.f32.mrb[7].mxu0  ;;  %v3374_v3 = vmul.f32 %v4532_v37, %v4532_v37 }
 0x201   : > { %3299 = vst [vmem:[%s4969_s8 + $0x20] sm:$0xff] %v4534_v9  ;;  %v3331_v38 = vadd.f32 %v4534_v9, %v3330_v2  ;;  %v3372_v63 = vmul.f32 %v4534_v9, %v4534_v9  ;;  %v3402_v17 = vadd.f32 %v3401_v27, %v3371_v57  ;;  %v4538_v28 = vadd.f32 %v4537_v31, %v3155_v4 }
 0x202   : > { %3302 = vst [vmem:[%s4969_s8 + $0x38] sm:$0xff] %v4536_v58  ;;  %v3375_v20 = vmul.f32 %v4536_v58, %v4536_v58 }
 0x203   : > { %v3403_v29 = vadd.f32 %v3402_v17, %v3372_v63  ;;  %3300 = vst [vmem:[%s4969_s8 + $0x28] sm:$0xff] %v4538_v28  ;;  %v3332_v8 = vadd.f32 %v4538_v28, %v3331_v38  ;;  %v3373_v35 = vmul.f32 %v4538_v28, %v4538_v28 }
 0x205   : > { %v3333_v6 = vadd.f32 %v4532_v37, %v3332_v8  ;;  %v3404_v7 = vadd.f32 %v3403_v29, %v3373_v35  ;;  %v4485_v24 = vpop.f32.mrb[8].mxu0 }
 0x206   : > { %v4540_v56 = vadd.f32 %v4539_v10, %v4485_v24  ;;  %v3168_v50 = vpop.f32.mrb[9].mxu0 }
 0x207   : > { %v3405_v53 = vadd.f32 %v3404_v7, %v3374_v3  ;;  %v4542_v44 = vadd.f32 %v4541_v0, %v3168_v50  ;;  %v3334_v16 = vadd.f32 %v4536_v58, %v3333_v6  ;;  %v4486_v54 = vpop.f32.mrb[10].mxu0 }
 0x208   : > { %3305 = vst [vmem:[%s4969_s8 + $0x50] sm:$0xff] %v4540_v56  ;;  %v4544_v48 = vadd.f32 %v4543_v21, %v4486_v54  ;;  %v3171_v26 = vpop.f32.mrb[11].mxu0  ;;  %v3378_v22 = vmul.f32 %v4540_v56, %v4540_v56 }
 0x209   : > { %3303 = vst [vmem:[%s4969_s8 + $0x40] sm:$0xff] %v4542_v44  ;;  %v3335_v55 = vadd.f32 %v4542_v44, %v3334_v16  ;;  %v3376_v15 = vmul.f32 %v4542_v44, %v4542_v44  ;;  %v3406_v60 = vadd.f32 %v3405_v53, %v3375_v20  ;;  %v4546_v34 = vadd.f32 %v4545_v33, %v3171_v26 }
 0x20a   : > { %3306 = vst [vmem:[%s4969_s8 + $0x58] sm:$0xff] %v4544_v48  ;;  %v3379_v47 = vmul.f32 %v4544_v48, %v4544_v48 }
 0x20b   : > { %v4301_v14 = vpop.f32.mrb[16].mxu1  ;;  %v3407_v61 = vadd.f32 %v3406_v60, %v3376_v15  ;;  %3304 = vst [vmem:[%s4969_s8 + $0x48] sm:$0xff] %v4546_v34  ;;  %v3336_v11 = vadd.f32 %v4546_v34, %v3335_v55  ;;  %v3377_v12 = vmul.f32 %v4546_v34, %v4546_v34 }
 0x20c   : > { %v2046_v49 = vpop.f32.mrb[17].mxu1  ;;  %v4555_v40 = vadd.f32 %v4301_v14, %v6052_v59 }
 0x20d   : > { %v4302_v41 = vpop.f32.mrb[18].mxu1  ;;  %v3337_v25 = vadd.f32 %v4540_v56, %v3336_v11  ;;  %v3408_v23 = vadd.f32 %v3407_v61, %v3377_v12  ;;  %v4489_v19 = vpop.f32.mrb[12].mxu0  ;;  %v4557_v4 = vadd.f32 %v6052_v59, %v2046_v49 }
 0x20e   : > { %v2049_v42 = vpop.f32.mrb[19].mxu1  ;;  %v4548_v5 = vadd.f32 %v4547_v51, %v4489_v19  ;;  %v3184_v45 = vpop.f32.mrb[13].mxu0  ;;  %v4559_v63 = vadd.f32 %v4302_v41, %v6052_v59 }
 0x20f   : > { %v3409_v30 = vadd.f32 %v3408_v23, %v3378_v22  ;;  %v4550_v1 = vadd.f32 %v4549_v13, %v3184_v45  ;;  %v3338_v46 = vadd.f32 %v4544_v48, %v3337_v25  ;;  %v4490_v36 = vpop.f32.mrb[14].mxu0  ;;  %v4561_v10 = vadd.f32 %v6052_v59, %v2049_v42 }
 0x210   : > { %3309 = vst [vmem:[%s4969_s8 + $0x70] sm:$0xff] %v4548_v5  ;;  %v4552_v39 = vadd.f32 %v4551_v32, %v4490_v36  ;;  %v3187_v31 = vpop.f32.mrb[15].mxu0  ;;  %v3382_v28 = vmul.f32 %v4548_v5, %v4548_v5 }
 0x211   : > { %3307 = vst [vmem:[%s4969_s8 + $0x60] sm:$0xff] %v4550_v1  ;;  %v3339_v37 = vadd.f32 %v4550_v1, %v3338_v46  ;;  %v3380_v52 = vmul.f32 %v4550_v1, %v4550_v1  ;;  %v3410_v57 = vadd.f32 %v3409_v30, %v3379_v47  ;;  %v4554_v43 = vadd.f32 %v4553_v62, %v3187_v31 }
 0x212   : > { %3310 = vst [vmem:[%s4969_s8 + $0x78] sm:$0xff] %v4552_v39  ;;  %v3383_v6 = vmul.f32 %v4552_v39, %v4552_v39 }
 0x213   : > { %v4305_v27 = vpop.f32.mrb[20].mxu1  ;;  %v3411_v2 = vadd.f32 %v3410_v57, %v3380_v52  ;;  %3308 = vst [vmem:[%s4969_s8 + $0x68] sm:$0xff] %v4554_v43  ;;  %v3340_v18 = vadd.f32 %v4554_v43, %v3339_v37  ;;  %v3381_v58 = vmul.f32 %v4554_v43, %v4554_v43 }
 0x214   : > { %v2062_v9 = vpop.f32.mrb[21].mxu1  ;;  %v4563_v48 = vadd.f32 %v4305_v27, %v6052_v59 }
 0x215   : > { %v4306_v38 = vpop.f32.mrb[22].mxu1  ;;  %v3341_v29 = vadd.f32 %v4548_v5, %v3340_v18  ;;  %v3412_v8 = vadd.f32 %v3411_v2, %v3381_v58  ;;  %v4493_v35 = vpop.f32.mrb[16].mxu0  ;;  %v4565_v34 = vadd.f32 %v6052_v59, %v2062_v9 }
 0x216   : > { %v2065_v17 = vpop.f32.mrb[23].mxu1  ;;  %v4556_v0 = vadd.f32 %v4555_v40, %v4493_v35  ;;  %v3200_v3 = vpop.f32.mrb[17].mxu0  ;;  %v4567_v49 = vadd.f32 %v4306_v38, %v6052_v59 }
 0x217   : > { %v3413_v7 = vadd.f32 %v3412_v8, %v3382_v28  ;;  %v4558_v24 = vadd.f32 %v4557_v4, %v3200_v3  ;;  %v3342_v21 = vadd.f32 %v4552_v39, %v3341_v29  ;;  %v4494_v33 = vpop.f32.mrb[18].mxu0  ;;  %v4569_v42 = vadd.f32 %v6052_v59, %v2065_v17 }
 0x218   : > { %3313 = vst [vmem:[%s4969_s8 + $0x90] sm:$0xff] %v4556_v0  ;;  %v4560_v56 = vadd.f32 %v4559_v63, %v4494_v33  ;;  %v3203_v50 = vpop.f32.mrb[19].mxu0  ;;  %v3386_v11 = vmul.f32 %v4556_v0, %v4556_v0 }
 0x219   : > { %3311 = vst [vmem:[%s4969_s8 + $0x80] sm:$0xff] %v4558_v24  ;;  %v3343_v20 = vadd.f32 %v4558_v24, %v3342_v21  ;;  %v3384_v53 = vmul.f32 %v4558_v24, %v4558_v24  ;;  %v3414_v44 = vadd.f32 %v3413_v7, %v3383_v6  ;;  %v4562_v16 = vadd.f32 %v4561_v10, %v3203_v50 }
 0x21a   : > { %3314 = vst [vmem:[%s4969_s8 + $0x98] sm:$0xff] %v4560_v56  ;;  %v3387_v25 = vmul.f32 %v4560_v56, %v4560_v56 }
 0x21b   : > { %v4309_v54 = vpop.f32.mrb[24].mxu1  ;;  %v3415_v55 = vadd.f32 %v3414_v44, %v3384_v53  ;;  %3312 = vst [vmem:[%s4969_s8 + $0x88] sm:$0xff] %v4562_v16  ;;  %v3344_v15 = vadd.f32 %v4562_v16, %v3343_v20  ;;  %v3385_v60 = vmul.f32 %v4562_v16, %v4562_v16 }
 0x21c   : > { %v2078_v26 = vpop.f32.mrb[25].mxu1  ;;  %v4571_v39 = vadd.f32 %v4309_v54, %v6052_v59 }
 0x21d   : > { %v4310_v14 = vpop.f32.mrb[26].mxu1  ;;  %v3345_v12 = vadd.f32 %v4556_v0, %v3344_v15  ;;  %v3416_v41 = vadd.f32 %v3415_v55, %v3385_v60  ;;  %v4497_v51 = vpop.f32.mrb[20].mxu0  ;;  %v4573_v43 = vadd.f32 %v6052_v59, %v2078_v26 }
 0x21e   : > { %v2081_v61 = vpop.f32.mrb[27].mxu1  ;;  %v4564_v13 = vadd.f32 %v4563_v48, %v4497_v51  ;;  %v3216_v22 = vpop.f32.mrb[21].mxu0  ;;  %v4575_v40 = vadd.f32 %v4310_v14, %v6052_v59 }
 0x21f   : > { %v3417_v23 = vadd.f32 %v3416_v41, %v3386_v11  ;;  %v4566_v19 = vadd.f32 %v4565_v34, %v3216_v22  ;;  %v3346_v32 = vadd.f32 %v4560_v56, %v3345_v12  ;;  %v4498_v62 = vpop.f32.mrb[22].mxu0  ;;  %v4577_v38 = vadd.f32 %v6052_v59, %v2081_v61 }
 0x220   : > { %3317 = vst [vmem:[%s4969_s8 + $0xb0] sm:$0xff] %v4564_v13  ;;  %v4568_v5 = vadd.f32 %v4567_v49, %v4498_v62  ;;  %v3219_v45 = vpop.f32.mrb[23].mxu0  ;;  %v3390_v2 = vmul.f32 %v4564_v13, %v4564_v13 }
 0x221   : > { %3315 = vst [vmem:[%s4969_s8 + $0xa0] sm:$0xff] %v4566_v19  ;;  %v3347_v47 = vadd.f32 %v4566_v19, %v3346_v32  ;;  %v3388_v30 = vmul.f32 %v4566_v19, %v4566_v19  ;;  %v3418_v1 = vadd.f32 %v3417_v23, %v3387_v25  ;;  %v4570_v46 = vadd.f32 %v4569_v42, %v3219_v45 }
 0x222   : > { %3318 = vst [vmem:[%s4969_s8 + $0xb8] sm:$0xff] %v4568_v5  ;;  %v3391_v28 = vmul.f32 %v4568_v5, %v4568_v5 }
 0x223   : > { %v4313_v36 = vpop.f32.mrb[28].mxu1  ;;  %v3419_v37 = vadd.f32 %v3418_v1, %v3388_v30  ;;  %3316 = vst [vmem:[%s4969_s8 + $0xa8] sm:$0xff] %v4570_v46  ;;  %v3348_v52 = vadd.f32 %v4570_v46, %v3347_v47  ;;  %v3389_v57 = vmul.f32 %v4570_v46, %v4570_v46 }
 0x224   : > { %v2094_v31 = vpop.f32.mrb[29].mxu1  ;;  %v4579_v33 = vadd.f32 %v4313_v36, %v6052_v59 }
 0x225   : > { %v4314_v27 = vpop.f32.mrb[30].mxu1  ;;  %v3349_v18 = vadd.f32 %v4564_v13, %v3348_v52  ;;  %v3420_v58 = vadd.f32 %v3419_v37, %v3389_v57  ;;  %v4501_v4 = vpop.f32.mrb[24].mxu0  ;;  %v4581_v53 = vadd.f32 %v6052_v59, %v2094_v31 }
 0x226   : > { %v2097_v9 = vpop.f32.mrb[31].mxu1  ;;  %v4572_v63 = vadd.f32 %v4571_v39, %v4501_v4  ;;  %v3232_v17 = vpop.f32.mrb[25].mxu0  ;;  %v4583_v44 = vadd.f32 %v4314_v27, %v6052_v59  ;;  %v3327_v27 = vld [vmem:[%s6143_s6] sm:$0x1] }
 0x227   : > { %v3421_v29 = vadd.f32 %v3420_v58, %v3390_v2  ;;  %v4574_v8 = vadd.f32 %v4573_v43, %v3232_v17  ;;  %v3350_v35 = vadd.f32 %v4568_v5, %v3349_v18  ;;  %v4502_v10 = vpop.f32.mrb[26].mxu0  ;;  %v4585_v55 = vadd.f32 %v6052_v59, %v2097_v9  ;;  %v3367_v2 = vld [vmem:[%s6144_s7] sm:$0x1] }
 0x228   : > { %3321 = vst [vmem:[%s4969_s8 + $0xd0] sm:$0xff] %v4572_v63  ;;  %v4576_v0 = vadd.f32 %v4575_v40, %v4502_v10  ;;  %v3235_v3 = vpop.f32.mrb[27].mxu0  ;;  %v3394_v16 = vmul.f32 %v4572_v63, %v4572_v63 }
 0x229   : > { %3319 = vst [vmem:[%s4969_s8 + $0xc0] sm:$0xff] %v4574_v8  ;;  %v3351_v6 = vadd.f32 %v4574_v8, %v3350_v35  ;;  %v3392_v7 = vmul.f32 %v4574_v8, %v4574_v8  ;;  %v3422_v24 = vadd.f32 %v3421_v29, %v3391_v28  ;;  %v4578_v21 = vadd.f32 %v4577_v38, %v3235_v3 }
 0x22a   : > { %3322 = vst [vmem:[%s4969_s8 + $0xd8] sm:$0xff] %v4576_v0  ;;  %v3395_v34 = vmul.f32 %v4576_v0, %v4576_v0 }
 0x22b   : > { %v3423_v56 = vadd.f32 %v3422_v24, %v3392_v7  ;;  %3320 = vst [vmem:[%s4969_s8 + $0xc8] sm:$0xff] %v4578_v21  ;;  %v3352_v50 = vadd.f32 %v4578_v21, %v3351_v6  ;;  %v3393_v20 = vmul.f32 %v4578_v21, %v4578_v21 }
 0x22d   : > { %v3353_v54 = vadd.f32 %v4572_v63, %v3352_v50  ;;  %v3424_v48 = vadd.f32 %v3423_v56, %v3393_v20  ;;  %v4505_v26 = vpop.f32.mrb[28].mxu0 }
 0x22e   : > { %v4580_v15 = vadd.f32 %v4579_v33, %v4505_v26  ;;  %v3248_v60 = vpop.f32.mrb[29].mxu0 }
 0x22f   : > { %v3425_v14 = vadd.f32 %v3424_v48, %v3394_v16  ;;  %v4582_v49 = vadd.f32 %v4581_v53, %v3248_v60  ;;  %v3354_v61 = vadd.f32 %v4576_v0, %v3353_v54  ;;  %v4506_v11 = vpop.f32.mrb[30].mxu0 }
 0x230   : > { %3325 = vst [vmem:[%s4969_s8 + $0xf0] sm:$0xff] %v4580_v15  ;;  %v4584_v12 = vadd.f32 %v4583_v44, %v4506_v11  ;;  %v3251_v41 = vpop.f32.mrb[31].mxu0  ;;  %v3398_v19 = vmul.f32 %v4580_v15, %v4580_v15 }
 0x231   : > { %3323 = vst [vmem:[%s4969_s8 + $0xe0] sm:$0xff] %v4582_v49  ;;  %v3355_v51 = vadd.f32 %v4582_v49, %v3354_v61  ;;  %v3396_v42 = vmul.f32 %v4582_v49, %v4582_v49  ;;  %v3426_v13 = vadd.f32 %v3425_v14, %v3395_v34  ;;  %v4586_v22 = vadd.f32 %v4585_v55, %v3251_v41 }
 0x232   : > { %3326 = vst [vmem:[%s4969_s8 + $0xf8] sm:$0xff] %v4584_v12  ;;  %v3399_v5 = vmul.f32 %v4584_v12, %v4584_v12 }
 0x233   : > { %v3427_v25 = vadd.f32 %v3426_v13, %v3396_v42  ;;  %3324 = vst [vmem:[%s4969_s8 + $0xe8] sm:$0xff] %v4586_v22  ;;  %v3356_v59 = vadd.f32 %v4586_v22, %v3355_v51  ;;  %v3397_v23 = vmul.f32 %v4586_v22, %v4586_v22 }
 0x235   : > { %v3357_v32 = vadd.f32 %v4580_v15, %v3356_v59  ;;  %v3428_v62 = vadd.f32 %v3427_v25, %v3397_v23 }
 0x237   : > { %v3358_v45 = vadd.f32 %v4584_v12, %v3357_v32  ;;  %v3429_v47 = vadd.f32 %v3428_v62, %v3398_v19 }
 0x239   : > { %v3359_v30 = vrot.slane %v3358_v45, 4  ;;  %v3430_v1 = vadd.f32 %v3429_v47, %v3399_v5 }
 0x23b   : > { %v3360_v46 = vadd.f32 %v3359_v30, %v3358_v45  ;;  %v3431_v36 = vrot.slane %v3430_v1, 4 }
 0x23d   : > { %v3361_v39 = vrot.slane %v3360_v46, 2  ;;  %v3432_v31 = vadd.f32 %v3431_v36, %v3430_v1 }
 0x23f   : > { %v3362_v37 = vadd.f32 %v3361_v39, %v3360_v46  ;;  %v3433_v52 = vrot.slane %v3432_v31, 2 }
 0x241   : > { %v3363_v57 = vrot.slane %v3362_v37, 1  ;;  %v3434_v43 = vadd.f32 %v3433_v52, %v3432_v31 }
 0x243   : > { %v3364_v40 = vadd.f32 %v3363_v57, %v3362_v37  ;;  %v3435_v9 = vrot.slane %v3434_v43, 1 }
 0x245   : > { %v3365_v18 = vadd.f32 %v3364_v40, %v3327_v27  ;;  %v3436_v58 = vadd.f32 %v3435_v9, %v3434_v43 }
 0x247   : > { %3366 = vst [vmem:[%s6143_s6] sm:$0x1] %v3365_v18  ;;  %v3437_v4 = vadd.f32 %v3436_v58, %v3367_v2 }
 0x249   : > { %3438 = vst [vmem:[%s6144_s7] sm:$0x1] %v3437_v4 }
 0x24a PF: > { %s18_s24 = sadd.s32 1, %s4912_s24  }
 0x24b   : > { %p15_p5 = scmp.ge.s32.totalorder %s18_s24, 4  }
 0x24d   :  { %17 = sbr.rel (!%p15_p5) target bundleno = 1 (0x1), region = 98 }

</bundles_post_ra>
